<compile_context>
chip_gen: v5e
topology: v5e:2x2
jax: 0.10.0
libtpu: 0.0.40
codegen_flags: <defaults>
</compile_context>

<pallas_src>
from functools import partial

import jax
import jax.numpy as jnp
from jax.experimental import pallas as pl
from jax.experimental.pallas import tpu as pltpu


# ----------------------------- geometry constants ---------------------------

H = W = 32           # input spatial size
C_IN = 3
C1, C2 = 6, 16       # conv output channels
K = 5                # conv kernel size
W1_GRID = 32         # per-channel X width of stage-1 tensors (input / conv1 out)
W2_GRID = 16         # per-channel X width of stage-2 tensors (pool1 / conv2 out)
W3_GRID = 8          # per-channel X width of pooled-2 features (5 valid, padded to 8)
FC1, FC2, FC3 = 120, 84, 10

# 128-dense (padded) lane widths
L_IN = 128           # C_IN*W1_GRID = 96  -> 128
L_C1 = 256           # C1*W1_GRID  = 192 -> 256
L_P1 = 128           # C1*W2_GRID  = 96  -> 128
L_C2 = 256           # C2*W2_GRID  = 256
L_P2 = 128           # C2*W3_GRID  = 128


# ----------------------------- fused kernel ---------------------------------


def _lenet_kernel(x_ref, wb1_ref, b1_ref, se1_ref, so1_ref,
                  wb2_ref, b2_ref, se2_ref, so2_ref,
                  wfc1_ref, bfc1_ref, wfc2_ref, bfc2_ref, wfc3_ref, bfc3_ref,
                  out_ref, s0, s1, s2, s3, s4, *, batch):
    f32 = jnp.float32
    bf16 = jnp.bfloat16
    R = batch * H                                   # live rows; row = b*32 + Y
    dot = partial(jnp.dot, preferred_element_type=f32)

    # -------- stage in: input into zero-padded scratch (rows (b,Y), lanes (c,X))
    s0[0:R, :] = x_ref[...]
    s0[R:R + 8, :] = jnp.zeros((8, L_IN), f32)

    # -------- conv1 + bias + relu: 5 banded row-tap bf16 matmuls, tree sum ----
    t = [dot(s0[i:i + R, :].astype(bf16), wb1_ref[i]) for i in range(K)]
    z1 = (t[0] + t[1]) + ((t[2] + t[3]) + t[4])
    z1 = jnp.maximum(z1 + b1_ref[...], 0.0)
    s1[0:R, :] = z1
    s1[R:R + 8, :] = jnp.zeros((8, L_C1), f32)

    # -------- pool1 (2x2): shifted-row max + host-prepared X selection matmuls
    m1 = jnp.maximum(s1[0:R, :], s1[1:1 + R, :]).astype(bf16)
    p1 = jnp.maximum(dot(m1, se1_ref[...]), dot(m1, so1_ref[...]))
    s2[0:R, :] = p1
    s2[R:R + 8, :] = jnp.zeros((8, L_P1), f32)

    # -------- conv2 + bias + relu (pool1 Y-subsample absorbed: row stride 2) --
    t = [dot(s2[2 * i:2 * i + R, :].astype(bf16), wb2_ref[i]) for i in range(K)]
    z2 = (t[0] + t[1]) + ((t[2] + t[3]) + t[4])
    z2 = jnp.maximum(z2 + b2_ref[...], 0.0)
    s3[0:R, :] = z2
    s3[R:R + 8, :] = jnp.zeros((8, L_C2), f32)

    # -------- pool2 ------------------------------------------------------------
    m2 = jnp.maximum(s3[0:R, :], s3[2:2 + R, :]).astype(bf16)
    feat = jnp.maximum(dot(m2, se2_ref[...]), dot(m2, so2_ref[...]))
    s4[0:R, :] = feat                               # (R, 128); valid rows b*32 + 4*y3
    s4[R:R + 16, :] = jnp.zeros((16, L_P2), f32)

    # -------- fc1 as ONE wide matmul over 5 row-shifted feature slabs ---------
    fcat = jnp.concatenate([s4[4 * y:4 * y + R, :] for y in range(5)], axis=1)
    g = dot(fcat.astype(bf16), wfc1_ref[...])       # (R, 120); row b*32 is sample b
    h1 = jnp.concatenate([g[b * H:b * H + 1, :] for b in range(batch)], axis=0)
    h1 = jnp.maximum(h1 + bfc1_ref[...], 0.0)       # (batch, 120)

    # -------- fc2 -> relu -> fc3 ----------------------------------------------
    h2 = jnp.maximum(dot(h1.astype(bf16), wfc2_ref[...]) + bfc2_ref[...], 0.0)
    out_ref[...] = dot(h2.astype(bf16), wfc3_ref[...]) + bfc3_ref[...]


# ----------------------------- host-side parameter prep (one-time) ----------


def _banded_conv_weight(w, width, in_lanes, out_lanes):
    """(O, C, K, K) conv weight -> (K, in_lanes, out_lanes) banded bf16 matrices.

    Wb[i, c*width + xin, o*width + xo] = w[o, c, i, xin - xo] for 0 <= xin - xo < K,
    zero-padded to 128-dense lane widths, so that
      out[(b, Y), (o, xo)] = sum_i act[(b, Y + i), :] @ Wb[i]   (valid region).
    """
    O, C, KH, KW = w.shape
    xin = jnp.arange(width)[None, :, None]
    xo = jnp.arange(width)[None, None, :]
    j = jnp.arange(KW)[:, None, None]
    band = (xin - xo == j).astype(jnp.float32)               # (KW, width, width)
    wb = jnp.einsum("ocij,jxy->icxoy", w.astype(jnp.float32), band)
    wb = wb.reshape(KH, C * width, O * width)
    wb = jnp.pad(wb, ((0, 0), (0, in_lanes - C * width), (0, out_lanes - O * width)))
    return wb.astype(jnp.bfloat16)


def _pool_selectors_host(n_ch, in_w, out_w, in_lanes, out_lanes):
    """Exact 0/1 bf16 matrices selecting even / odd X inside each channel block.

    Se[c*in_w + 2*x, c*out_w + x] = 1 ; So[c*in_w + 2*x + 1, c*out_w + x] = 1,
    zero everywhere else (including the 128-dense padding region).
    """
    l = jnp.arange(in_lanes)[:, None]
    m = jnp.arange(out_lanes)[None, :]
    c = m // out_w
    x = m % out_w
    src = c * in_w + 2 * x
    valid = c < n_ch
    se = ((l == src) & valid).astype(jnp.bfloat16)
    so = ((l == src + 1) & valid).astype(jnp.bfloat16)
    return se, so


def _fc1_prepared(w_fc1):
    """(400, 120) fc1 weight (rows = c*25 + y*5 + x) -> (5*128, 120) bf16, x padded 5->8.

    Row y*128 + c*8 + x multiplies feature lane (c, x) of the slab shifted by 4*y rows.
    """
    wr = w_fc1.reshape(C2, 5, 5, FC1)                        # (c, y, x, n)
    wr = jnp.pad(wr, ((0, 0), (0, 0), (0, W3_GRID - 5), (0, 0)))
    wr = wr.transpose(1, 0, 2, 3)                            # (y, c, x, n)
    return wr.reshape(5 * C2 * W3_GRID, FC1).astype(jnp.bfloat16)   # (640, 120)


def prepare_params(params):
    se1, so1 = _pool_selectors_host(C1, W1_GRID, W2_GRID, L_C1, L_P1)
    se2, so2 = _pool_selectors_host(C2, W2_GRID, W3_GRID, L_C2, L_P2)
    return {
        "wb1": _banded_conv_weight(params["conv1_w"], W1_GRID, L_IN, L_C1),  # (5,128,256)
        "b1": jnp.pad(jnp.repeat(params["conv1_b"], W1_GRID),
                      (0, L_C1 - C1 * W1_GRID)).reshape(1, L_C1).astype(jnp.float32),
        "se1": se1, "so1": so1,                                              # (256,128)
        "wb2": _banded_conv_weight(params["conv2_w"], W2_GRID, L_P1, L_C2),  # (5,128,256)
        "b2": jnp.repeat(params["conv2_b"], W2_GRID).reshape(1, L_C2).astype(jnp.float32),
        "se2": se2, "so2": so2,                                              # (256,128)
        "wfc1": _fc1_prepared(params["fc1_w"]),                              # (640,120)
        "bfc1": params["fc1_b"].reshape(1, FC1).astype(jnp.float32),
        "wfc2": params["fc2_w"].astype(jnp.bfloat16),                        # (120,84)
        "bfc2": params["fc2_b"].reshape(1, FC2).astype(jnp.float32),
        "wfc3": params["fc3_w"].astype(jnp.bfloat16),                        # (84,10)
        "bfc3": params["fc3_b"].reshape(1, FC3).astype(jnp.float32),
    }


# ----------------------------- forward --------------------------------------


def make_forward(batch):
    R = batch * H
    vmem = pl.BlockSpec(memory_space=pltpu.MemorySpace.VMEM)
    call = pl.pallas_call(
        partial(_lenet_kernel, batch=batch),
        out_shape=jax.ShapeDtypeStruct((batch, FC3), jnp.float32),
        in_specs=[vmem] * 15,
        out_specs=vmem,
        scratch_shapes=[
            pltpu.VMEM((R + 8, L_IN), jnp.float32),    # padded input
            pltpu.VMEM((R + 8, L_C1), jnp.float32),    # conv1 out
            pltpu.VMEM((R + 8, L_P1), jnp.float32),    # pool1 out
            pltpu.VMEM((R + 8, L_C2), jnp.float32),    # conv2 out
            pltpu.VMEM((R + 16, L_P2), jnp.float32),   # pool2 features
        ],
    )

    @jax.jit
    def forward(prepped, x):
        # (B, 3, 32, 32) -> rows (b, Y), lanes (c, X), zero-padded 96 -> 128 lanes.
        xr = x.transpose(0, 2, 1, 3).reshape(batch * H, C_IN * W1_GRID)
        xr = jnp.pad(xr, ((0, 0), (0, L_IN - C_IN * W1_GRID)))
        return call(
            xr,
            prepped["wb1"], prepped["b1"], prepped["se1"], prepped["so1"],
            prepped["wb2"], prepped["b2"], prepped["se2"], prepped["so2"],
            prepped["wfc1"], prepped["bfc1"],
            prepped["wfc2"], prepped["bfc2"],
            prepped["wfc3"], prepped["bfc3"],
        )

    return forward


# ----------------------------- params / reference ---------------------------


def init_params(key):
    def uni(k, shape, fan_in):
        bound = fan_in ** -0.5
        return jax.random.uniform(k, shape, jnp.float32, -bound, bound)

    ks = jax.random.split(key, 10)
    return {
        "conv1_w": uni(ks[0], (C1, C_IN, K, K), C_IN * K * K),
        "conv1_b": uni(ks[1], (C1,), C_IN * K * K),
        "conv2_w": uni(ks[2], (C2, C1, K, K), C1 * K * K),
        "conv2_b": uni(ks[3], (C2,), C1 * K * K),
        "fc1_w": uni(ks[4], (C2 * 5 * 5, FC1), C2 * 5 * 5),
        "fc1_b": uni(ks[5], (FC1,), C2 * 5 * 5),
        "fc2_w": uni(ks[6], (FC1, FC2), FC1),
        "fc2_b": uni(ks[7], (FC2,), FC1),
        "fc3_w": uni(ks[8], (FC2, FC3), FC2),
        "fc3_b": uni(ks[9], (FC3,), FC2),
    }


def reference_forward(params, x):
    """Pure-JAX f32 reference with identical semantics to the PyTorch Net.forward."""
    dn = ("NCHW", "OIHW", "NCHW")
    y = jax.lax.conv_general_dilated(x, params["conv1_w"], (1, 1), "VALID",
                                     dimension_numbers=dn)
    y = jnp.maximum(y + params["conv1_b"][None, :, None, None], 0.0)
    y = y.reshape(y.shape[0], C1, 14, 2, 14, 2).max(axis=(3, 5))
    y = jax.lax.conv_general_dilated(y, params["conv2_w"], (1, 1), "VALID",
                                     dimension_numbers=dn)
    y = jnp.maximum(y + params["conv2_b"][None, :, None, None], 0.0)
    y = y.reshape(y.shape[0], C2, 5, 2, 5, 2).max(axis=(3, 5))
    y = y.reshape(y.shape[0], C2 * 5 * 5)
    y = jnp.maximum(y @ params["fc1_w"] + params["fc1_b"], 0.0)
    y = jnp.maximum(y @ params["fc2_w"] + params["fc2_b"], 0.0)
    return y @ params["fc3_w"] + params["fc3_b"]


if __name__ == "__main__":
    key = jax.random.PRNGKey(0)
    pkey, xkey = jax.random.split(key)
    params = init_params(pkey)
    prepped = prepare_params(params)

    batch = 2
    x = jax.random.normal(xkey, (batch, C_IN, H, W), dtype=jnp.float32)

    forward = make_forward(batch)
    out = forward(prepped, x)
    jax.block_until_ready(out)
    assert out.shape == (batch, FC3) and out.dtype == jnp.float32

    ref = reference_forward(params, x)
    err = float(jnp.max(jnp.abs(out - ref)))
    assert err < 5e-2, f"kernel/reference mismatch: max |diff| = {err}"
    print("KERNEL_OK")
</pallas_src>

<mosaic_0001>
module attributes {stable_mosaic.version = 11 : i64} {
  func.func @_lenet_kernel(%arg0: memref<64x128xf32, #tpu.memory_space<vmem>>, %arg1: memref<5x128x256xbf16, #tpu.memory_space<vmem>>, %arg2: memref<1x256xf32, #tpu.memory_space<vmem>>, %arg3: memref<256x128xbf16, #tpu.memory_space<vmem>>, %arg4: memref<256x128xbf16, #tpu.memory_space<vmem>>, %arg5: memref<5x128x256xbf16, #tpu.memory_space<vmem>>, %arg6: memref<1x256xf32, #tpu.memory_space<vmem>>, %arg7: memref<256x128xbf16, #tpu.memory_space<vmem>>, %arg8: memref<256x128xbf16, #tpu.memory_space<vmem>>, %arg9: memref<640x120xbf16, #tpu.memory_space<vmem>>, %arg10: memref<1x120xf32, #tpu.memory_space<vmem>>, %arg11: memref<120x84xbf16, #tpu.memory_space<vmem>>, %arg12: memref<1x84xf32, #tpu.memory_space<vmem>>, %arg13: memref<84x10xbf16, #tpu.memory_space<vmem>>, %arg14: memref<1x10xf32, #tpu.memory_space<vmem>>, %arg15: memref<2x10xf32, #tpu.memory_space<vmem>>, %arg16: memref<72x128xf32, #tpu.memory_space<vmem>>, %arg17: memref<72x256xf32, #tpu.memory_space<vmem>>, %arg18: memref<72x128xf32, #tpu.memory_space<vmem>>, %arg19: memref<72x256xf32, #tpu.memory_space<vmem>>, %arg20: memref<80x128xf32, #tpu.memory_space<vmem>>) attributes {dimension_semantics = [], scalar_prefetch = 0 : i64, scratch_operands = 5 : i64, tpu.core_type = #tpu.core_type<tc>} {
    %c0 = arith.constant 0 : index
    %c0_0 = arith.constant 0 : index
    %0 = vector.load %arg0[%c0, %c0_0] : memref<64x128xf32, #tpu.memory_space<vmem>>, vector<64x128xf32>
    %c0_1 = arith.constant 0 : index
    %c0_2 = arith.constant 0 : index
    %1 = vector.load %arg16[%c0_1, %c0_2] : memref<72x128xf32, #tpu.memory_space<vmem>>, vector<64x128xf32>
    tpu.vector_store %arg16[%c0_1, %c0_2], %0 {strides = array<i32>} : memref<72x128xf32, #tpu.memory_space<vmem>>, vector<64x128xf32>,
    %cst = arith.constant 0.000000e+00 : f32
    %2 = vector.broadcast %cst : f32 to vector<8x128xf32>
    %c64 = arith.constant 64 : index
    %c0_3 = arith.constant 0 : index
    %3 = vector.load %arg16[%c64, %c0_3] : memref<72x128xf32, #tpu.memory_space<vmem>>, vector<8x128xf32>
    tpu.vector_store %arg16[%c64, %c0_3], %2 {strides = array<i32>} : memref<72x128xf32, #tpu.memory_space<vmem>>, vector<8x128xf32>,
    %c0_4 = arith.constant 0 : index
    %c0_5 = arith.constant 0 : index
    %4 = vector.load %arg16[%c0_4, %c0_5] : memref<72x128xf32, #tpu.memory_space<vmem>>, vector<64x128xf32>
    %5 = arith.truncf %4 : vector<64x128xf32> to vector<64x128xbf16>
    %c0_6 = arith.constant 0 : index
    %c0_7 = arith.constant 0 : index
    %c0_8 = arith.constant 0 : index
    %6 = vector.load %arg1[%c0_6, %c0_7, %c0_8] : memref<5x128x256xbf16, #tpu.memory_space<vmem>>, vector<1x128x256xbf16>
    %7 = vector.shape_cast %6 : vector<1x128x256xbf16> to vector<128x256xbf16>
    %cst_9 = arith.constant dense<0.000000e+00> : vector<64x256xf32>
    %8 = tpu.matmul %5, %7, %cst_9 {dimension_numbers = #tpu.dot_dimension_numbers<[1], [0], [0], [1], [0, 0, 1, 1], [], []>} : vector<64x128xbf16>, vector<128x256xbf16>, vector<64x256xf32> -> vector<64x256xf32>
    %c1 = arith.constant 1 : index
    %c0_10 = arith.constant 0 : index
    %9 = vector.load %arg16[%c1, %c0_10] : memref<72x128xf32, #tpu.memory_space<vmem>>, vector<64x128xf32>
    %10 = arith.truncf %9 : vector<64x128xf32> to vector<64x128xbf16>
    %c1_11 = arith.constant 1 : index
    %c0_12 = arith.constant 0 : index
    %c0_13 = arith.constant 0 : index
    %11 = vector.load %arg1[%c1_11, %c0_12, %c0_13] : memref<5x128x256xbf16, #tpu.memory_space<vmem>>, vector<1x128x256xbf16>
    %12 = vector.shape_cast %11 : vector<1x128x256xbf16> to vector<128x256xbf16>
    %cst_14 = arith.constant dense<0.000000e+00> : vector<64x256xf32>
    %13 = tpu.matmul %10, %12, %cst_14 {dimension_numbers = #tpu.dot_dimension_numbers<[1], [0], [0], [1], [0, 0, 1, 1], [], []>} : vector<64x128xbf16>, vector<128x256xbf16>, vector<64x256xf32> -> vector<64x256xf32>
    %c2 = arith.constant 2 : index
    %c0_15 = arith.constant 0 : index
    %14 = vector.load %arg16[%c2, %c0_15] : memref<72x128xf32, #tpu.memory_space<vmem>>, vector<64x128xf32>
    %15 = arith.truncf %14 : vector<64x128xf32> to vector<64x128xbf16>
    %c2_16 = arith.constant 2 : index
    %c0_17 = arith.constant 0 : index
    %c0_18 = arith.constant 0 : index
    %16 = vector.load %arg1[%c2_16, %c0_17, %c0_18] : memref<5x128x256xbf16, #tpu.memory_space<vmem>>, vector<1x128x256xbf16>
    %17 = vector.shape_cast %16 : vector<1x128x256xbf16> to vector<128x256xbf16>
    %cst_19 = arith.constant dense<0.000000e+00> : vector<64x256xf32>
    %18 = tpu.matmul %15, %17, %cst_19 {dimension_numbers = #tpu.dot_dimension_numbers<[1], [0], [0], [1], [0, 0, 1, 1], [], []>} : vector<64x128xbf16>, vector<128x256xbf16>, vector<64x256xf32> -> vector<64x256xf32>
    %c3 = arith.constant 3 : index
    %c0_20 = arith.constant 0 : index
    %19 = vector.load %arg16[%c3, %c0_20] : memref<72x128xf32, #tpu.memory_space<vmem>>, vector<64x128xf32>
    %20 = arith.truncf %19 : vector<64x128xf32> to vector<64x128xbf16>
    %c3_21 = arith.constant 3 : index
    %c0_22 = arith.constant 0 : index
    %c0_23 = arith.constant 0 : index
    %21 = vector.load %arg1[%c3_21, %c0_22, %c0_23] : memref<5x128x256xbf16, #tpu.memory_space<vmem>>, vector<1x128x256xbf16>
    %22 = vector.shape_cast %21 : vector<1x128x256xbf16> to vector<128x256xbf16>
    %cst_24 = arith.constant dense<0.000000e+00> : vector<64x256xf32>
    %23 = tpu.matmul %20, %22, %cst_24 {dimension_numbers = #tpu.dot_dimension_numbers<[1], [0], [0], [1], [0, 0, 1, 1], [], []>} : vector<64x128xbf16>, vector<128x256xbf16>, vector<64x256xf32> -> vector<64x256xf32>
    %c4 = arith.constant 4 : index
    %c0_25 = arith.constant 0 : index
    %24 = vector.load %arg16[%c4, %c0_25] : memref<72x128xf32, #tpu.memory_space<vmem>>, vector<64x128xf32>
    %25 = arith.truncf %24 : vector<64x128xf32> to vector<64x128xbf16>
    %c4_26 = arith.constant 4 : index
    %c0_27 = arith.constant 0 : index
    %c0_28 = arith.constant 0 : index
    %26 = vector.load %arg1[%c4_26, %c0_27, %c0_28] : memref<5x128x256xbf16, #tpu.memory_space<vmem>>, vector<1x128x256xbf16>
    %27 = vector.shape_cast %26 : vector<1x128x256xbf16> to vector<128x256xbf16>
    %cst_29 = arith.constant dense<0.000000e+00> : vector<64x256xf32>
    %28 = tpu.matmul %25, %27, %cst_29 {dimension_numbers = #tpu.dot_dimension_numbers<[1], [0], [0], [1], [0, 0, 1, 1], [], []>} : vector<64x128xbf16>, vector<128x256xbf16>, vector<64x256xf32> -> vector<64x256xf32>
    %29 = arith.addf %8, %13 : vector<64x256xf32>
    %30 = arith.addf %18, %23 : vector<64x256xf32>
    %31 = arith.addf %30, %28 : vector<64x256xf32>
    %32 = arith.addf %29, %31 : vector<64x256xf32>
    %c0_30 = arith.constant 0 : index
    %c0_31 = arith.constant 0 : index
    %33 = vector.load %arg2[%c0_30, %c0_31] : memref<1x256xf32, #tpu.memory_space<vmem>>, vector<1x256xf32>
    %34 = vector.broadcast %33 : vector<1x256xf32> to vector<64x256xf32>
    %35 = arith.addf %32, %34 : vector<64x256xf32>
    %cst_32 = arith.constant 0.000000e+00 : f32
    %36 = vector.broadcast %cst_32 : f32 to vector<64x256xf32>
    %37 = arith.maximumf %35, %36 : vector<64x256xf32>
    %c0_33 = arith.constant 0 : index
    %c0_34 = arith.constant 0 : index
    %38 = vector.load %arg17[%c0_33, %c0_34] : memref<72x256xf32, #tpu.memory_space<vmem>>, vector<64x256xf32>
    tpu.vector_store %arg17[%c0_33, %c0_34], %37 {strides = array<i32>} : memref<72x256xf32, #tpu.memory_space<vmem>>, vector<64x256xf32>,
    %cst_35 = arith.constant 0.000000e+00 : f32
    %39 = vector.broadcast %cst_35 : f32 to vector<8x256xf32>
    %c64_36 = arith.constant 64 : index
    %c0_37 = arith.constant 0 : index
    %40 = vector.load %arg17[%c64_36, %c0_37] : memref<72x256xf32, #tpu.memory_space<vmem>>, vector<8x256xf32>
    tpu.vector_store %arg17[%c64_36, %c0_37], %39 {strides = array<i32>} : memref<72x256xf32, #tpu.memory_space<vmem>>, vector<8x256xf32>,
    %c0_38 = arith.constant 0 : index
    %c0_39 = arith.constant 0 : index
    %41 = vector.load %arg17[%c0_38, %c0_39] : memref<72x256xf32, #tpu.memory_space<vmem>>, vector<64x256xf32>
    %c1_40 = arith.constant 1 : index
    %c0_41 = arith.constant 0 : index
    %42 = vector.load %arg17[%c1_40, %c0_41] : memref<72x256xf32, #tpu.memory_space<vmem>>, vector<64x256xf32>
    %43 = arith.maximumf %41, %42 : vector<64x256xf32>
    %44 = arith.truncf %43 : vector<64x256xf32> to vector<64x256xbf16>
    %c0_42 = arith.constant 0 : index
    %c0_43 = arith.constant 0 : index
    %45 = vector.load %arg3[%c0_42, %c0_43] : memref<256x128xbf16, #tpu.memory_space<vmem>>, vector<256x128xbf16>
    %cst_44 = arith.constant dense<0.000000e+00> : vector<64x128xf32>
    %46 = tpu.matmul %44, %45, %cst_44 {dimension_numbers = #tpu.dot_dimension_numbers<[1], [0], [0], [1], [0, 0, 1, 1], [], []>} : vector<64x256xbf16>, vector<256x128xbf16>, vector<64x128xf32> -> vector<64x128xf32>
    %c0_45 = arith.constant 0 : index
    %c0_46 = arith.constant 0 : index
    %47 = vector.load %arg4[%c0_45, %c0_46] : memref<256x128xbf16, #tpu.memory_space<vmem>>, vector<256x128xbf16>
    %cst_47 = arith.constant dense<0.000000e+00> : vector<64x128xf32>
    %48 = tpu.matmul %44, %47, %cst_47 {dimension_numbers = #tpu.dot_dimension_numbers<[1], [0], [0], [1], [0, 0, 1, 1], [], []>} : vector<64x256xbf16>, vector<256x128xbf16>, vector<64x128xf32> -> vector<64x128xf32>
    %49 = arith.maximumf %46, %48 : vector<64x128xf32>
    %c0_48 = arith.constant 0 : index
    %c0_49 = arith.constant 0 : index
    %50 = vector.load %arg18[%c0_48, %c0_49] : memref<72x128xf32, #tpu.memory_space<vmem>>, vector<64x128xf32>
    tpu.vector_store %arg18[%c0_48, %c0_49], %49 {strides = array<i32>} : memref<72x128xf32, #tpu.memory_space<vmem>>, vector<64x128xf32>,
    %cst_50 = arith.constant 0.000000e+00 : f32
    %51 = vector.broadcast %cst_50 : f32 to vector<8x128xf32>
    %c64_51 = arith.constant 64 : index
    %c0_52 = arith.constant 0 : index
    %52 = vector.load %arg18[%c64_51, %c0_52] : memref<72x128xf32, #tpu.memory_space<vmem>>, vector<8x128xf32>
    tpu.vector_store %arg18[%c64_51, %c0_52], %51 {strides = array<i32>} : memref<72x128xf32, #tpu.memory_space<vmem>>, vector<8x128xf32>,
    %c0_53 = arith.constant 0 : index
    %c0_54 = arith.constant 0 : index
    %53 = vector.load %arg18[%c0_53, %c0_54] : memref<72x128xf32, #tpu.memory_space<vmem>>, vector<64x128xf32>
    %54 = arith.truncf %53 : vector<64x128xf32> to vector<64x128xbf16>
    %c0_55 = arith.constant 0 : index
    %c0_56 = arith.constant 0 : index
    %c0_57 = arith.constant 0 : index
    %55 = vector.load %arg5[%c0_55, %c0_56, %c0_57] : memref<5x128x256xbf16, #tpu.memory_space<vmem>>, vector<1x128x256xbf16>
    %56 = vector.shape_cast %55 : vector<1x128x256xbf16> to vector<128x256xbf16>
    %cst_58 = arith.constant dense<0.000000e+00> : vector<64x256xf32>
    %57 = tpu.matmul %54, %56, %cst_58 {dimension_numbers = #tpu.dot_dimension_numbers<[1], [0], [0], [1], [0, 0, 1, 1], [], []>} : vector<64x128xbf16>, vector<128x256xbf16>, vector<64x256xf32> -> vector<64x256xf32>
    %c2_59 = arith.constant 2 : index
    %c0_60 = arith.constant 0 : index
    %58 = vector.load %arg18[%c2_59, %c0_60] : memref<72x128xf32, #tpu.memory_space<vmem>>, vector<64x128xf32>
    %59 = arith.truncf %58 : vector<64x128xf32> to vector<64x128xbf16>
    %c1_61 = arith.constant 1 : index
    %c0_62 = arith.constant 0 : index
    %c0_63 = arith.constant 0 : index
    %60 = vector.load %arg5[%c1_61, %c0_62, %c0_63] : memref<5x128x256xbf16, #tpu.memory_space<vmem>>, vector<1x128x256xbf16>
    %61 = vector.shape_cast %60 : vector<1x128x256xbf16> to vector<128x256xbf16>
    %cst_64 = arith.constant dense<0.000000e+00> : vector<64x256xf32>
    %62 = tpu.matmul %59, %61, %cst_64 {dimension_numbers = #tpu.dot_dimension_numbers<[1], [0], [0], [1], [0, 0, 1, 1], [], []>} : vector<64x128xbf16>, vector<128x256xbf16>, vector<64x256xf32> -> vector<64x256xf32>
    %c4_65 = arith.constant 4 : index
    %c0_66 = arith.constant 0 : index
    %63 = vector.load %arg18[%c4_65, %c0_66] : memref<72x128xf32, #tpu.memory_space<vmem>>, vector<64x128xf32>
    %64 = arith.truncf %63 : vector<64x128xf32> to vector<64x128xbf16>
    %c2_67 = arith.constant 2 : index
    %c0_68 = arith.constant 0 : index
    %c0_69 = arith.constant 0 : index
    %65 = vector.load %arg5[%c2_67, %c0_68, %c0_69] : memref<5x128x256xbf16, #tpu.memory_space<vmem>>, vector<1x128x256xbf16>
    %66 = vector.shape_cast %65 : vector<1x128x256xbf16> to vector<128x256xbf16>
    %cst_70 = arith.constant dense<0.000000e+00> : vector<64x256xf32>
    %67 = tpu.matmul %64, %66, %cst_70 {dimension_numbers = #tpu.dot_dimension_numbers<[1], [0], [0], [1], [0, 0, 1, 1], [], []>} : vector<64x128xbf16>, vector<128x256xbf16>, vector<64x256xf32> -> vector<64x256xf32>
    %c6 = arith.constant 6 : index
    %c0_71 = arith.constant 0 : index
    %68 = vector.load %arg18[%c6, %c0_71] : memref<72x128xf32, #tpu.memory_space<vmem>>, vector<64x128xf32>
    %69 = arith.truncf %68 : vector<64x128xf32> to vector<64x128xbf16>
    %c3_72 = arith.constant 3 : index
    %c0_73 = arith.constant 0 : index
    %c0_74 = arith.constant 0 : index
    %70 = vector.load %arg5[%c3_72, %c0_73, %c0_74] : memref<5x128x256xbf16, #tpu.memory_space<vmem>>, vector<1x128x256xbf16>
    %71 = vector.shape_cast %70 : vector<1x128x256xbf16> to vector<128x256xbf16>
    %cst_75 = arith.constant dense<0.000000e+00> : vector<64x256xf32>
    %72 = tpu.matmul %69, %71, %cst_75 {dimension_numbers = #tpu.dot_dimension_numbers<[1], [0], [0], [1], [0, 0, 1, 1], [], []>} : vector<64x128xbf16>, vector<128x256xbf16>, vector<64x256xf32> -> vector<64x256xf32>
    %c8 = arith.constant 8 : index
    %c0_76 = arith.constant 0 : index
    %73 = vector.load %arg18[%c8, %c0_76] : memref<72x128xf32, #tpu.memory_space<vmem>>, vector<64x128xf32>
    %74 = arith.truncf %73 : vector<64x128xf32> to vector<64x128xbf16>
    %c4_77 = arith.constant 4 : index
    %c0_78 = arith.constant 0 : index
    %c0_79 = arith.constant 0 : index
    %75 = vector.load %arg5[%c4_77, %c0_78, %c0_79] : memref<5x128x256xbf16, #tpu.memory_space<vmem>>, vector<1x128x256xbf16>
    %76 = vector.shape_cast %75 : vector<1x128x256xbf16> to vector<128x256xbf16>
    %cst_80 = arith.constant dense<0.000000e+00> : vector<64x256xf32>
    %77 = tpu.matmul %74, %76, %cst_80 {dimension_numbers = #tpu.dot_dimension_numbers<[1], [0], [0], [1], [0, 0, 1, 1], [], []>} : vector<64x128xbf16>, vector<128x256xbf16>, vector<64x256xf32> -> vector<64x256xf32>
    %78 = arith.addf %57, %62 : vector<64x256xf32>
    %79 = arith.addf %67, %72 : vector<64x256xf32>
    %80 = arith.addf %79, %77 : vector<64x256xf32>
    %81 = arith.addf %78, %80 : vector<64x256xf32>
    %c0_81 = arith.constant 0 : index
    %c0_82 = arith.constant 0 : index
    %82 = vector.load %arg6[%c0_81, %c0_82] : memref<1x256xf32, #tpu.memory_space<vmem>>, vector<1x256xf32>
    %83 = vector.broadcast %82 : vector<1x256xf32> to vector<64x256xf32>
    %84 = arith.addf %81, %83 : vector<64x256xf32>
    %cst_83 = arith.constant 0.000000e+00 : f32
    %85 = vector.broadcast %cst_83 : f32 to vector<64x256xf32>
    %86 = arith.maximumf %84, %85 : vector<64x256xf32>
    %c0_84 = arith.constant 0 : index
    %c0_85 = arith.constant 0 : index
    %87 = vector.load %arg19[%c0_84, %c0_85] : memref<72x256xf32, #tpu.memory_space<vmem>>, vector<64x256xf32>
    tpu.vector_store %arg19[%c0_84, %c0_85], %86 {strides = array<i32>} : memref<72x256xf32, #tpu.memory_space<vmem>>, vector<64x256xf32>,
    %cst_86 = arith.constant 0.000000e+00 : f32
    %88 = vector.broadcast %cst_86 : f32 to vector<8x256xf32>
    %c64_87 = arith.constant 64 : index
    %c0_88 = arith.constant 0 : index
    %89 = vector.load %arg19[%c64_87, %c0_88] : memref<72x256xf32, #tpu.memory_space<vmem>>, vector<8x256xf32>
    tpu.vector_store %arg19[%c64_87, %c0_88], %88 {strides = array<i32>} : memref<72x256xf32, #tpu.memory_space<vmem>>, vector<8x256xf32>,
    %c0_89 = arith.constant 0 : index
    %c0_90 = arith.constant 0 : index
    %90 = vector.load %arg19[%c0_89, %c0_90] : memref<72x256xf32, #tpu.memory_space<vmem>>, vector<64x256xf32>
    %c2_91 = arith.constant 2 : index
    %c0_92 = arith.constant 0 : index
    %91 = vector.load %arg19[%c2_91, %c0_92] : memref<72x256xf32, #tpu.memory_space<vmem>>, vector<64x256xf32>
    %92 = arith.maximumf %90, %91 : vector<64x256xf32>
    %93 = arith.truncf %92 : vector<64x256xf32> to vector<64x256xbf16>
    %c0_93 = arith.constant 0 : index
    %c0_94 = arith.constant 0 : index
    %94 = vector.load %arg7[%c0_93, %c0_94] : memref<256x128xbf16, #tpu.memory_space<vmem>>, vector<256x128xbf16>
    %cst_95 = arith.constant dense<0.000000e+00> : vector<64x128xf32>
    %95 = tpu.matmul %93, %94, %cst_95 {dimension_numbers = #tpu.dot_dimension_numbers<[1], [0], [0], [1], [0, 0, 1, 1], [], []>} : vector<64x256xbf16>, vector<256x128xbf16>, vector<64x128xf32> -> vector<64x128xf32>
    %c0_96 = arith.constant 0 : index
    %c0_97 = arith.constant 0 : index
    %96 = vector.load %arg8[%c0_96, %c0_97] : memref<256x128xbf16, #tpu.memory_space<vmem>>, vector<256x128xbf16>
    %cst_98 = arith.constant dense<0.000000e+00> : vector<64x128xf32>
    %97 = tpu.matmul %93, %96, %cst_98 {dimension_numbers = #tpu.dot_dimension_numbers<[1], [0], [0], [1], [0, 0, 1, 1], [], []>} : vector<64x256xbf16>, vector<256x128xbf16>, vector<64x128xf32> -> vector<64x128xf32>
    %98 = arith.maximumf %95, %97 : vector<64x128xf32>
    %c0_99 = arith.constant 0 : index
    %c0_100 = arith.constant 0 : index
    %99 = vector.load %arg20[%c0_99, %c0_100] : memref<80x128xf32, #tpu.memory_space<vmem>>, vector<64x128xf32>
    tpu.vector_store %arg20[%c0_99, %c0_100], %98 {strides = array<i32>} : memref<80x128xf32, #tpu.memory_space<vmem>>, vector<64x128xf32>,
    %cst_101 = arith.constant 0.000000e+00 : f32
    %100 = vector.broadcast %cst_101 : f32 to vector<16x128xf32>
    %c64_102 = arith.constant 64 : index
    %c0_103 = arith.constant 0 : index
    %101 = vector.load %arg20[%c64_102, %c0_103] : memref<80x128xf32, #tpu.memory_space<vmem>>, vector<16x128xf32>
    tpu.vector_store %arg20[%c64_102, %c0_103], %100 {strides = array<i32>} : memref<80x128xf32, #tpu.memory_space<vmem>>, vector<16x128xf32>,
    %c0_104 = arith.constant 0 : index
    %c0_105 = arith.constant 0 : index
    %102 = vector.load %arg20[%c0_104, %c0_105] : memref<80x128xf32, #tpu.memory_space<vmem>>, vector<64x128xf32>
    %c4_106 = arith.constant 4 : index
    %c0_107 = arith.constant 0 : index
    %103 = vector.load %arg20[%c4_106, %c0_107] : memref<80x128xf32, #tpu.memory_space<vmem>>, vector<64x128xf32>
    %c8_108 = arith.constant 8 : index
    %c0_109 = arith.constant 0 : index
    %104 = vector.load %arg20[%c8_108, %c0_109] : memref<80x128xf32, #tpu.memory_space<vmem>>, vector<64x128xf32>
    %c12 = arith.constant 12 : index
    %c0_110 = arith.constant 0 : index
    %105 = vector.load %arg20[%c12, %c0_110] : memref<80x128xf32, #tpu.memory_space<vmem>>, vector<64x128xf32>
    %c16 = arith.constant 16 : index
    %c0_111 = arith.constant 0 : index
    %106 = vector.load %arg20[%c16, %c0_111] : memref<80x128xf32, #tpu.memory_space<vmem>>, vector<64x128xf32>
    %107 = tpu.concatenate %102, %103, %104, %105, %106 in 1 : vector<64x128xf32>, vector<64x128xf32>, vector<64x128xf32>, vector<64x128xf32>, vector<64x128xf32> -> vector<64x640xf32>
    %108 = arith.truncf %107 : vector<64x640xf32> to vector<64x640xbf16>
    %c0_112 = arith.constant 0 : index
    %c0_113 = arith.constant 0 : index
    %109 = vector.load %arg9[%c0_112, %c0_113] : memref<640x120xbf16, #tpu.memory_space<vmem>>, vector<640x120xbf16>
    %cst_114 = arith.constant dense<0.000000e+00> : vector<64x120xf32>
    %110 = tpu.matmul %108, %109, %cst_114 {dimension_numbers = #tpu.dot_dimension_numbers<[1], [0], [0], [1], [0, 0, 1, 1], [], []>} : vector<64x640xbf16>, vector<640x120xbf16>, vector<64x120xf32> -> vector<64x120xf32>
    %111 = vector.extract_strided_slice %110 {offsets = [0, 0], sizes = [1, 120], strides = [1, 1]} : vector<64x120xf32> to vector<1x120xf32>
    %112 = vector.extract_strided_slice %110 {offsets = [32, 0], sizes = [1, 120], strides = [1, 1]} : vector<64x120xf32> to vector<1x120xf32>
    %113 = tpu.concatenate %111, %112 in 0 : vector<1x120xf32>, vector<1x120xf32> -> vector<2x120xf32>
    %c0_115 = arith.constant 0 : index
    %c0_116 = arith.constant 0 : index
    %114 = vector.load %arg10[%c0_115, %c0_116] : memref<1x120xf32, #tpu.memory_space<vmem>>, vector<1x120xf32>
    %115 = vector.broadcast %114 : vector<1x120xf32> to vector<2x120xf32>
    %116 = arith.addf %113, %115 : vector<2x120xf32>
    %cst_117 = arith.constant 0.000000e+00 : f32
    %117 = vector.broadcast %cst_117 : f32 to vector<2x120xf32>
    %118 = arith.maximumf %116, %117 : vector<2x120xf32>
    %119 = arith.truncf %118 : vector<2x120xf32> to vector<2x120xbf16>
    %c0_118 = arith.constant 0 : index
    %c0_119 = arith.constant 0 : index
    %120 = vector.load %arg11[%c0_118, %c0_119] : memref<120x84xbf16, #tpu.memory_space<vmem>>, vector<120x84xbf16>
    %cst_120 = arith.constant dense<0.000000e+00> : vector<2x84xf32>
    %121 = tpu.matmul %119, %120, %cst_120 {dimension_numbers = #tpu.dot_dimension_numbers<[1], [0], [0], [1], [0, 0, 1, 1], [], []>} : vector<2x120xbf16>, vector<120x84xbf16>, vector<2x84xf32> -> vector<2x84xf32>
    %c0_121 = arith.constant 0 : index
    %c0_122 = arith.constant 0 : index
    %122 = vector.load %arg12[%c0_121, %c0_122] : memref<1x84xf32, #tpu.memory_space<vmem>>, vector<1x84xf32>
    %123 = vector.broadcast %122 : vector<1x84xf32> to vector<2x84xf32>
    %124 = arith.addf %121, %123 : vector<2x84xf32>
    %cst_123 = arith.constant 0.000000e+00 : f32
    %125 = vector.broadcast %cst_123 : f32 to vector<2x84xf32>
    %126 = arith.maximumf %124, %125 : vector<2x84xf32>
    %127 = arith.truncf %126 : vector<2x84xf32> to vector<2x84xbf16>
    %c0_124 = arith.constant 0 : index
    %c0_125 = arith.constant 0 : index
    %128 = vector.load %arg13[%c0_124, %c0_125] : memref<84x10xbf16, #tpu.memory_space<vmem>>, vector<84x10xbf16>
    %cst_126 = arith.constant dense<0.000000e+00> : vector<2x10xf32>
    %129 = tpu.matmul %127, %128, %cst_126 {dimension_numbers = #tpu.dot_dimension_numbers<[1], [0], [0], [1], [0, 0, 1, 1], [], []>} : vector<2x84xbf16>, vector<84x10xbf16>, vector<2x10xf32> -> vector<2x10xf32>
    %c0_127 = arith.constant 0 : index
    %c0_128 = arith.constant 0 : index
    %130 = vector.load %arg14[%c0_127, %c0_128] : memref<1x10xf32, #tpu.memory_space<vmem>>, vector<1x10xf32>
    %131 = vector.broadcast %130 : vector<1x10xf32> to vector<2x10xf32>
    %132 = arith.addf %129, %131 : vector<2x10xf32>
    %c0_129 = arith.constant 0 : index
    %c0_130 = arith.constant 0 : index
    %133 = vector.load %arg15[%c0_129, %c0_130] : memref<2x10xf32, #tpu.memory_space<vmem>>, vector<2x10xf32>
    tpu.vector_store %arg15[%c0_129, %c0_130], %132 {strides = array<i32>} : memref<2x10xf32, #tpu.memory_space<vmem>>, vector<2x10xf32>,
    return
  }
}

</mosaic_0001>

<bundles_post_ra>
// kernel: forward.1
= control target key start
LH: loop header
LB: loop body
LE: loop exit
PB: predicated region body
PF: predicated region fallthrough
CT: control target
= control target key end

     0   :  { %20 = vsyncpa [#allocation8], 0  ;;  %s7127_s0 = inlined_call_operand.vmem [shape: f32[64,128], index: 0, kind: input, shape index: {}]   ;;  %s7128_s1 = inlined_call_operand.vmem [shape: bf16[5,128,256], index: 1, kind: input, shape index: {}]   ;;  %s7129_s2 = inlined_call_operand.vmem [shape: f32[1,256], index: 2, kind: input, shape index: {}]   ;;  %s7130_s3 = inlined_call_operand.hbm [shape: bf16[256,128], index: 3, kind: input, shape index: {}]   ;;  %s7131_s4 = inlined_call_operand.hbm [shape: bf16[256,128], index: 4, kind: input, shape index: {}]   ;;  %s7132_s5 = inlined_call_operand.vmem [shape: bf16[5,128,256], index: 5, kind: input, shape index: {}]   ;;  %s7133_s6 = inlined_call_operand.vmem [shape: f32[1,256], index: 6, kind: input, shape index: {}]   ;;  %s7134_s7 = inlined_call_operand.hbm [shape: bf16[256,128], index: 7, kind: input, shape index: {}]   ;;  %s7135_s8 = inlined_call_operand.hbm [shape: bf16[256,128], index: 8, kind: input, shape index: {}]   ;;  %s7136_s9 = inlined_call_operand.vmem [shape: bf16[640,120], index: 9, kind: input, shape index: {}]   ;;  %s7137_s10 = inlined_call_operand.vmem [shape: f32[1,120], index: 10, kind: input, shape index: {}]   ;;  %s7138_s11 = inlined_call_operand.vmem [shape: bf16[120,84], index: 11, kind: input, shape index: {}]   ;;  %s7139_s12 = inlined_call_operand.vmem [shape: f32[1,84], index: 12, kind: input, shape index: {}]   ;;  %s7140_s13 = inlined_call_operand.vmem [shape: bf16[84,10], index: 13, kind: input, shape index: {}]   ;;  %s7141_s14 = inlined_call_operand.vmem [shape: f32[1,10], index: 14, kind: input, shape index: {}]   ;;  %s7142_s15 = inlined_call_operand.hbm [shape: f32[2,10], index: 15, kind: output, shape index: {}]  }
   0x1   :  { %21 = vsyncpa [#allocation11], 0 }
   0x2   :  { %22 = vsyncpa [#allocation14], 0 }
   0x3   :  { %23 = vsyncpa [#allocation9], 0  ;;  %s47_s20 = sshll.u32 %s7131_s4, 4  ;;  %s5338_s21 = smov [#allocation10]   ;;  %s48_s20 = int_to_ptr.hbm [resolvable:$true] %s47_s20 }
   0x4   :  { %s49_s22 = sshll.u32 %s5338_s21, 4  ;;  %s34_s25 = sshll.u32 %s7130_s3, 4  ;;  %s50_s22 = int_to_ptr.vmem [resolvable:$true] %s49_s22  ;;  %s35_s25 = int_to_ptr.hbm [resolvable:$true] %s34_s25 }
   0x5   :  { %s5339_s26 = smov 64   ;;  %s5340_s27 = smov 4  }
   0x6   :  { %55 = dma.hbm_to_vmem [thread:$0]  %s48_s20, 2048, %s50_s22, [#allocation11], %s5339_s26, %s5339_s26, %s5340_s27  }
   0x7   :  { %s5341_s28 = smov [#allocation7]   ;;  %s64_s17 = sshll.u32 %s7134_s7, 4  ;;  %s65_s17 = int_to_ptr.hbm [resolvable:$true] %s64_s17 }
   0x8   :  { %s36_s29 = sshll.u32 %s5341_s28, 4  ;;  %s77_s19 = sshll.u32 %s7135_s8, 4  ;;  %s37_s29 = int_to_ptr.vmem [resolvable:$true] %s36_s29  ;;  %s78_s19 = int_to_ptr.hbm [resolvable:$true] %s77_s19 }
   0x9   :  { %42 = dma.hbm_to_vmem [thread:$0]  %s35_s25, 2048, %s37_s29, [#allocation8], %s5339_s26, %s5339_s26, %s5340_s27  }
   0xa   :  { %s5342_s21 = smov [#allocation12]   ;;  %s5343_s3 = smov [#allocation13]  }
   0xb   :  { %s66_s23 = sshll.u32 %s5342_s21, 4  ;;  %s79_s20 = sshll.u32 %s5343_s3, 4  ;;  %s67_s23 = int_to_ptr.vmem [resolvable:$true] %s66_s23  ;;  %s80_s20 = int_to_ptr.vmem [resolvable:$true] %s79_s20 }
   0xc   :  { %72 = dma.hbm_to_vmem [thread:$0]  %s65_s17, 2048, %s67_s23, [#allocation11], %s5339_s26, %s5339_s26, %s5340_s27  }
   0xd   :  { %85 = dma.hbm_to_vmem [thread:$0]  %s78_s19, 2048, %s80_s20, [#allocation14], %s5339_s26, %s5339_s26, %s5340_s27  }
   0xe   :  { %5330 = dma.done.wait [#allocation8], 2048  }
   0xf   :  { %5331 = vsyncadd [#allocation8], 4294965248 }
  0x10   :  { %5332 = dma.done.wait [#allocation11], 4096  }
  0x11   :  { %5333 = vsyncadd [#allocation11], 4294963200 }
  0x12   :  { %5334 = dma.done.wait [#allocation14], 2048  }
  0x13   :  { %5335 = vsyncadd [#allocation14], 4294965248  ;;  %v3753_v0 = vld [vmem:[%s7128_s1 + $0xf0] sm:$0xf]  ;;  %v4944_v1 = vld [vmem:[%s7128_s1 + $0xf4] sm:$0xf0] }
  0x14   :  { %v4943_v2 = vld [vmem:[%s7128_s1 + $0xf4] sm:$0xf]  ;;  %v3754_v3 = vor.u32 %v4944_v1, %v3753_v0  ;;  %v3755_v4 = vld [vmem:[%s7128_s1 + $0xf8] sm:$0xf0]  ;;  %v3849_v5 = vld [vmem:[%s7128_s1 + $0x1f0] sm:$0xf] }
  0x15   :  { %v4976_v6 = vld [vmem:[%s7128_s1 + $0x1f4] sm:$0xf0]  ;;  %v3758_v7 = vor.u32 %v4943_v2, %v3755_v4  ;;  %v3745_v9 = vld [vmem:[%s7128_s1 + $0xe0] sm:$0xf]  ;;  %v4942_v10 = vld [vmem:[%s7128_s1 + $0xe4] sm:$0xf0] }
  0x16   :  { %v3850_v8 = vor.u32 %v4976_v6, %v3849_v5  ;;  %v4941_v11 = vld [vmem:[%s7128_s1 + $0xe4] sm:$0xf]  ;;  %269 = vmatpush.bf16.msra.mxu0 %v3754_v3  ;;  %5189 = vmatpush.bf16.msra.mxu3 %v3754_v3  ;;  %v3746_v12 = vor.u32 %v4942_v10, %v3745_v9  ;;  %v3747_v13 = vld [vmem:[%s7128_s1 + $0xe8] sm:$0xf0]  ;;  %v3841_v14 = vld [vmem:[%s7128_s1 + $0x1e0] sm:$0xf] }
  0x17   :  { %v4974_v15 = vld [vmem:[%s7128_s1 + $0x1e4] sm:$0xf0]  ;;  %298 = vmatpush.bf16.msra.mxu1 %v3758_v7  ;;  %v3750_v16 = vor.u32 %v4941_v11, %v3747_v13  ;;  %v3737_v18 = vld [vmem:[%s7128_s1 + $0xd0] sm:$0xf]  ;;  %v4940_v19 = vld [vmem:[%s7128_s1 + $0xd4] sm:$0xf0] }
  0x18   :  { %465 = vmatpush.bf16.msra.mxu2 %v3850_v8  ;;  %v3842_v17 = vor.u32 %v4974_v15, %v3841_v14  ;;  %v4939_v20 = vld [vmem:[%s7128_s1 + $0xd4] sm:$0xf]  ;;  %v3739_v21 = vld [vmem:[%s7128_s1 + $0xd8] sm:$0xf0]  ;;  %v3833_v22 = vld [vmem:[%s7128_s1 + $0x1d0] sm:$0xf]  ;;  %v3738_v24 = vor.u32 %v4940_v19, %v3737_v18 }
  0x19   :  { %v4972_v23 = vld [vmem:[%s7128_s1 + $0x1d4] sm:$0xf0]  ;;  %v3742_v25 = vor.u32 %v4939_v20, %v3739_v21  ;;  %v3729_v27 = vld [vmem:[%s7128_s1 + $0xc0] sm:$0xf]  ;;  %v4938_v28 = vld [vmem:[%s7128_s1 + $0xc4] sm:$0xf0] }
  0x1a   :  { %270 = vmatpush.bf16.msra.mxu0 %v3746_v12  ;;  %5190 = vmatpush.bf16.msra.mxu3 %v3746_v12  ;;  %v3834_v26 = vor.u32 %v4972_v23, %v3833_v22  ;;  %v4937_v29 = vld [vmem:[%s7128_s1 + $0xc4] sm:$0xf]  ;;  %v3731_v30 = vld [vmem:[%s7128_s1 + $0xc8] sm:$0xf0]  ;;  %v3825_v31 = vld [vmem:[%s7128_s1 + $0x1c0] sm:$0xf]  ;;  %v3730_v33 = vor.u32 %v4938_v28, %v3729_v27 }
  0x1b   :  { %299 = vmatpush.bf16.msra.mxu1 %v3750_v16  ;;  %v4970_v32 = vld [vmem:[%s7128_s1 + $0x1c4] sm:$0xf0]  ;;  %v3734_v34 = vor.u32 %v4937_v29, %v3731_v30  ;;  %v3721_v36 = vld [vmem:[%s7128_s1 + $0xb0] sm:$0xf]  ;;  %v4936_v37 = vld [vmem:[%s7128_s1 + $0xb4] sm:$0xf0] }
  0x1c   :  { %466 = vmatpush.bf16.msra.mxu2 %v3842_v17  ;;  %v3826_v35 = vor.u32 %v4970_v32, %v3825_v31  ;;  %v4935_v38 = vld [vmem:[%s7128_s1 + $0xb4] sm:$0xf]  ;;  %v3723_v39 = vld [vmem:[%s7128_s1 + $0xb8] sm:$0xf0]  ;;  %v3817_v40 = vld [vmem:[%s7128_s1 + $0x1b0] sm:$0xf]  ;;  %v3722_v43 = vor.u32 %v4936_v37, %v3721_v36 }
  0x1d   :  { %v4968_v41 = vld [vmem:[%s7128_s1 + $0x1b4] sm:$0xf0]  ;;  %v3713_v42 = vld [vmem:[%s7128_s1 + $0xa0] sm:$0xf]  ;;  %v4934_v44 = vld [vmem:[%s7128_s1 + $0xa4] sm:$0xf0]  ;;  %v3726_v47 = vor.u32 %v4935_v38, %v3723_v39 }
  0x1e   :  { %271 = vmatpush.bf16.msra.mxu0 %v3738_v24  ;;  %5191 = vmatpush.bf16.msra.mxu3 %v3738_v24  ;;  %v4933_v45 = vld [vmem:[%s7128_s1 + $0xa4] sm:$0xf]  ;;  %v3715_v46 = vld [vmem:[%s7128_s1 + $0xa8] sm:$0xf0]  ;;  %v3818_v48 = vor.u32 %v4968_v41, %v3817_v40  ;;  %v5553_v51 = vld [vmem:[%s7127_s0 + $0x10] sm:$0xff]  ;;  %v3714_v56 = vor.u32 %v4934_v44, %v3713_v42  ;;  %v5344_v22 = vmov 0.0  }
  0x1f   :  { %300 = vmatpush.bf16.msra.mxu1 %v3742_v25  ;;  %v5543_v49 = vld [vmem:[%s7127_s0] sm:$0xff]  ;;  %v5548_v50 = vld [vmem:[%s7127_s0 + $0x8] sm:$0xff]  ;;  %v3705_v57 = vld [vmem:[%s7128_s1 + $0x90] sm:$0xf]  ;;  %125 = vst [vmem:[#allocation2 + $0x10] sm:$0xff] %v5553_v51  ;;  %v3718_v60 = vor.u32 %v4933_v45, %v3715_v46  ;;  %vm1106_vm0 = vcmask 1046528  }
  0x20   :  { %467 = vmatpush.bf16.msra.mxu2 %v3834_v26  ;;  %v3809_v52 = vld [vmem:[%s7128_s1 + $0x1a0] sm:$0xf]  ;;  %v4966_v53 = vld [vmem:[%s7128_s1 + $0x1a4] sm:$0xf0]  ;;  %123 = vst [vmem:[#allocation2] sm:$0xff] %v5543_v49  ;;  %v5583_v59 = vld [vmem:[%s7127_s0 + $0x30] sm:$0xff] }
  0x21   :  { %v5565_v54 = vld [vmem:[%s7127_s0 + $0x20] sm:$0xff]  ;;  %124 = vst [vmem:[#allocation2 + $0x8] sm:$0xff] %v5548_v50  ;;  %v5571_v55 = vld [vmem:[%s7127_s0 + $0x28] sm:$0xff]  ;;  %v4932_v58 = vld [vmem:[%s7128_s1 + $0x94] sm:$0xf0]  ;;  %v3810_v61 = vor.u32 %v4966_v53, %v3809_v52  ;;  %vm2544_vm1 = vcmask 1045504  }
  0x22   :  { %272 = vmatpush.bf16.msra.mxu0 %v3730_v33  ;;  %5192 = vmatpush.bf16.msra.mxu3 %v3730_v33  ;;  %v4931_v62 = vld [vmem:[%s7128_s1 + $0x94] sm:$0xf]  ;;  %v3707_v63 = vld [vmem:[%s7128_s1 + $0x98] sm:$0xf0]  ;;  %127 = vst [vmem:[#allocation2 + $0x20] sm:$0xff] %v5565_v54  ;;  %v3706_v5 = vor.u32 %v4932_v58, %v3705_v57  ;;  %vm3570_vm2 = vcmask 1043456  }
  0x23   :  { %301 = vmatpush.bf16.msra.mxu1 %v3734_v34  ;;  %v3801_v0 = vld [vmem:[%s7128_s1 + $0x190] sm:$0xf]  ;;  %v4964_v1 = vld [vmem:[%s7128_s1 + $0x194] sm:$0xf0]  ;;  %128 = vst [vmem:[#allocation2 + $0x28] sm:$0xff] %v5571_v55  ;;  %v3710_v9 = vor.u32 %v4931_v62, %v3707_v63  ;;  %vm3641_vm3 = vcmask 1041408  }
  0x24   :  { %468 = vmatpush.bf16.msra.mxu2 %v3826_v35  ;;  %v3697_v2 = vld [vmem:[%s7128_s1 + $0x80] sm:$0xf]  ;;  %v4930_v3 = vld [vmem:[%s7128_s1 + $0x84] sm:$0xf0]  ;;  %129 = vst [vmem:[#allocation2 + $0x30] sm:$0xff] %v5583_v59  ;;  %v5609_v4 = vld [vmem:[%s7127_s0 + $0x18] sm:$0xff]  ;;  %v3802_v10 = vor.u32 %v4964_v1, %v3801_v0 }
  0x25   :  { %v4929_v6 = vld [vmem:[%s7128_s1 + $0x84] sm:$0xf]  ;;  %v3699_v7 = vld [vmem:[%s7128_s1 + $0x88] sm:$0xf0]  ;;  %v5620_v8 = vld [vmem:[%s7127_s0 + $0x38] sm:$0xff]  ;;  %126 = vst [vmem:[#allocation2 + $0x18] sm:$0xff] %v5609_v4  ;;  %v3698_v17 = vor.u32 %v4930_v3, %v3697_v2 }
  0x26   :  { %273 = vmatpush.bf16.msra.mxu0 %v3722_v43  ;;  %5193 = vmatpush.bf16.msra.mxu3 %v3722_v43  ;;  %v3793_v11 = vld [vmem:[%s7128_s1 + $0x180] sm:$0xf]  ;;  %v4962_v12 = vld [vmem:[%s7128_s1 + $0x184] sm:$0xf0]  ;;  %v4991_v13 = vld [vmem:[%s7128_s1 + $0x274] sm:$0xf]  ;;  %v3702_v23 = vor.u32 %v4929_v6, %v3699_v7 }
  0x27   :  { %302 = vmatpush.bf16.msra.mxu1 %v3726_v47  ;;  %v3931_v14 = vld [vmem:[%s7128_s1 + $0x278] sm:$0xf0]  ;;  %v4975_v15 = vld [vmem:[%s7128_s1 + $0x1f4] sm:$0xf]  ;;  %130 = vst [vmem:[#allocation2 + $0x38] sm:$0xff] %v5620_v8  ;;  %v3794_v24 = vor.u32 %v4962_v12, %v3793_v11  ;;  %vm3493_vm4 = vcmask 1040384  }
  0x28   :  { %469 = vmatpush.bf16.msra.mxu2 %v3818_v48  ;;  %v3851_v16 = vld [vmem:[%s7128_s1 + $0x1f8] sm:$0xf0]  ;;  %v160_v18 = vld [vmem:[#allocation2 + $0x1] sm:$0xff]  ;;  %v161_v19 = vld [vmem:[#allocation2 + $0x9] sm:$0xff]  ;;  %131 = vst [vmem:[#allocation2 + $0x40] sm:$0xff] %v5344_v22  ;;  %v3934_v29 = vor.u32 %v4991_v13, %v3931_v14  ;;  %vm3566_vm5 = vcmask 982016  }
  0x29   :  { %v3929_v20 = vld [vmem:[%s7128_s1 + $0x270] sm:$0xf]  ;;  %v4992_v21 = vld [vmem:[%s7128_s1 + $0x274] sm:$0xf0]  ;;  %v356_v26 = vld [vmem:[#allocation2 + $0x3] sm:$0xff]  ;;  %1052 = vst [vmem:[#allocation3 + $0x68] sm:$0xff] %v5344_v22  ;;  %v3854_v30 = vor.u32 %v4975_v15, %v3851_v16  ;;  %v168_v33 = vpack.c.bf16 %v161_v19, %v160_v18 }
  0x2a   :  { %274 = vmatpush.bf16.msra.mxu0 %v3714_v56  ;;  %5194 = vmatpush.bf16.msra.mxu3 %v3714_v56  ;;  %v164_v25 = vld [vmem:[#allocation2 + $0x21] sm:$0xff]  ;;  %v357_v27 = vld [vmem:[#allocation2 + $0xb] sm:$0xff]  ;;  %1053 = vst [vmem:[#allocation3 + $0x60] sm:$0xff] %v5344_v22  ;;  %v3930_v38 = vor.u32 %v4992_v21, %v3929_v20  ;;  %v4971_v43 = vld [vmem:[%s7128_s1 + $0x1d4] sm:$0xf]  ;;  %vm3637_vm6 = vcmask 687104  }
  0x2b   :  { %303 = vmatpush.bf16.msra.mxu1 %v3718_v60  ;;  %v165_v28 = vld [vmem:[#allocation2 + $0x29] sm:$0xff]  ;;  %v4973_v31 = vld [vmem:[%s7128_s1 + $0x1e4] sm:$0xf]  ;;  %1569 = vst [vmem:[#allocation4 + $0x40] sm:$0xff] %v5344_v22  ;;  %v5662_v37 = vpack.c.bf16 %v357_v27, %v356_v26  ;;  %v3921_v39 = vld [vmem:[%s7128_s1 + $0x260] sm:$0xf] }
  0x2c   :  { %470 = vmatpush.bf16.msra.mxu2 %v3810_v61  ;;  %v3843_v32 = vld [vmem:[%s7128_s1 + $0x1e8] sm:$0xf0]  ;;  %v5654_v34 = vpack.c.bf16 %v165_v28, %v164_v25  ;;  %v4989_v35 = vld [vmem:[%s7128_s1 + $0x264] sm:$0xf]  ;;  %2490 = vst [vmem:[#allocation5 + $0x80] sm:$0xff] %v5344_v22  ;;  %s5345_s25 = smov [#allocation15]  }
  0x2d   :  { %v3923_v36 = vld [vmem:[%s7128_s1 + $0x268] sm:$0xf0]  ;;  %v4990_v40 = vld [vmem:[%s7128_s1 + $0x264] sm:$0xf0]  ;;  %2491 = vst [vmem:[#allocation5] sm:$0xff] %v5344_v22  ;;  %v3846_v41 = vor.u32 %v4973_v31, %v3843_v32  ;;  %s3665_s28 = sshll.u32 %s5345_s25, 4  ;;  %s3666_s28 = int_to_ptr.vmem [resolvable:$true] %s3665_s28 }
  0x2e   :  { %275 = vmatpush.bf16.msra.mxu0 %v3706_v5  ;;  %5195 = vmatpush.bf16.msra.mxu3 %v3706_v5  ;;  %v3926_v42 = vor.u32 %v4989_v35, %v3923_v36  ;;  %v3835_v44 = vld [vmem:[%s7128_s1 + $0x1d8] sm:$0xf0]  ;;  %3007 = vst [vmem:[#allocation6 + $0x40] sm:$0xff] %v5344_v22  ;;  %v4987_v45 = vld [vmem:[%s7128_s1 + $0x254] sm:$0xf]  ;;  %v3922_v47 = vor.u32 %v4990_v40, %v3921_v39  ;;  %s3667_s29 = sshll.u32 %s7142_s15, 4  ;;  %s3668_s29 = int_to_ptr.hbm [resolvable:$true] %s3667_s29 }
  0x2f   :  { %304 = vmatpush.bf16.msra.mxu1 %v3710_v9  ;;  %3008 = vst [vmem:[#allocation6 + $0x48] sm:$0xff] %v5344_v22  ;;  %v3915_v46 = vld [vmem:[%s7128_s1 + $0x258] sm:$0xf0]  ;;  %v3838_v48 = vor.u32 %v4971_v43, %v3835_v44  ;;  %v3913_v52 = vld [vmem:[%s7128_s1 + $0x250] sm:$0xf]  ;;  %vm3658_vm7 = vcmask 74752  }
  0x30   :  { %471 = vmatpush.bf16.msra.mxu2 %v3802_v10  ;;  %v4988_v53 = vld [vmem:[%s7128_s1 + $0x254] sm:$0xf0]  ;;  %v4969_v56 = vld [vmem:[%s7128_s1 + $0x1c4] sm:$0xf]  ;;  %v3918_v57 = vor.u32 %v4987_v45, %v3915_v46  ;;  %v3827_v58 = vld [vmem:[%s7128_s1 + $0x1c8] sm:$0xf0] }
  0x31   :  { %v4985_v60 = vld [vmem:[%s7128_s1 + $0x244] sm:$0xf]  ;;  %v3907_v61 = vld [vmem:[%s7128_s1 + $0x248] sm:$0xf0]  ;;  %v3905_v62 = vld [vmem:[%s7128_s1 + $0x240] sm:$0xf]  ;;  %v3914_v0 = vor.u32 %v4988_v53, %v3913_v52  ;;  %v3830_v7 = vor.u32 %v4969_v56, %v3827_v58 }
  0x32   :  { %276 = vmatpush.bf16.msra.mxu0 %v3698_v17  ;;  %5196 = vmatpush.bf16.msra.mxu3 %v3698_v17  ;;  %v4986_v63 = vld [vmem:[%s7128_s1 + $0x244] sm:$0xf0]  ;;  %v4967_v1 = vld [vmem:[%s7128_s1 + $0x1b4] sm:$0xf]  ;;  %v3819_v2 = vld [vmem:[%s7128_s1 + $0x1b8] sm:$0xf0]  ;;  %v3910_v11 = vor.u32 %v4985_v60, %v3907_v61 }
  0x33   :  { %305 = vmatpush.bf16.msra.mxu1 %v3702_v23  ;;  %v3993_v3 = vld [vmem:[%s7128_s1 + $0x70] sm:$0xf]  ;;  %v4928_v5 = vld [vmem:[%s7128_s1 + $0x74] sm:$0xf0]  ;;  %v3985_v6 = vld [vmem:[%s7128_s1 + $0x60] sm:$0xf]  ;;  %v3906_v21 = vor.u32 %v4986_v63, %v3905_v62 }
  0x34   :  { %472 = vmatpush.bf16.msra.mxu2 %v3794_v24  ;;  %v162_v9 = vld [vmem:[#allocation2 + $0x11] sm:$0xff]  ;;  %v163_v10 = vld [vmem:[#allocation2 + $0x19] sm:$0xff]  ;;  %v3994_v12 = vor.u32 %v4928_v5, %v3993_v3  ;;  %v4926_v13 = vld [vmem:[%s7128_s1 + $0x64] sm:$0xf0]  ;;  %v3822_v24 = vor.u32 %v4967_v1, %v3819_v2 }
  0x35   :  { %277 = vmatmul.bf16.vlgmr.msra.gmra.mxu0 %v168_v33  ;;  %287 = vmatmul.bf16.vlgmr.msra.gmra.mxu3 %v5654_v34  ;;  %v166_v14 = vld [vmem:[#allocation2 + $0x31] sm:$0xff]  ;;  %v3899_v16 = vld [vmem:[%s7128_s1 + $0x238] sm:$0xf0]  ;;  %v3986_v20 = vor.u32 %v4926_v13, %v3985_v6  ;;  %v4965_v25 = vld [vmem:[%s7128_s1 + $0x1a4] sm:$0xf] }
  0x36   :  { %494 = vmatpush.bf16.msrb.mxu3 %v3854_v30  ;;  %306 = vmatmul.bf16.vlgmr.msra.gmra.mxu1 %v168_v33  ;;  %v4983_v15 = vld [vmem:[%s7128_s1 + $0x234] sm:$0xf]  ;;  %v167_v17 = vld [vmem:[#allocation2 + $0x39] sm:$0xff]  ;;  %v3897_v18 = vld [vmem:[%s7128_s1 + $0x230] sm:$0xf] }
  0x37   :  { %661 = vmatpush.bf16.msrb.mxu1 %v3934_v29  ;;  %473 = vmatmul.bf16.vlgmr.msra.gmra.mxu2 %v5662_v37  ;;  %v4984_v19 = vld [vmem:[%s7128_s1 + $0x234] sm:$0xf0]  ;;  %v3902_v26 = vor.u32 %v4983_v15, %v3899_v16  ;;  %v3977_v27 = vld [vmem:[%s7128_s1 + $0x50] sm:$0xf]  ;;  %v169_v29 = vpack.c.bf16 %v163_v10, %v162_v9  ;;  %v5747_v30 = vpack.c.bf16 %v167_v17, %v166_v14  ;;  %v3811_v31 = vld [vmem:[%s7128_s1 + $0x1a8] sm:$0xf0] }
  0x38   :  { %632 = vmatpush.bf16.msrb.mxu0 %v3930_v38  ;;  %770 = vmatpush.bf16.msrb.mxu2 %v3994_v12  ;;  %v358_v22 = vld [vmem:[#allocation2 + $0x13] sm:$0xff]  ;;  %v359_v23 = vld [vmem:[#allocation2 + $0x1b] sm:$0xff]  ;;  %v4981_v32 = vld [vmem:[%s7128_s1 + $0x224] sm:$0xf]  ;;  %v3898_v36 = vor.u32 %v4984_v19, %v3897_v18  ;;  %v3814_v40 = vor.u32 %v4965_v25, %v3811_v31 }
  0x39   :  { %v4924_v28 = vld [vmem:[%s7128_s1 + $0x54] sm:$0xf0]  ;;  %v3891_v33 = vld [vmem:[%s7128_s1 + $0x228] sm:$0xf0]  ;;  %v5758_v35 = vpack.c.bf16 %v359_v23, %v358_v22  ;;  %v3889_v38 = vld [vmem:[%s7128_s1 + $0x220] sm:$0xf] }
  0x3a   :  { %495 = vmatpush.bf16.msrb.mxu3 %v3846_v41  ;;  %v3978_v39 = vor.u32 %v4924_v28, %v3977_v27  ;;  %v4982_v41 = vld [vmem:[%s7128_s1 + $0x224] sm:$0xf0]  ;;  %v3969_v43 = vld [vmem:[%s7128_s1 + $0x40] sm:$0xf]  ;;  %v4963_v45 = vld [vmem:[%s7128_s1 + $0x194] sm:$0xf] }
  0x3b   :  { %662 = vmatpush.bf16.msrb.mxu1 %v3926_v42  ;;  %v3894_v42 = vor.u32 %v4981_v32, %v3891_v33  ;;  %v4922_v44 = vld [vmem:[%s7128_s1 + $0x44] sm:$0xf0]  ;;  %v3803_v46 = vld [vmem:[%s7128_s1 + $0x198] sm:$0xf0]  ;;  %v4980_v52 = vld [vmem:[%s7128_s1 + $0x214] sm:$0xf0] }
  0x3c   :  { %633 = vmatpush.bf16.msrb.mxu0 %v3922_v47  ;;  %771 = vmatpush.bf16.msrb.mxu2 %v3986_v20  ;;  %v3881_v47 = vld [vmem:[%s7128_s1 + $0x210] sm:$0xf]  ;;  %v3970_v53 = vor.u32 %v4922_v44, %v3969_v43  ;;  %v4979_v56 = vld [vmem:[%s7128_s1 + $0x214] sm:$0xf]  ;;  %v3806_v58 = vor.u32 %v4963_v45, %v3803_v46  ;;  %v4961_v60 = vld [vmem:[%s7128_s1 + $0x184] sm:$0xf] }
  0x3d   :  { %v3961_v62 = vld [vmem:[%s7128_s1 + $0x30] sm:$0xf]  ;;  %v4920_v63 = vld [vmem:[%s7128_s1 + $0x34] sm:$0xf0]  ;;  %v4977_v1 = vld [vmem:[%s7128_s1 + $0x204] sm:$0xf]  ;;  %v3882_v6 = vor.u32 %v4980_v52, %v3881_v47 }
  0x3e   :  { %496 = vmatpush.bf16.msrb.mxu3 %v3838_v48  ;;  %v3890_v48 = vor.u32 %v4982_v41, %v3889_v38  ;;  %v3875_v2 = vld [vmem:[%s7128_s1 + $0x208] sm:$0xf0]  ;;  %v4927_v3 = vld [vmem:[%s7128_s1 + $0x74] sm:$0xf]  ;;  %v3995_v5 = vld [vmem:[%s7128_s1 + $0x78] sm:$0xf0]  ;;  %v3962_v9 = vor.u32 %v4920_v63, %v3961_v62 }
  0x3f   :  { %663 = vmatpush.bf16.msrb.mxu1 %v3918_v57  ;;  %v3883_v57 = vld [vmem:[%s7128_s1 + $0x218] sm:$0xf0]  ;;  %v3953_v12 = vld [vmem:[%s7128_s1 + $0x20] sm:$0xf]  ;;  %v4918_v13 = vld [vmem:[%s7128_s1 + $0x24] sm:$0xf0]  ;;  %v3878_v14 = vor.u32 %v4977_v1, %v3875_v2  ;;  %v3998_v15 = vor.u32 %v4927_v3, %v3995_v5 }
  0x40   :  { %634 = vmatpush.bf16.msrb.mxu0 %v3914_v0  ;;  %772 = vmatpush.bf16.msrb.mxu2 %v3978_v39  ;;  %v3886_v61 = vor.u32 %v4979_v56, %v3883_v57  ;;  %v3795_v0 = vld [vmem:[%s7128_s1 + $0x188] sm:$0xf0]  ;;  %v360_v17 = vld [vmem:[#allocation2 + $0x23] sm:$0xff]  ;;  %v3954_v20 = vor.u32 %v4918_v13, %v3953_v12  ;;  %v3945_v22 = vld [vmem:[%s7128_s1 + $0x10] sm:$0xf] }
  0x41   :  { %v3798_v10 = vor.u32 %v4961_v60, %v3795_v0  ;;  %v361_v18 = vld [vmem:[#allocation2 + $0x2b] sm:$0xff]  ;;  %v4916_v23 = vld [vmem:[%s7128_s1 + $0x14] sm:$0xf0]  ;;  %v3937_v27 = vld [vmem:[%s7128_s1] sm:$0xf] }
  0x42   :  { %497 = vmatpush.bf16.msrb.mxu3 %v3830_v7  ;;  %v3873_v7 = vld [vmem:[%s7128_s1 + $0x200] sm:$0xf]  ;;  %v523_v19 = vld [vmem:[#allocation2 + $0x4] sm:$0xff]  ;;  %v4057_v31 = vld [vmem:[%s7128_s1 + $0x170] sm:$0xf] }
  0x43   :  { %664 = vmatpush.bf16.msrb.mxu1 %v3910_v11  ;;  %v4978_v11 = vld [vmem:[%s7128_s1 + $0x204] sm:$0xf0]  ;;  %v4960_v32 = vld [vmem:[%s7128_s1 + $0x174] sm:$0xf0]  ;;  %v3987_v38 = vld [vmem:[%s7128_s1 + $0x68] sm:$0xf0] }
  0x44   :  { %635 = vmatpush.bf16.msrb.mxu0 %v3906_v21  ;;  %773 = vmatpush.bf16.msrb.mxu2 %v3970_v53  ;;  %v3874_v16 = vor.u32 %v4978_v11, %v3873_v7  ;;  %v524_v21 = vld [vmem:[#allocation2 + $0xc] sm:$0xff]  ;;  %v4914_v28 = vld [vmem:[%s7128_s1 + $0x4] sm:$0xf0]  ;;  %v4058_v33 = vor.u32 %v4960_v32, %v4057_v31  ;;  %v4049_v39 = vld [vmem:[%s7128_s1 + $0x160] sm:$0xf]  ;;  %v5913_v7 = vpack.c.bf16 %v5609_v4, %v5553_v51 }
  0x45   :  { %282 = vmatmul.bf16.gmra.mxu0 %v169_v29  ;;  %292 = vmatmul.bf16.gmra.mxu3 %v5747_v30  ;;  %v5836_v25 = vpack.c.bf16 %v524_v21, %v523_v19  ;;  %v4957_v43 = vld [vmem:[%s7128_s1 + $0x164] sm:$0xf]  ;;  %v4051_v44 = vld [vmem:[%s7128_s1 + $0x168] sm:$0xf0]  ;;  %v4923_v45 = vld [vmem:[%s7128_s1 + $0x54] sm:$0xf] }
  0x46   :  { %498 = vmatpush.bf16.msrb.mxu3 %v3822_v24  ;;  %311 = vmatmul.bf16.gmra.mxu1 %v169_v29  ;;  %v5834_v24 = vpack.c.bf16 %v361_v18, %v360_v17  ;;  %v5847_v29 = vpack.c.bf16 %v5548_v50, %v5543_v49  ;;  %v4959_v49 = vld [vmem:[%s7128_s1 + $0x174] sm:$0xf]  ;;  %v4059_v50 = vld [vmem:[%s7128_s1 + $0x178] sm:$0xf0]  ;;  %v4054_v46 = vor.u32 %v4957_v43, %v4051_v44  ;;  %v4956_v52 = vld [vmem:[%s7128_s1 + $0x154] sm:$0xf0] }
  0x47   :  { %665 = vmatpush.bf16.msrb.mxu1 %v3902_v26  ;;  %478 = vmatmul.bf16.gmra.mxu2 %v5758_v35  ;;  %v3946_v26 = vor.u32 %v4916_v23, %v3945_v22  ;;  %v3979_v47 = vld [vmem:[%s7128_s1 + $0x58] sm:$0xf0]  ;;  %v4921_v57 = vld [vmem:[%s7128_s1 + $0x44] sm:$0xf]  ;;  %v4033_v60 = vld [vmem:[%s7128_s1 + $0x140] sm:$0xf] }
  0x48   :  { %636 = vmatpush.bf16.msrb.mxu0 %v3898_v36  ;;  %774 = vmatpush.bf16.msrb.mxu2 %v3962_v9  ;;  %v4925_v36 = vld [vmem:[%s7128_s1 + $0x64] sm:$0xf]  ;;  %v3982_v53 = vor.u32 %v4923_v45, %v3979_v47  ;;  %v362_v62 = vld [vmem:[#allocation2 + $0x33] sm:$0xff]  ;;  %v363_v63 = vld [vmem:[#allocation2 + $0x3b] sm:$0xff] }
  0x49   :  { %v3990_v41 = vor.u32 %v4925_v36, %v3987_v38  ;;  %v525_v1 = vld [vmem:[#allocation2 + $0x14] sm:$0xff]  ;;  %v526_v2 = vld [vmem:[#allocation2 + $0x1c] sm:$0xff]  ;;  %v5906_v5 = vpack.c.bf16 %v363_v63, %v362_v62  ;;  %v4025_v11 = vld [vmem:[%s7128_s1 + $0x130] sm:$0xf]  ;;  %v142_v62 = vpack.c.bf16 %v5571_v55, %v5565_v54 }
  0x4a   :  { %499 = vmatpush.bf16.msrb.mxu3 %v3814_v40  ;;  %v4958_v40 = vld [vmem:[%s7128_s1 + $0x164] sm:$0xf0]  ;;  %v4919_v9 = vld [vmem:[%s7128_s1 + $0x34] sm:$0xf]  ;;  %v4952_v51 = vld [vmem:[%s7128_s1 + $0x134] sm:$0xf0] }
  0x4b   :  { %666 = vmatpush.bf16.msrb.mxu1 %v3894_v42  ;;  %v4050_v42 = vor.u32 %v4958_v40, %v4049_v39  ;;  %v4955_v4 = vld [vmem:[%s7128_s1 + $0x154] sm:$0xf]  ;;  %v4043_v12 = vld [vmem:[%s7128_s1 + $0x158] sm:$0xf0]  ;;  %v4026_v13 = vor.u32 %v4952_v51, %v4025_v11  ;;  %v4950_v17 = vld [vmem:[%s7128_s1 + $0x124] sm:$0xf0] }
  0x4c   :  { %637 = vmatpush.bf16.msrb.mxu0 %v3890_v48  ;;  %775 = vmatpush.bf16.msrb.mxu2 %v3954_v20  ;;  %v4041_v48 = vld [vmem:[%s7128_s1 + $0x150] sm:$0xf]  ;;  %v4953_v20 = vld [vmem:[%s7128_s1 + $0x144] sm:$0xf]  ;;  %v4035_v21 = vld [vmem:[%s7128_s1 + $0x148] sm:$0xf0] }
  0x4d   :  { %v4042_v56 = vor.u32 %v4956_v52, %v4041_v48  ;;  %v4915_v22 = vld [vmem:[%s7128_s1 + $0x14] sm:$0xf]  ;;  %v4038_v23 = vor.u32 %v4953_v20, %v4035_v21  ;;  %v527_v36 = vld [vmem:[#allocation2 + $0x24] sm:$0xff]  ;;  %v4011_v52 = vld [vmem:[%s7128_s1 + $0x118] sm:$0xf0] }
  0x4e   :  { %500 = vmatpush.bf16.msrb.mxu3 %v3806_v58  ;;  %v3971_v58 = vld [vmem:[%s7128_s1 + $0x48] sm:$0xf0]  ;;  %v4949_v43 = vld [vmem:[%s7128_s1 + $0x124] sm:$0xf]  ;;  %v529_v45 = vld [vmem:[#allocation2 + $0x34] sm:$0xff] }
  0x4f   :  { %667 = vmatpush.bf16.msrb.mxu1 %v3886_v61  ;;  %v4954_v61 = vld [vmem:[%s7128_s1 + $0x144] sm:$0xf0]  ;;  %v3974_v0 = vor.u32 %v4921_v57, %v3971_v58  ;;  %v4947_v48 = vld [vmem:[%s7128_s1 + $0x114] sm:$0xf]  ;;  %v4003_v57 = vld [vmem:[%s7128_s1 + $0x108] sm:$0xf0] }
  0x50   :  { %638 = vmatpush.bf16.msrb.mxu0 %v3882_v6  ;;  %776 = vmatpush.bf16.msrb.mxu2 %v3946_v26  ;;  %v4034_v3 = vor.u32 %v4954_v61, %v4033_v60  ;;  %v5908_v6 = vpack.c.bf16 %v526_v2, %v525_v1  ;;  %v3947_v26 = vld [vmem:[%s7128_s1 + $0x18] sm:$0xf0]  ;;  %v327_v60 = vld [vmem:[#allocation2 + $0x2] sm:$0xff]  ;;  %v328_v61 = vld [vmem:[#allocation2 + $0xa] sm:$0xff]  ;;  %v143_v2 = vpack.c.bf16 %v5620_v8, %v5583_v59 }
  0x51   :  { %v3950_v31 = vor.u32 %v4915_v22, %v3947_v26  ;;  %v335_v63 = vpack.c.bf16 %v328_v61, %v327_v60  ;;  %v330_v1 = vld [vmem:[#allocation2 + $0x1a] sm:$0xff]  ;;  %v333_v11 = vld [vmem:[#allocation2 + $0x32] sm:$0xff] }
  0x52   :  { %501 = vmatpush.bf16.msrb.mxu3 %v3798_v10  ;;  %v3963_v10 = vld [vmem:[%s7128_s1 + $0x38] sm:$0xf0] }
  0x53   :  { %668 = vmatpush.bf16.msrb.mxu1 %v3878_v14  ;;  %v4046_v14 = vor.u32 %v4955_v4, %v4043_v12  ;;  %v5008_v61 = vld [vmem:[#allocation7 + $0x78] sm:$0xff] }
  0x54   :  { %639 = vmatpush.bf16.msrb.mxu0 %v3874_v16  ;;  %v4017_v16 = vld [vmem:[%s7128_s1 + $0x120] sm:$0xf] }
  0x55   :  { %502 = vmatmul.bf16.vlgmr.msrb.gmra.mxu3 %v5662_v37  ;;  %v3938_v37 = vor.u32 %v4914_v28, %v3937_v27  ;;  %v4018_v19 = vor.u32 %v4950_v17, %v4017_v16  ;;  %v4009_v27 = vld [vmem:[%s7128_s1 + $0x110] sm:$0xf]  ;;  %v4948_v28 = vld [vmem:[%s7128_s1 + $0x114] sm:$0xf0] }
  0x56   :  { %799 = vmatpush.bf16.msra.mxu3 %v3998_v15  ;;  %316 = vmatmul.bf16.gmra.mxu1 %v5654_v34  ;;  %v4062_v34 = vor.u32 %v4959_v49, %v4059_v50  ;;  %v3955_v15 = vld [vmem:[%s7128_s1 + $0x28] sm:$0xf0]  ;;  %v4010_v32 = vor.u32 %v4948_v28, %v4009_v27  ;;  %v4001_v49 = vld [vmem:[%s7128_s1 + $0x100] sm:$0xf]  ;;  %v4946_v50 = vld [vmem:[%s7128_s1 + $0x104] sm:$0xf0] }
  0x57   :  { %483 = vmatmul.bf16.gmra.mxu2 %v5834_v24  ;;  %640 = vmatmul.bf16.vlgmr.msrb.gmra.mxu0 %v5836_v25  ;;  %v4002_v39 = vor.u32 %v4946_v50, %v4001_v49 }
  0x58   :  { %908 = vmatpush.bf16.msra.mxu0 %v4058_v33  ;;  %937 = vmatpush.bf16.msra.mxu1 %v4062_v34  ;;  %v4913_v33 = vld [vmem:[%s7128_s1 + $0x4] sm:$0xf]  ;;  %v528_v34 = vld [vmem:[#allocation2 + $0x2c] sm:$0xff] }
  0x59   :  { %777 = vmatpush.bf16.msrb.mxu2 %v3938_v37  ;;  %v3939_v37 = vld [vmem:[%s7128_s1 + $0x8] sm:$0xf0]  ;;  %v533_v40 = vpack.c.bf16 %v528_v34, %v527_v36 }
  0x5a   :  { %800 = vmatpush.bf16.msra.mxu3 %v3990_v41  ;;  %v3942_v38 = vor.u32 %v4913_v33, %v3939_v37  ;;  %v4951_v41 = vld [vmem:[%s7128_s1 + $0x134] sm:$0xf] }
  0x5c   :  { %909 = vmatpush.bf16.msra.mxu0 %v4050_v42  ;;  %938 = vmatpush.bf16.msra.mxu1 %v4054_v46  ;;  %v4027_v42 = vld [vmem:[%s7128_s1 + $0x138] sm:$0xf0] }
  0x5d   :  { %v4030_v44 = vor.u32 %v4951_v41, %v4027_v42  ;;  %v530_v46 = vld [vmem:[#allocation2 + $0x3c] sm:$0xff]  ;;  %v4999_v41 = vld [vmem:[#allocation7 + $0x30] sm:$0xff] }
  0x5e   :  { %801 = vmatpush.bf16.msra.mxu3 %v3982_v53  ;;  %v534_v47 = vpack.c.bf16 %v530_v46, %v529_v45  ;;  %v4945_v53 = vld [vmem:[%s7128_s1 + $0x104] sm:$0xf]  ;;  %v5015_v42 = vld [vmem:[#allocation10 + $0x30] sm:$0xff]  ;;  %v4998_v45 = vld [vmem:[#allocation7 + $0x28] sm:$0xff] }
  0x5f   :  { %v4006_v58 = vor.u32 %v4945_v53, %v4003_v57  ;;  %v5014_v46 = vld [vmem:[#allocation10 + $0x28] sm:$0xff]  ;;  %v5012_v57 = vld [vmem:[#allocation10 + $0x18] sm:$0xff] }
  0x60   :  { %910 = vmatpush.bf16.msra.mxu0 %v4042_v56  ;;  %939 = vmatpush.bf16.msra.mxu1 %v4046_v14  ;;  %v4014_v56 = vor.u32 %v4947_v48, %v4011_v52  ;;  %v5013_v48 = vld [vmem:[#allocation10 + $0x20] sm:$0xff] }
  0x62   :  { %802 = vmatpush.bf16.msra.mxu3 %v3974_v0  ;;  %v329_v0 = vld [vmem:[#allocation2 + $0x12] sm:$0xff] }
  0x64   :  { %911 = vmatpush.bf16.msra.mxu0 %v4034_v3  ;;  %940 = vmatpush.bf16.msra.mxu1 %v4038_v23  ;;  %v336_v3 = vpack.c.bf16 %v330_v1, %v329_v0 }
  0x65   :  { %507 = vmatmul.bf16.gmra.mxu3 %v5758_v35  ;;  %v3966_v35 = vor.u32 %v4919_v9, %v3963_v10 }
  0x66   :  { %321 = vmatmul.bf16.gmra.mxu1 %v5747_v30  ;;  %v4917_v30 = vld [vmem:[%s7128_s1 + $0x24] sm:$0xf] }
  0x67   :  { %488 = vmatmul.bf16.gmra.mxu2 %v5906_v5  ;;  %645 = vmatmul.bf16.gmra.mxu0 %v5908_v6  ;;  %v3958_v18 = vor.u32 %v4917_v30, %v3955_v15 }
  0x68   :  { %803 = vmatpush.bf16.msra.mxu3 %v3966_v35  ;;  %912 = vmatpush.bf16.msra.mxu0 %v4026_v13  ;;  %v334_v35 = vld [vmem:[#allocation2 + $0x3a] sm:$0xff] }
  0x69   :  { %941 = vmatpush.bf16.msra.mxu1 %v4030_v44  ;;  %v338_v13 = vpack.c.bf16 %v334_v35, %v333_v11  ;;  %v4993_v35 = vld [vmem:[#allocation7] sm:$0xff] }
  0x6c   :  { %804 = vmatpush.bf16.msra.mxu3 %v3958_v18  ;;  %913 = vmatpush.bf16.msra.mxu0 %v4018_v19 }
  0x70   :  { %805 = vmatpush.bf16.msra.mxu3 %v3950_v31  ;;  %914 = vmatpush.bf16.msra.mxu0 %v4010_v32 }
  0x74   :  { %806 = vmatpush.bf16.msra.mxu3 %v3942_v38  ;;  %915 = vmatpush.bf16.msra.mxu0 %v4002_v39  ;;  %v5000_v39 = vld [vmem:[#allocation7 + $0x38] sm:$0xff] }
  0x75   :  { %512 = vmatmul.bf16.gmra.mxu3 %v5834_v24  ;;  %v4019_v24 = vld [vmem:[%s7128_s1 + $0x128] sm:$0xf0]  ;;  %1309 = vmatpush.bf16.msra.mxu2 %v5000_v39 }
  0x76   :  { %669 = vmatmul.bf16.vlgmr.msrb.gmra.mxu1 %v5836_v25  ;;  %v4022_v25 = vor.u32 %v4949_v43, %v4019_v24 }
  0x77   :  { %778 = vmatmul.bf16.vlgmr.msrb.gmra.mxu2 %v5847_v29  ;;  %650 = vmatmul.bf16.gmra.mxu0 %v533_v40 }
  0x78   :  { %942 = vmatpush.bf16.msra.mxu1 %v4022_v25  ;;  %1338 = vmatpush.bf16.msrb.mxu3 %v5008_v61 }
  0x79   :  { %1310 = vmatpush.bf16.msra.mxu2 %v4999_v41  ;;  %v6105_v41 = vld [vmem:[%s7129_s2] sm:$0x3] }
  0x7c   :  { %943 = vmatpush.bf16.msra.mxu1 %v4014_v56  ;;  %v4996_v56 = vld [vmem:[#allocation7 + $0x18] sm:$0xff] }
  0x7d   :  { %1311 = vmatpush.bf16.msra.mxu2 %v4998_v45 }
  0x80   :  { %944 = vmatpush.bf16.msra.mxu1 %v4006_v58 }
  0x85   :  { %517 = vmatmul.bf16.gmra.mxu3 %v5906_v5  ;;  %v331_v5 = vld [vmem:[#allocation2 + $0x22] sm:$0xff] }
  0x86   :  { %674 = vmatmul.bf16.gmra.mxu1 %v5908_v6  ;;  %v332_v6 = vld [vmem:[#allocation2 + $0x2a] sm:$0xff] }
  0x87   :  { %783 = vmatmul.bf16.gmra.mxu2 %v5913_v7  ;;  %655 = vmatmul.bf16.gmra.mxu0 %v534_v47 }
  0x95   :  { %807 = vmatmul.bf16.vlgmr.msra.gmra.mxu3 %v5847_v29  ;;  %v337_v29 = vpack.c.bf16 %v332_v6, %v331_v5  ;;  %v5024_v5 = vld [vmem:[#allocation10 + $0x78] sm:$0xff]  ;;  %v5007_v6 = vld [vmem:[#allocation7 + $0x70] sm:$0xff] }
  0x96   :  { %679 = vmatmul.bf16.gmra.mxu1 %v533_v40  ;;  %v5016_v40 = vld [vmem:[#allocation10 + $0x38] sm:$0xff]  ;;  %1339 = vmatpush.bf16.msrb.mxu3 %v5007_v6  ;;  %v5005_v6 = vld [vmem:[#allocation7 + $0x60] sm:$0xff] }
  0x97   :  { %788 = vmatmul.bf16.gmra.mxu2 %v142_v62  ;;  %916 = vmatmul.bf16.vlgmr.msra.gmra.mxu0 %v335_v63 }
  0x98   :  { %1495 = vmatpush.bf16.msrb.mxu0 %v5016_v40  ;;  %1524 = vmatpush.bf16.msrb.mxu1 %v5024_v5 }
  0x9c   :  { %1496 = vmatpush.bf16.msrb.mxu0 %v5015_v42 }
  0xa0   :  { %1497 = vmatpush.bf16.msrb.mxu0 %v5014_v46 }
  0xa4   :  { %1498 = vmatpush.bf16.msrb.mxu0 %v5013_v48  ;;  %v5023_v48 = vld [vmem:[#allocation10 + $0x70] sm:$0xff] }
  0xa5   :  { %812 = vmatmul.bf16.gmra.mxu3 %v5913_v7  ;;  %1525 = vmatpush.bf16.msrb.mxu1 %v5023_v48 }
  0xa6   :  { %684 = vmatmul.bf16.gmra.mxu1 %v534_v47  ;;  %v4997_v47 = vld [vmem:[#allocation7 + $0x20] sm:$0xff] }
  0xa7   :  { %793 = vmatmul.bf16.gmra.mxu2 %v143_v2  ;;  %921 = vmatmul.bf16.gmra.mxu0 %v336_v3 }
  0xa8   :  { %1312 = vmatpush.bf16.msra.mxu2 %v4997_v47  ;;  %1499 = vmatpush.bf16.msrb.mxu0 %v5012_v57  ;;  %v6111_v47 = vperm.slane %v6105_v41, 0 }
  0xac   :  { %1313 = vmatpush.bf16.msra.mxu2 %v4996_v56  ;;  %v5006_v56 = vld [vmem:[#allocation7 + $0x68] sm:$0xff] }
  0xad   :  { %1340 = vmatpush.bf16.msrb.mxu3 %v5006_v56 }
  0xb1   :  { %1341 = vmatpush.bf16.msrb.mxu3 %v5005_v6 }
  0xb2   :  { %v6014_v54 = vpop.f32.mrf.mxu0 }
  0xb3   :  { %v6016_v55 = vpop.f32.mrf.mxu1 }
  0xb5   :  { %817 = vmatmul.bf16.gmra.mxu3 %v142_v62  ;;  %v4995_v62 = vld [vmem:[#allocation7 + $0x10] sm:$0xff] }
  0xb6   :  { %945 = vmatmul.bf16.vlgmr.msra.gmra.mxu1 %v335_v63  ;;  %v5011_v63 = vld [vmem:[#allocation10 + $0x10] sm:$0xff]  ;;  %1314 = vmatpush.bf16.msra.mxu2 %v4995_v62 }
  0xb7   :  { %926 = vmatmul.bf16.gmra.mxu0 %v337_v29 }
  0xb8   :  { %v6018_v9 = vpop.f32.mrf.mxu3  ;;  %1500 = vmatpush.bf16.msrb.mxu0 %v5011_v63 }
  0xba   :  { %v6020_v10 = vpop.f32.mrf.mxu2  ;;  %v6022_v59 = vpop.f32.mrf.mxu0 }
  0xbb   :  { %v6024_v8 = vpop.f32.mrf.mxu1 }
  0xc0   :  { %v6026_v7 = vpop.f32.mrf.mxu3 }
  0xc2   :  { %v6028_v51 = vpop.f32.mrf.mxu2  ;;  %v6030_v4 = vpop.f32.mrf.mxu0 }
  0xc3   :  { %v6032_v12 = vpop.f32.mrf.mxu1 }
  0xc5   :  { %822 = vmatmul.bf16.gmra.mxu3 %v143_v2  ;;  %v4994_v2 = vld [vmem:[#allocation7 + $0x8] sm:$0xff] }
  0xc6   :  { %950 = vmatmul.bf16.gmra.mxu1 %v336_v3  ;;  %v5010_v3 = vld [vmem:[#allocation10 + $0x8] sm:$0xff]  ;;  %1315 = vmatpush.bf16.msra.mxu2 %v4994_v2 }
  0xc7   :  { %931 = vmatmul.bf16.gmra.mxu0 %v338_v13 }
  0xc8   :  { %v6034_v30 = vpop.f32.mrf.mxu3  ;;  %1501 = vmatpush.bf16.msrb.mxu0 %v5010_v3 }
  0xca   :  { %v6036_v14 = vpop.f32.mrf.mxu2  ;;  %v6038_v15 = vpop.f32.mrf.mxu0  ;;  %1316 = vmatpush.bf16.msra.mxu2 %v4993_v35 }
  0xcb   :  { %v6040_v16 = vpop.f32.mrf.mxu1 }
  0xd0   :  { %v6042_v17 = vpop.f32.mrf.mxu3 }
  0xd2   :  { %v6046_v19 = vpop.f32.mrf.mxu2 }
  0xd3   :  { %v6044_v18 = vpop.f32.mrf.mxu1 }
  0xd4   :  { %v6048_v20 = vpop.f32.mrf.mxu0 }
  0xd6   :  { %955 = vmatmul.bf16.gmra.mxu1 %v337_v29 }
  0xd8   :  { %v6050_v21 = vpop.f32.mrf.mxu3 }
  0xda   :  { %v6056_v26 = vpop.f32.mrf.mxu2 }
  0xdb   :  { %v6052_v22 = vpop.f32.mrf.mxu1 }
  0xdc   :  { %v6054_v23 = vpop.f32.mrf.mxu0 }
  0xe0   :  { %v6058_v27 = vpop.f32.mrf.mxu3 }
  0xe2   :  { %v6064_v32 = vpop.f32.mrf.mxu2 }
  0xe3   :  { %v6060_v28 = vpop.f32.mrf.mxu1 }
  0xe4   :  { %v6062_v31 = vpop.f32.mrf.mxu0 }
  0xe6   :  { %960 = vmatmul.bf16.gmra.mxu1 %v338_v13  ;;  %v5009_v13 = vld [vmem:[#allocation10] sm:$0xff] }
  0xe7   :  { %1502 = vmatpush.bf16.msrb.mxu0 %v5009_v13  ;;  %v5021_v13 = vld [vmem:[#allocation10 + $0x60] sm:$0xff] }
  0xe8   :  { %v6066_v33 = vpop.f32.mrf.mxu3 }
  0xea   :  { %v6072_v50 = vpop.f32.mrf.mxu2 }
  0xeb   :  { %v6068_v37 = vpop.f32.mrf.mxu1 }
  0xec   :  { %v6070_v49 = vpop.f32.mrf.mxu0 }
  0xf0   :  { %v6074_v36 = vpop.f32.mrf.mxu3 }
  0xf2   :  { %v6082_v44 = vpop.f32.mrf.mxu2 }
  0xf3   :  { %v6076_v34 = vpop.f32.mrf.mxu1 }
  0xf4   :  { %v6078_v38 = vpop.f32.mrf.mxu0 }
  0xf8   :  { %v6086_v25 = vpop.f32.mrf.mxu3 }
  0xfa   :  { %v779_v58 = vpop.f32.mrf.mxu2 }
  0xfb   :  { %v6080_v43 = vpop.f32.mrf.mxu1  ;;  %v780_v45 = vadd.f32 %v779_v58, %v6014_v54 }
  0xfc   :  { %v6084_v24 = vpop.f32.mrf.mxu0 }
 0x100   :  { %v6092_v60 = vpop.f32.mrf.mxu3 }
 0x102   :  { %v781_v29 = vpop.f32.mrf.mxu2 }
 0x103   :  { %v6088_v52 = vpop.f32.mrf.mxu1  ;;  %v782_v58 = vadd.f32 %v781_v29, %v6022_v59  ;;  %v5004_v59 = vld [vmem:[#allocation7 + $0x58] sm:$0xff] }
 0x104   :  { %v6090_v53 = vpop.f32.mrf.mxu0  ;;  %v5020_v29 = vld [vmem:[#allocation10 + $0x58] sm:$0xff]  ;;  %1342 = vmatpush.bf16.msrb.mxu3 %v5004_v59 }
 0x108   :  { %v6098_v11 = vpop.f32.mrf.mxu3 }
 0x10a   :  { %v784_v61 = vpop.f32.mrf.mxu2 }
 0x10b   :  { %v6094_v0 = vpop.f32.mrf.mxu1 }
 0x10c   :  { %v6096_v1 = vpop.f32.mrf.mxu0 }
 0x110   :  { %v6113_v62 = vpop.f32.mrf.mxu3 }
 0x113   :  { %v6100_v39 = vpop.f32.mrf.mxu1 }
 0x114   :  { %v917_v40 = vpop.f32.mrf.mxu0 }
 0x115   :  { %v918_v42 = vadd.f32 %v917_v40, %v6020_v10 }
 0x117   :  { %v966_v46 = vadd.f32 %v918_v42, %v6048_v20  ;;  %v5022_v20 = vld [vmem:[#allocation10 + $0x68] sm:$0xff] }
 0x118   :  { %1526 = vmatpush.bf16.msrb.mxu1 %v5022_v20  ;;  %v808_v48 = vpop.f32.mrf.mxu3  ;;  %v5019_v20 = vld [vmem:[#allocation10 + $0x50] sm:$0xff] }
 0x119   :  { %v982_v57 = vadd.f32 %v966_v46, %v780_v45  ;;  %v786_v45 = vpop.f32.mrf.mxu2 }
 0x11b   :  { %v1004_v63 = vadd.f32 %v6111_v47, %v982_v57  ;;  %v6116_v2 = vpop.f32.mrf.mxu1 }
 0x11c   :  { %v919_v10 = vpop.f32.mrf.mxu0  ;;  %1527 = vmatpush.bf16.msrb.mxu1 %v5021_v13  ;;  %v5018_v13 = vld [vmem:[#allocation10 + $0x48] sm:$0xff] }
 0x11d   :  { %v1020_v3 = vmax.f32 %v1004_v63, 0.0  ;;  %v920_v54 = vadd.f32 %v919_v10, %v6028_v51 }
 0x11f   :  { %1036 = vst [vmem:[#allocation3] sm:$0xff] %v1020_v3  ;;  %v968_v5 = vadd.f32 %v920_v54, %v6054_v23  ;;  %v785_v23 = vadd.f32 %v784_v61, %v6030_v4  ;;  %v5003_v54 = vld [vmem:[#allocation7 + $0x50] sm:$0xff]  ;;  %v5002_v61 = vld [vmem:[#allocation7 + $0x48] sm:$0xff] }
 0x120   :  { %1528 = vmatpush.bf16.msrb.mxu1 %v5020_v29  ;;  %1343 = vmatpush.bf16.msrb.mxu3 %v5003_v54  ;;  %v5017_v54 = vld [vmem:[#allocation10 + $0x40] sm:$0xff] }
 0x121   :  { %v984_v35 = vadd.f32 %v968_v5, %v782_v58 }
 0x123   :  { %v1006_v40 = vadd.f32 %v6111_v47, %v984_v35  ;;  %v6122_v42 = vpop.f32.mrf.mxu1 }
 0x124   :  { %v922_v46 = vpop.f32.mrf.mxu0  ;;  %1529 = vmatpush.bf16.msrb.mxu1 %v5019_v20  ;;  %1344 = vmatpush.bf16.msrb.mxu3 %v5002_v61  ;;  %v809_v61 = vadd.f32 %v808_v48, %v6016_v55 }
 0x125   :  { %v1022_v51 = vmax.f32 %v1006_v40, 0.0  ;;  %v923_v56 = vadd.f32 %v922_v46, %v6036_v14  ;;  %v787_v40 = vadd.f32 %v786_v45, %v6038_v15  ;;  %v789_v46 = vpop.f32.mrf.mxu2 }
 0x126   :  { %v1070_v63 = vld [vmem:[#allocation3] sm:$0xfe] }
 0x127   :  { %v970_v57 = vadd.f32 %v923_v56, %v6062_v31  ;;  %v1107_v6 = vrot.slane %v1070_v63, 1  ;;  %v1108_v35 = vrot.slane %v1022_v51, 1  ;;  %v810_v56 = vpop.f32.mrf.mxu3 }
 0x128   :  { %1530 = vmatpush.bf16.msrb.mxu1 %v5018_v13  ;;  %v6144_v13 = vperm.slane %v6105_v41, 1 }
 0x129   :  { %v986_v10 = vadd.f32 %v970_v57, %v785_v23  ;;  %v1109_v29 = vsel %vm1106_vm0, %v1107_v6, %v1108_v35 }
 0x12a   :  { %v1157_v20 = vmax.f32 %v1020_v3, %v1109_v29  ;;  %v790_v3 = vadd.f32 %v789_v46, %v6018_v9  ;;  %v811_v46 = vadd.f32 %v810_v56, %v6024_v8 }
 0x12b   :  { %v6128_v58 = vadd.f32 %v6111_v47, %v986_v10  ;;  %v6130_v5 = vpop.f32.mrf.mxu1  ;;  %v5001_v10 = vld [vmem:[#allocation7 + $0x40] sm:$0xff] }
 0x12c   :  { %v924_v14 = vpop.f32.mrf.mxu0  ;;  %1345 = vmatpush.bf16.msrb.mxu3 %v5001_v10  ;;  %1531 = vmatpush.bf16.msrb.mxu1 %v5017_v54 }
 0x12d   :  { %v1024_v4 = vmax.f32 %v6128_v58, 0.0  ;;  %v925_v31 = vadd.f32 %v924_v14, %v6046_v19 }
 0x12f   :  { %v972_v59 = vadd.f32 %v925_v31, %v6070_v49  ;;  %v1113_v23 = vrot.slane %v1024_v4, 1 }
 0x131   :  { %v988_v57 = vadd.f32 %v972_v59, %v787_v40  ;;  %v1114_v63 = vsel %vm1106_vm0, %v1108_v35, %v1113_v23  ;;  %v791_v40 = vpop.f32.mrf.mxu2 }
 0x132   :  { %v1159_v19 = vmax.f32 %v1022_v51, %v1114_v63  ;;  %v792_v54 = vadd.f32 %v791_v40, %v6026_v7 }
 0x133   :  { %v1010_v58 = vadd.f32 %v6111_v47, %v988_v57  ;;  %v946_v14 = vpop.f32.mrf.mxu1 }
 0x134   :  { %v927_v15 = vpop.f32.mrf.mxu0  ;;  %v947_v49 = vadd.f32 %v946_v14, %v6050_v21  ;;  %v1173_v45 = vpack.c.bf16 %v1159_v19, %v1157_v20  ;;  %v813_v21 = vpop.f32.mrf.mxu3 }
 0x135   :  { %v1026_v6 = vmax.f32 %v1010_v58, 0.0  ;;  %v928_v31 = vadd.f32 %v927_v15, %v6056_v26 }
 0x136   :  { %v967_v35 = vadd.f32 %v947_v49, %v6076_v34  ;;  %1317 = vmatmul.bf16.vlgmr.msra.gmra.mxu2 %v1173_v45  ;;  %1503 = vmatmul.bf16.vlgmr.msrb.gmra.mxu0 %v1173_v45 }
 0x137   :  { %v974_v51 = vadd.f32 %v928_v31, %v6078_v38  ;;  %v1117_v34 = vrot.slane %v1026_v6, 1 }
 0x138   :  { %v983_v59 = vadd.f32 %v967_v35, %v809_v61 }
 0x139   :  { %v990_v29 = vadd.f32 %v974_v51, %v790_v3  ;;  %v1118_v19 = vsel %vm1106_vm0, %v1113_v23, %v1117_v34  ;;  %v794_v49 = vpop.f32.mrf.mxu2  ;;  %v814_v51 = vadd.f32 %v813_v21, %v6032_v12 }
 0x13a   :  { %v6149_v57 = vadd.f32 %v6144_v13, %v983_v59  ;;  %v1161_v8 = vmax.f32 %v1024_v4, %v1118_v19  ;;  %v795_v4 = vadd.f32 %v794_v49, %v6034_v30 }
 0x13b   :  { %v6152_v55 = vadd.f32 %v6111_v47, %v990_v29  ;;  %v948_v26 = vpop.f32.mrf.mxu1 }
 0x13c   :  { %v1021_v41 = vmax.f32 %v6149_v57, 0.0  ;;  %v929_v48 = vpop.f32.mrf.mxu0  ;;  %v949_v63 = vadd.f32 %v948_v26, %v6058_v27  ;;  %v815_v45 = vpop.f32.mrf.mxu3 }
 0x13d   :  { %v1028_v9 = vmax.f32 %v6152_v55, 0.0  ;;  %v930_v38 = vadd.f32 %v929_v48, %v6064_v32 }
 0x13e   :  { %1037 = vst [vmem:[#allocation3 + $0x38] sm:$0xff] %v1021_v41  ;;  %v969_v10 = vadd.f32 %v949_v63, %v6080_v43 }
 0x13f   :  { %v976_v20 = vadd.f32 %v930_v38, %v6084_v24  ;;  %v1121_v58 = vrot.slane %v1028_v9, 1 }
 0x140   :  { %v985_v14 = vadd.f32 %v969_v10, %v811_v46  ;;  %v816_v10 = vadd.f32 %v815_v45, %v6040_v16 }
 0x141   :  { %v992_v27 = vadd.f32 %v976_v20, %v792_v54  ;;  %v1122_v15 = vsel %vm1106_vm0, %v1117_v34, %v1121_v58  ;;  %v796_v21 = vpop.f32.mrf.mxu2 }
 0x142   :  { %v1007_v32 = vadd.f32 %v6144_v13, %v985_v14  ;;  %v1163_v56 = vmax.f32 %v1026_v6, %v1122_v15  ;;  %v797_v14 = vadd.f32 %v796_v21, %v6042_v17 }
 0x143   :  { %v1014_v31 = vadd.f32 %v6111_v47, %v992_v27  ;;  %v951_v43 = vpop.f32.mrf.mxu1 }
 0x144   :  { %v1023_v61 = vmax.f32 %v1007_v32, 0.0  ;;  %v932_v7 = vpop.f32.mrf.mxu0  ;;  %v952_v24 = vadd.f32 %v951_v43, %v6066_v33  ;;  %v1175_v35 = vpack.c.bf16 %v1163_v56, %v1161_v8  ;;  %v818_v38 = vpop.f32.mrf.mxu3 }
 0x145   :  { %v1030_v23 = vmax.f32 %v1014_v31, 0.0  ;;  %v933_v3 = vadd.f32 %v932_v7, %v6072_v50  ;;  %v1071_v59 = vld [vmem:[#allocation3 + $0x38] sm:$0xfe] }
 0x146   :  { %v971_v40 = vadd.f32 %v952_v24, %v6088_v52  ;;  %1322 = vmatmul.bf16.gmra.mxu2 %v1175_v35  ;;  %1508 = vmatmul.bf16.gmra.mxu0 %v1175_v35  ;;  %v1110_v33 = vrot.slane %v1071_v59, 1  ;;  %v1111_v34 = vrot.slane %v1023_v61, 1 }
 0x147   :  { %v978_v6 = vadd.f32 %v933_v3, %v6090_v53  ;;  %v1125_v12 = vrot.slane %v1030_v23, 1  ;;  %v819_v3 = vadd.f32 %v818_v38, %v6044_v18 }
 0x148   :  { %v987_v29 = vadd.f32 %v971_v40, %v814_v51  ;;  %v1112_v20 = vsel %vm1106_vm0, %v1110_v33, %v1111_v34 }
 0x149   :  { %v994_v55 = vadd.f32 %v978_v6, %v795_v4  ;;  %v1126_v15 = vsel %vm1106_vm0, %v1121_v58, %v1125_v12  ;;  %v1158_v16 = vmax.f32 %v1021_v41, %v1112_v20  ;;  %v1086_v41 = vld [vmem:[#allocation3 + $0x68] sm:$0x1] }
 0x14a   :  { %v6175_v26 = vadd.f32 %v6144_v13, %v987_v29  ;;  %v1165_v45 = vmax.f32 %v1028_v9, %v1126_v15 }
 0x14b   :  { %v1016_v50 = vadd.f32 %v6111_v47, %v994_v55  ;;  %v953_v48 = vpop.f32.mrf.mxu1 }
 0x14c   :  { %v1025_v52 = vmax.f32 %v6175_v26, 0.0  ;;  %v934_v63 = vpop.f32.mrf.mxu0  ;;  %v954_v30 = vadd.f32 %v953_v48, %v6074_v36  ;;  %v820_v9 = vpop.f32.mrf.mxu3 }
 0x14d   :  { %v1032_v53 = vmax.f32 %v1016_v50, 0.0  ;;  %v935_v46 = vadd.f32 %v934_v63, %v6082_v44 }
 0x14e   :  { %v973_v54 = vadd.f32 %v954_v30, %v6094_v0  ;;  %v1115_v19 = vrot.slane %v1025_v52, 1 }
 0x14f   :  { %v980_v27 = vadd.f32 %v935_v46, %v6096_v1  ;;  %v1129_v49 = vrot.slane %v1032_v53, 1 }
 0x150   :  { %v989_v32 = vadd.f32 %v973_v54, %v816_v10  ;;  %v1116_v36 = vsel %vm1106_vm0, %v1111_v34, %v1115_v19 }
 0x151   :  { %v996_v8 = vadd.f32 %v980_v27, %v797_v14  ;;  %v1130_v44 = vsel %vm1106_vm0, %v1125_v12, %v1129_v49  ;;  %v1160_v0 = vmax.f32 %v1023_v61, %v1116_v36 }
 0x152   :  { %v1011_v56 = vadd.f32 %v6144_v13, %v989_v32  ;;  %v1167_v31 = vmax.f32 %v1030_v23, %v1130_v44 }
 0x153   :  { %v1018_v17 = vadd.f32 %v6111_v47, %v996_v8  ;;  %v956_v1 = vpop.f32.mrf.mxu1  ;;  %v1174_v43 = vpack.c.bf16 %v1160_v0, %v1158_v16  ;;  %v1137_v47 = vrot.slane %v1086_v41, 1  ;;  %v5054_v41 = vld [vmem:[%s7132_s5 + $0xe4] sm:$0xf0] }
 0x154   :  { %v1027_v58 = vmax.f32 %v1011_v56, 0.0  ;;  %v957_v7 = vadd.f32 %v956_v1, %v6086_v25  ;;  %v1177_v24 = vpack.c.bf16 %v1167_v31, %v1165_v45  ;;  %v823_v12 = vpop.f32.mrf.mxu3  ;;  %v1087_v45 = vld [vmem:[#allocation3 + $0x60] sm:$0x1] }
 0x155   :  { %v1034_v35 = vmax.f32 %v1018_v17, 0.0  ;;  %1346 = vmatmul.bf16.vlgmr.msrb.gmra.mxu3 %v1174_v43  ;;  %1532 = vmatmul.bf16.vlgmr.msrb.gmra.mxu1 %v1174_v43  ;;  %v1139_v31 = vrot.slane %v1087_v45, 1  ;;  %v5081_v45 = vld [vmem:[%s7132_s5 + $0x1c4] sm:$0xf] }
 0x156   :  { %v975_v57 = vadd.f32 %v957_v7, %v6100_v39  ;;  %1327 = vmatmul.bf16.gmra.mxu2 %v1177_v24  ;;  %1513 = vmatmul.bf16.gmra.mxu0 %v1177_v24  ;;  %v1119_v40 = vrot.slane %v1027_v58, 1  ;;  %v821_v39 = vadd.f32 %v820_v9, %v6052_v22  ;;  %v5055_v7 = vld [vmem:[%s7132_s5 + $0xf4] sm:$0xf]  ;;  %v5053_v9 = vld [vmem:[%s7132_s5 + $0xe4] sm:$0xf] }
 0x157   :  { %v1133_v23 = vrot.slane %v1034_v35, 1 }
 0x158   :  { %v991_v61 = vadd.f32 %v975_v57, %v819_v3  ;;  %v1120_v55 = vsel %vm1106_vm0, %v1115_v19, %v1119_v40  ;;  %v4257_v57 = vld [vmem:[%s7132_s5 + $0xe0] sm:$0xf] }
 0x159   :  { %v1134_v59 = vsel %vm1106_vm0, %v1129_v49, %v1133_v23  ;;  %v1138_v18 = vsel %vm1106_vm0, %v1133_v23, %v1137_v47  ;;  %v1162_v21 = vmax.f32 %v1025_v52, %v1120_v55  ;;  %v4259_v23 = vld [vmem:[%s7132_s5 + $0xe8] sm:$0xf0] }
 0x15a   :  { %v1013_v51 = vadd.f32 %v6144_v13, %v991_v61  ;;  %v1169_v34 = vmax.f32 %v1032_v53, %v1134_v59  ;;  %v1171_v50 = vmax.f32 %v1034_v35, %v1138_v18  ;;  %v4267_v35 = vld [vmem:[%s7132_s5 + $0xf8] sm:$0xf0]  ;;  %v4258_v61 = vor.u32 %v5054_v41, %v4257_v57  ;;  %v4241_v18 = vld [vmem:[%s7132_s5 + $0xc0] sm:$0xf] }
 0x15b   :  { %v958_v4 = vpop.f32.mrf.mxu1  ;;  %v4270_v3 = vor.u32 %v5055_v7, %v4267_v35  ;;  %v4262_v47 = vor.u32 %v5053_v9, %v4259_v23  ;;  %v5080_v7 = vld [vmem:[%s7132_s5 + $0x1b4] sm:$0xf0]  ;;  %v4331_v57 = vld [vmem:[%s7132_s5 + $0x1b8] sm:$0xf0]  ;;  %v4321_v23 = vld [vmem:[%s7132_s5 + $0x1a0] sm:$0xf] }
 0x15c   :  { %v1029_v25 = vmax.f32 %v1013_v51, 0.0  ;;  %v959_v6 = vadd.f32 %v958_v4, %v6092_v60  ;;  %v1179_v10 = vpack.c.bf16 %v1171_v50, %v1169_v34  ;;  %v825_v19 = vpop.f32.mrf.mxu3  ;;  %v4249_v51 = vld [vmem:[%s7132_s5 + $0xd0] sm:$0xf]  ;;  %v5051_v4 = vld [vmem:[%s7132_s5 + $0xd4] sm:$0xf] }
 0x15d   :  { %1736 = vmatpush.bf16.msra.mxu3 %v4270_v3  ;;  %v4233_v34 = vld [vmem:[%s7132_s5 + $0xb0] sm:$0xf]  ;;  %v5048_v50 = vld [vmem:[%s7132_s5 + $0xb4] sm:$0xf0]  ;;  %v5079_v3 = vld [vmem:[%s7132_s5 + $0x1b4] sm:$0xf] }
 0x15e   :  { %v977_v29 = vadd.f32 %v959_v6, %v6116_v2  ;;  %v1123_v26 = vrot.slane %v1029_v25, 1  ;;  %v824_v2 = vadd.f32 %v823_v12, %v6060_v28  ;;  %v4251_v6 = vld [vmem:[%s7132_s5 + $0xd8] sm:$0xf0]  ;;  %v4234_v12 = vor.u32 %v5048_v50, %v4233_v34  ;;  %v5075_v50 = vld [vmem:[%s7132_s5 + $0x194] sm:$0xf] }
 0x15f   :  { %v4254_v59 = vor.u32 %v5051_v4, %v4251_v6  ;;  %v4334_v41 = vor.u32 %v5079_v3, %v4331_v57  ;;  %v4323_v4 = vld [vmem:[%s7132_s5 + $0x1a8] sm:$0xf0]  ;;  %v4209_v6 = vld [vmem:[%s7132_s5 + $0x80] sm:$0xf] }
 0x160   :  { %v993_v33 = vadd.f32 %v977_v29, %v821_v39  ;;  %v1124_v48 = vsel %vm1106_vm0, %v1119_v40, %v1123_v26  ;;  %v5052_v40 = vld [vmem:[%s7132_s5 + $0xd4] sm:$0xf0]  ;;  %v5050_v39 = vld [vmem:[%s7132_s5 + $0xc4] sm:$0xf0]  ;;  %v5049_v29 = vld [vmem:[%s7132_s5 + $0xc4] sm:$0xf] }
 0x161   :  { %v1164_v63 = vmax.f32 %v1027_v58, %v1124_v48  ;;  %v5056_v58 = vld [vmem:[%s7132_s5 + $0xf4] sm:$0xf0]  ;;  %1737 = vmatpush.bf16.msra.mxu3 %v4262_v47  ;;  %v4242_v55 = vor.u32 %v5050_v39, %v4241_v18  ;;  %v5047_v48 = vld [vmem:[%s7132_s5 + $0xb4] sm:$0xf]  ;;  %v5078_v47 = vld [vmem:[%s7132_s5 + $0x1a4] sm:$0xf0] }
 0x162   :  { %v1015_v60 = vadd.f32 %v6144_v13, %v993_v33  ;;  %v5041_v18 = vld [vmem:[%s7132_s5 + $0x84] sm:$0xf] }
 0x163   :  { %v961_v30 = vpop.f32.mrf.mxu1  ;;  %v1176_v38 = vpack.c.bf16 %v1164_v63, %v1162_v21  ;;  %v4235_v21 = vld [vmem:[%s7132_s5 + $0xb8] sm:$0xf0] }
 0x164   :  { %v1031_v46 = vmax.f32 %v1015_v60, 0.0  ;;  %v962_v22 = vadd.f32 %v961_v30, %v6098_v11  ;;  %v826_v11 = vadd.f32 %v825_v19, %v6068_v37  ;;  %v4238_v63 = vor.u32 %v5047_v48, %v4235_v21  ;;  %v4361_v60 = vld [vmem:[%s7132_s5 + $0x1f0] sm:$0xf]  ;;  %v5088_v30 = vld [vmem:[%s7132_s5 + $0x1f4] sm:$0xf0] }
 0x165   :  { %1351 = vmatmul.bf16.gmra.mxu3 %v1176_v38  ;;  %1537 = vmatmul.bf16.gmra.mxu1 %v1176_v38  ;;  %v5087_v38 = vld [vmem:[%s7132_s5 + $0x1f4] sm:$0xf]  ;;  %v4315_v48 = vld [vmem:[%s7132_s5 + $0x198] sm:$0xf0] }
 0x166   :  { %v979_v53 = vadd.f32 %v962_v22, %v6122_v42  ;;  %1332 = vmatmul.bf16.gmra.mxu2 %v1179_v10  ;;  %1518 = vmatmul.bf16.gmra.mxu0 %v1179_v10  ;;  %v1127_v20 = vrot.slane %v1031_v46, 1  ;;  %v4363_v22 = vld [vmem:[%s7132_s5 + $0x1f8] sm:$0xf0] }
 0x167   :  { %1738 = vmatpush.bf16.msra.mxu3 %v4254_v59  ;;  %v4366_v10 = vor.u32 %v5087_v38, %v4363_v22  ;;  %v5042_v59 = vld [vmem:[%s7132_s5 + $0x84] sm:$0xf0]  ;;  %v4307_v22 = vld [vmem:[%s7132_s5 + $0x188] sm:$0xf0] }
 0x168   :  { %v995_v54 = vadd.f32 %v979_v53, %v824_v2  ;;  %v1128_v32 = vsel %vm1106_vm0, %v1123_v26, %v1127_v20  ;;  %v4243_v26 = vld [vmem:[%s7132_s5 + $0xc8] sm:$0xf0]  ;;  %v4353_v2 = vld [vmem:[%s7132_s5 + $0x1e0] sm:$0xf]  ;;  %v5086_v53 = vld [vmem:[%s7132_s5 + $0x1e4] sm:$0xf0]  ;;  %v4210_v39 = vor.u32 %v5042_v59, %v4209_v6 }
 0x169   :  { %v1166_v8 = vmax.f32 %v1029_v25, %v1128_v32  ;;  %v4250_v25 = vor.u32 %v5052_v40, %v4249_v51  ;;  %v4246_v33 = vor.u32 %v5049_v29, %v4243_v26  ;;  %1932 = vmatpush.bf16.msra.mxu1 %v4366_v10  ;;  %v4345_v32 = vld [vmem:[%s7132_s5 + $0x1d0] sm:$0xf]  ;;  %v5077_v51 = vld [vmem:[%s7132_s5 + $0x1a4] sm:$0xf]  ;;  %v4322_v40 = vor.u32 %v5078_v47, %v4321_v23  ;;  %v4211_v29 = vld [vmem:[%s7132_s5 + $0x88] sm:$0xf0] }
 0x16a   :  { %v1017_v52 = vadd.f32 %v6144_v13, %v995_v54  ;;  %v5085_v54 = vld [vmem:[%s7132_s5 + $0x1e4] sm:$0xf]  ;;  %v5076_v26 = vld [vmem:[%s7132_s5 + $0x194] sm:$0xf0]  ;;  %v4417_v47 = vld [vmem:[%s7132_s5 + $0x240] sm:$0xf] }
 0x16b   :  { %v963_v14 = vpop.f32.mrf.mxu1  ;;  %1739 = vmatpush.bf16.msra.mxu3 %v4246_v33  ;;  %v4214_v33 = vor.u32 %v5041_v18, %v4211_v29  ;;  %v4419_v6 = vld [vmem:[%s7132_s5 + $0x248] sm:$0xf0] }
 0x16c   :  { %v1033_v27 = vmax.f32 %v1017_v52, 0.0  ;;  %v964_v15 = vadd.f32 %v963_v14, %v6113_v62  ;;  %v4354_v52 = vor.u32 %v5086_v53, %v4353_v2  ;;  %v4225_v14 = vld [vmem:[%s7132_s5 + $0xa0] sm:$0xf] }
 0x16e   :  { %v981_v49 = vadd.f32 %v964_v15, %v6130_v5  ;;  %v1131_v28 = vrot.slane %v1033_v27, 1  ;;  %v5045_v15 = vld [vmem:[%s7132_s5 + $0xa4] sm:$0xf] }
 0x16f   :  { %1740 = vmatpush.bf16.msra.mxu3 %v4238_v63  ;;  %v4305_v63 = vld [vmem:[%s7132_s5 + $0x180] sm:$0xf] }
 0x170   :  { %v997_v36 = vadd.f32 %v981_v49, %v826_v11  ;;  %v1132_v42 = vsel %vm1106_vm0, %v1127_v20, %v1131_v28  ;;  %v4355_v20 = vld [vmem:[%s7132_s5 + $0x1e8] sm:$0xf0] }
 0x171   :  { %v1168_v44 = vmax.f32 %v1031_v46, %v1132_v42  ;;  %v4362_v46 = vor.u32 %v5088_v30, %v4361_v60  ;;  %v4358_v19 = vor.u32 %v5085_v54, %v4355_v20  ;;  %v4227_v49 = vld [vmem:[%s7132_s5 + $0xa8] sm:$0xf0]  ;;  %v5074_v60 = vld [vmem:[%s7132_s5 + $0x184] sm:$0xf0]  ;;  %v5073_v30 = vld [vmem:[%s7132_s5 + $0x184] sm:$0xf] }
 0x172   :  { %v1019_v16 = vadd.f32 %v6144_v13, %v997_v36  ;;  %v4265_v13 = vld [vmem:[%s7132_s5 + $0xf0] sm:$0xf]  ;;  %v4230_v36 = vor.u32 %v5045_v15, %v4227_v49  ;;  %v4310_v2 = vor.u32 %v5073_v30, %v4307_v22  ;;  %v5103_v20 = vld [vmem:[%s7132_s5 + $0x274] sm:$0xf]  ;;  %v4443_v15 = vld [vmem:[%s7132_s5 + $0x278] sm:$0xf0] }
 0x173   :  { %v1178_v0 = vpack.c.bf16 %v1168_v44, %v1166_v8  ;;  %v4266_v24 = vor.u32 %v5056_v58, %v4265_v13  ;;  %1903 = vmatpush.bf16.msra.mxu0 %v4362_v46  ;;  %1933 = vmatpush.bf16.msra.mxu1 %v4358_v19  ;;  %v5083_v8 = vld [vmem:[%s7132_s5 + $0x1d4] sm:$0xf]  ;;  %v4347_v44 = vld [vmem:[%s7132_s5 + $0x1d8] sm:$0xf0]  ;;  %v4329_v58 = vld [vmem:[%s7132_s5 + $0x1b0] sm:$0xf]  ;;  %v4306_v46 = vor.u32 %v5074_v60, %v4305_v63 }
 0x174   :  { %v1035_v56 = vmax.f32 %v1019_v16, 0.0  ;;  %v4350_v16 = vor.u32 %v5083_v8, %v4347_v44  ;;  %1741 = vmatpush.bf16.msra.mxu3 %v4230_v36  ;;  %v4219_v13 = vld [vmem:[%s7132_s5 + $0x98] sm:$0xf0]  ;;  %v4330_v35 = vor.u32 %v5080_v7, %v4329_v58  ;;  %v4441_v54 = vld [vmem:[%s7132_s5 + $0x270] sm:$0xf]  ;;  %v4446_v49 = vor.u32 %v5103_v20, %v4443_v15 }
 0x175   :  { %1356 = vmatmul.bf16.gmra.mxu3 %v1178_v0  ;;  %1542 = vmatmul.bf16.gmra.mxu1 %v1178_v0  ;;  %v4337_v0 = vld [vmem:[%s7132_s5 + $0x1c0] sm:$0xf]  ;;  %v4425_v58 = vld [vmem:[%s7132_s5 + $0x250] sm:$0xf]  ;;  %v5100_v7 = vld [vmem:[%s7132_s5 + $0x254] sm:$0xf0] }
 0x176   :  { %v1135_v62 = vrot.slane %v1035_v56, 1  ;;  %1707 = vmatpush.bf16.msrb.mxu2 %v4266_v24  ;;  %v4433_v36 = vld [vmem:[%s7132_s5 + $0x260] sm:$0xf]  ;;  %v4426_v57 = vor.u32 %v5100_v7, %v4425_v58  ;;  %v5039_v22 = vld [vmem:[%s7132_s5 + $0x74] sm:$0xf] }
 0x177   :  { %1904 = vmatpush.bf16.msra.mxu0 %v4354_v52  ;;  %1934 = vmatpush.bf16.msra.mxu1 %v4350_v16  ;;  %v5104_v52 = vld [vmem:[%s7132_s5 + $0x274] sm:$0xf0]  ;;  %v5101_v16 = vld [vmem:[%s7132_s5 + $0x264] sm:$0xf]  ;;  %v5095_v20 = vld [vmem:[%s7132_s5 + $0x234] sm:$0xf] }
 0x178   :  { %v1136_v37 = vsel %vm1106_vm0, %v1131_v28, %v1135_v62  ;;  %v1140_v5 = vsel %vm1106_vm0, %v1135_v62, %v1139_v31  ;;  %v5084_v28 = vld [vmem:[%s7132_s5 + $0x1d4] sm:$0xf0]  ;;  %v4339_v31 = vld [vmem:[%s7132_s5 + $0x1c8] sm:$0xf0]  ;;  %v5035_v7 = vld [vmem:[%s7132_s5 + $0x54] sm:$0xf] }
 0x179   :  { %v1170_v17 = vmax.f32 %v1033_v27, %v1136_v37  ;;  %v1172_v1 = vmax.f32 %v1035_v56, %v1140_v5  ;;  %v5046_v27 = vld [vmem:[%s7132_s5 + $0xa4] sm:$0xf0]  ;;  %v4346_v42 = vor.u32 %v5084_v28, %v4345_v32  ;;  %v4342_v37 = vor.u32 %v5081_v45, %v4339_v31  ;;  %v4217_v5 = vld [vmem:[%s7132_s5 + $0x90] sm:$0xf]  ;;  %v5036_v58 = vld [vmem:[%s7132_s5 + $0x54] sm:$0xf0] }
 0x17a   :  { %1708 = vmatpush.bf16.msrb.mxu2 %v4258_v61  ;;  %v4226_v11 = vor.u32 %v5046_v27, %v4225_v14  ;;  %v5082_v56 = vld [vmem:[%s7132_s5 + $0x1c4] sm:$0xf0]  ;;  %v4442_v27 = vor.u32 %v5104_v52, %v4441_v54  ;;  %v4409_v54 = vld [vmem:[%s7132_s5 + $0x230] sm:$0xf]  ;;  %v5096_v52 = vld [vmem:[%s7132_s5 + $0x234] sm:$0xf0] }
 0x17b   :  { %v1180_v43 = vpack.c.bf16 %v1172_v1, %v1170_v17  ;;  %1905 = vmatpush.bf16.msra.mxu0 %v4346_v42  ;;  %v4338_v62 = vor.u32 %v5082_v56, %v4337_v0  ;;  %v5044_v17 = vld [vmem:[%s7132_s5 + $0x94] sm:$0xf0]  ;;  %v5043_v1 = vld [vmem:[%s7132_s5 + $0x94] sm:$0xf]  ;;  %1935 = vmatpush.bf16.msra.mxu1 %v4342_v37  ;;  %v5102_v42 = vld [vmem:[%s7132_s5 + $0x264] sm:$0xf0]  ;;  %v4410_v15 = vor.u32 %v5096_v52, %v4409_v54 }
 0x17c   :  { %v4222_v24 = vor.u32 %v5043_v1, %v4219_v13  ;;  %v4434_v44 = vor.u32 %v5102_v42, %v4433_v36  ;;  %v4435_v0 = vld [vmem:[%s7132_s5 + $0x268] sm:$0xf0] }
 0x17d   :  { %v4438_v56 = vor.u32 %v5101_v16, %v4435_v0  ;;  %v4401_v16 = vld [vmem:[%s7132_s5 + $0x220] sm:$0xf] }
 0x17e   :  { %1709 = vmatpush.bf16.msrb.mxu2 %v4250_v25  ;;  %1742 = vmatpush.bf16.msra.mxu3 %v4222_v24  ;;  %v4326_v25 = vor.u32 %v5077_v51, %v4323_v4  ;;  %v5099_v24 = vld [vmem:[%s7132_s5 + $0x254] sm:$0xf]  ;;  %v5098_v51 = vld [vmem:[%s7132_s5 + $0x244] sm:$0xf0] }
 0x17f   :  { %1906 = vmatpush.bf16.msra.mxu0 %v4338_v62  ;;  %1936 = vmatpush.bf16.msra.mxu1 %v4334_v41  ;;  %v4427_v41 = vld [vmem:[%s7132_s5 + $0x258] sm:$0xf0]  ;;  %v4418_v4 = vor.u32 %v5098_v51, %v4417_v47 }
 0x182   :  { %1710 = vmatpush.bf16.msrb.mxu2 %v4242_v55  ;;  %v4313_v55 = vld [vmem:[%s7132_s5 + $0x190] sm:$0xf]  ;;  %1743 = vmatpush.bf16.msra.mxu3 %v4214_v33 }
 0x183   :  { %1907 = vmatpush.bf16.msra.mxu0 %v4330_v35  ;;  %1937 = vmatpush.bf16.msra.mxu1 %v4326_v25  ;;  %v4314_v34 = vor.u32 %v5076_v26, %v4313_v55  ;;  %v5097_v25 = vld [vmem:[%s7132_s5 + $0x244] sm:$0xf] }
 0x184   :  { %v4422_v59 = vor.u32 %v5097_v25, %v4419_v6 }
 0x185   :  { %1361 = vmatmul.bf16.gmra.mxu3 %v1180_v43  ;;  %1547 = vmatmul.bf16.gmra.mxu1 %v1180_v43  ;;  %v4218_v43 = vor.u32 %v5044_v17, %v4217_v5 }
 0x186   :  { %1711 = vmatpush.bf16.msrb.mxu2 %v4234_v12  ;;  %v4318_v12 = vor.u32 %v5075_v50, %v4315_v48  ;;  %2099 = vmatpush.bf16.msrb.mxu3 %v4446_v49  ;;  %v4497_v49 = vld [vmem:[%s7132_s5 + $0x60] sm:$0xf] }
 0x187   :  { %1908 = vmatpush.bf16.msra.mxu0 %v4322_v40 }
 0x188   :  { %1938 = vmatpush.bf16.msra.mxu1 %v4318_v12 }
 0x18a   :  { %1712 = vmatpush.bf16.msrb.mxu2 %v4226_v11  ;;  %2100 = vmatpush.bf16.msrb.mxu3 %v4438_v56 }
 0x18b   :  { %1909 = vmatpush.bf16.msra.mxu0 %v4314_v34 }
 0x18c   :  { %1939 = vmatpush.bf16.msra.mxu1 %v4310_v2  ;;  %v4507_v2 = vld [vmem:[%s7132_s5 + $0x78] sm:$0xf0] }
 0x18e   :  { %1713 = vmatpush.bf16.msrb.mxu2 %v4218_v43 }
 0x18f   :  { %1910 = vmatpush.bf16.msra.mxu0 %v4306_v46  ;;  %v5040_v46 = vld [vmem:[%s7132_s5 + $0x74] sm:$0xf0] }
 0x192   :  { %1714 = vmatpush.bf16.msrb.mxu2 %v4210_v39 }
 0x196   :  { %2070 = vmatpush.bf16.msra.mxu2 %v4442_v27 }
 0x19a   :  { %2071 = vmatpush.bf16.msra.mxu2 %v4434_v44  ;;  %v4499_v44 = vld [vmem:[%s7132_s5 + $0x68] sm:$0xf0] }
 0x19e   :  { %2072 = vmatpush.bf16.msra.mxu2 %v4426_v57  ;;  %v4481_v57 = vld [vmem:[%s7132_s5 + $0x40] sm:$0xf] }
 0x1a2   :  { %2073 = vmatpush.bf16.msra.mxu2 %v4418_v4 }
 0x1a6   :  { %2074 = vmatpush.bf16.msra.mxu2 %v4410_v15  ;;  %v5030_v15 = vld [vmem:[%s7132_s5 + $0x24] sm:$0xf0] }
 0x1b3   :  { %v1504_v9 = vpop.f32.mrf.mxu0 }
 0x1b9   :  { %v1318_v61 = vpop.f32.mrf.mxu2 }
 0x1bb   :  { %v1506_v38 = vpop.f32.mrf.mxu0 }
 0x1c1   :  { %v1320_v10 = vpop.f32.mrf.mxu2 }
 0x1c3   :  { %v1509_v28 = vpop.f32.mrf.mxu0 }
 0x1c9   :  { %v1323_v8 = vpop.f32.mrf.mxu2 }
 0x1cb   :  { %v1511_v1 = vpop.f32.mrf.mxu0 }
 0x1d1   :  { %v1325_v43 = vpop.f32.mrf.mxu2 }
 0x1d2   :  { %v1533_v21 = vpop.f32.mrf.mxu1 }
 0x1d3   :  { %v1534_v19 = vadd.f32 %v1533_v21, %v1504_v9  ;;  %v1514_v39 = vpop.f32.mrf.mxu0 }
 0x1d8   :  { %v1347_v53 = vpop.f32.mrf.mxu3 }
 0x1d9   :  { %v1348_v14 = vadd.f32 %v1347_v53, %v1318_v61  ;;  %v4430_v61 = vor.u32 %v5099_v24, %v4427_v41  ;;  %v1328_v26 = vpop.f32.mrf.mxu2  ;;  %v5034_v41 = vld [vmem:[%s7132_s5 + $0x44] sm:$0xf0] }
 0x1da   :  { %v1535_v11 = vpop.f32.mrf.mxu1  ;;  %v4482_v25 = vor.u32 %v5034_v41, %v4481_v57  ;;  %v5025_v57 = vld [vmem:[%s7132_s5 + $0x4] sm:$0xf]  ;;  %v4451_v41 = vld [vmem:[%s7132_s5 + $0x8] sm:$0xf0] }
 0x1db   :  { %v1553_v32 = vmax.f32 %v1348_v14, %v1534_v19  ;;  %v1536_v62 = vadd.f32 %v1535_v11, %v1506_v38  ;;  %2101 = vmatpush.bf16.msrb.mxu3 %v4430_v61  ;;  %v4505_v38 = vld [vmem:[%s7132_s5 + $0x70] sm:$0xf]  ;;  %v4510_v19 = vor.u32 %v5039_v22, %v4507_v2  ;;  %v4411_v11 = vld [vmem:[%s7132_s5 + $0x238] sm:$0xf0]  ;;  %v1516_v0 = vpop.f32.mrf.mxu0  ;;  %v5033_v61 = vld [vmem:[%s7132_s5 + $0x44] sm:$0xf] }
 0x1dc   :  { %v4414_v36 = vor.u32 %v5095_v20, %v4411_v11  ;;  %v5092_v2 = vld [vmem:[%s7132_s5 + $0x214] sm:$0xf0] }
 0x1dd   :  { %1561 = vst [vmem:[#allocation4] sm:$0xff] %v1553_v32  ;;  %2237 = vmatpush.bf16.msrb.mxu1 %v4510_v19 }
 0x1df   :  { %2102 = vmatpush.bf16.msrb.mxu3 %v4422_v59 }
 0x1e0   :  { %v1349_v45 = vpop.f32.mrf.mxu3 }
 0x1e1   :  { %v1350_v31 = vadd.f32 %v1349_v45, %v1320_v10  ;;  %v4506_v10 = vor.u32 %v5040_v46, %v4505_v38  ;;  %v4475_v46 = vld [vmem:[%s7132_s5 + $0x38] sm:$0xf0] }
 0x1e2   :  { %v1538_v37 = vpop.f32.mrf.mxu1 }
 0x1e3   :  { %v1554_v5 = vmax.f32 %v1350_v31, %v1536_v62  ;;  %v1539_v35 = vadd.f32 %v1538_v37, %v1509_v28  ;;  %2208 = vmatpush.bf16.msrb.mxu0 %v4506_v10  ;;  %v5094_v62 = vld [vmem:[%s7132_s5 + $0x224] sm:$0xf0]  ;;  %v5093_v31 = vld [vmem:[%s7132_s5 + $0x224] sm:$0xf]  ;;  %v4403_v37 = vld [vmem:[%s7132_s5 + $0x228] sm:$0xf0]  ;;  %2103 = vmatpush.bf16.msrb.mxu3 %v4414_v36 }
 0x1e4   :  { %v4393_v10 = vld [vmem:[%s7132_s5 + $0x210] sm:$0xf]  ;;  %v4385_v36 = vld [vmem:[%s7132_s5 + $0x200] sm:$0xf] }
 0x1e5   :  { %1562 = vst [vmem:[#allocation4 + $0x8] sm:$0xff] %v1554_v5  ;;  %v6433_v17 = vpack.c.bf16 %v1554_v5, %v1553_v32  ;;  %v5038_v32 = vld [vmem:[%s7132_s5 + $0x64] sm:$0xf0]  ;;  %v4394_v19 = vor.u32 %v5092_v2, %v4393_v10 }
 0x1e6   :  { %v4498_v42 = vor.u32 %v5038_v32, %v4497_v49  ;;  %v5029_v32 = vld [vmem:[%s7132_s5 + $0x24] sm:$0xf] }
 0x1e8   :  { %v1352_v13 = vpop.f32.mrf.mxu3  ;;  %2209 = vmatpush.bf16.msrb.mxu0 %v4498_v42 }
 0x1e9   :  { %v1353_v3 = vadd.f32 %v1352_v13, %v1323_v8  ;;  %v5037_v8 = vld [vmem:[%s7132_s5 + $0x64] sm:$0xf]  ;;  %v4489_v13 = vld [vmem:[%s7132_s5 + $0x50] sm:$0xf] }
 0x1ea   :  { %v1540_v9 = vpop.f32.mrf.mxu1  ;;  %v4502_v45 = vor.u32 %v5037_v8, %v4499_v44  ;;  %v5090_v44 = vld [vmem:[%s7132_s5 + $0x204] sm:$0xf0] }
 0x1eb   :  { %v1555_v23 = vmax.f32 %v1353_v3, %v1539_v35  ;;  %v1541_v29 = vadd.f32 %v1540_v9, %v1511_v1  ;;  %v4402_v1 = vor.u32 %v5094_v62, %v4401_v16  ;;  %v4490_v35 = vor.u32 %v5036_v58, %v4489_v13  ;;  %v4491_v3 = vld [vmem:[%s7132_s5 + $0x58] sm:$0xf0]  ;;  %v5089_v16 = vld [vmem:[%s7132_s5 + $0x204] sm:$0xf]  ;;  %v4457_v62 = vld [vmem:[%s7132_s5 + $0x10] sm:$0xf] }
 0x1ec   :  { %v1598_v50 = vld [vmem:[#allocation4 + $0x2] sm:$0xff]  ;;  %2238 = vmatpush.bf16.msrb.mxu1 %v4502_v45  ;;  %v4494_v9 = vor.u32 %v5035_v7, %v4491_v3  ;;  %v5026_v7 = vld [vmem:[%s7132_s5 + $0x4] sm:$0xf0] }
 0x1ed   :  { %1563 = vst [vmem:[#allocation4 + $0x10] sm:$0xff] %v1555_v23  ;;  %v6453_v40 = vpack.c.bf16 %v1555_v23, %v1554_v5  ;;  %v1794_v12 = vld [vmem:[#allocation4 + $0x6] sm:$0xff]  ;;  %v1330_v5 = vpop.f32.mrf.mxu2  ;;  %2075 = vmatpush.bf16.msra.mxu2 %v4402_v1  ;;  %2210 = vmatpush.bf16.msrb.mxu0 %v4490_v35 }
 0x1ee   :  { %v4459_v13 = vld [vmem:[%s7132_s5 + $0x18] sm:$0xf0]  ;;  %v4449_v58 = vld [vmem:[%s7132_s5] sm:$0xf] }
 0x1f0   :  { %v1354_v18 = vpop.f32.mrf.mxu3  ;;  %2239 = vmatpush.bf16.msrb.mxu1 %v4494_v9 }
 0x1f1   :  { %v1355_v55 = vadd.f32 %v1354_v18, %v1325_v43  ;;  %v4406_v43 = vor.u32 %v5093_v31, %v4403_v37  ;;  %2211 = vmatpush.bf16.msrb.mxu0 %v4482_v25  ;;  %2076 = vmatpush.bf16.msra.mxu2 %v4394_v19  ;;  %v5028_v31 = vld [vmem:[%s7132_s5 + $0x14] sm:$0xf0]  ;;  %v5027_v37 = vld [vmem:[%s7132_s5 + $0x14] sm:$0xf] }
 0x1f2   :  { %v1543_v33 = vpop.f32.mrf.mxu1  ;;  %v4462_v3 = vor.u32 %v5027_v37, %v4459_v13  ;;  %v5062_v37 = vld [vmem:[%s7132_s5 + $0x124] sm:$0xf0]  ;;  %v4531_v13 = vld [vmem:[%s7132_s5 + $0x128] sm:$0xf0] }
 0x1f3   :  { %v1556_v34 = vmax.f32 %v1355_v55, %v1541_v29  ;;  %v1544_v14 = vadd.f32 %v1543_v33, %v1514_v39  ;;  %2104 = vmatpush.bf16.msrb.mxu3 %v4406_v43  ;;  %v1519_v33 = vpop.f32.mrf.mxu0  ;;  %v4458_v43 = vor.u32 %v5028_v31, %v4457_v62  ;;  %v5063_v62 = vld [vmem:[%s7132_s5 + $0x134] sm:$0xf] }
 0x1f4   :  { %v1599_v48 = vld [vmem:[#allocation4 + $0xa] sm:$0xff] }
 0x1f5   :  { %v1795_v21 = vld [vmem:[#allocation4 + $0xe] sm:$0xff]  ;;  %1564 = vst [vmem:[#allocation4 + $0x18] sm:$0xff] %v1556_v34  ;;  %v1606_v63 = vpack.c.bf16 %v1599_v48, %v1598_v50  ;;  %v6461_v30 = vpack.c.bf16 %v1556_v34, %v1555_v23 }
 0x1f6   :  { %v1802_v60 = vpack.c.bf16 %v1795_v21, %v1794_v12  ;;  %v4483_v23 = vld [vmem:[%s7132_s5 + $0x48] sm:$0xf0]  ;;  %v1333_v12 = vpop.f32.mrf.mxu2  ;;  %v4473_v21 = vld [vmem:[%s7132_s5 + $0x30] sm:$0xf] }
 0x1f7   :  { %1715 = vmatmul.bf16.vlgmr.msrb.gmra.mxu2 %v1606_v63  ;;  %1744 = vmatmul.bf16.vlgmr.msra.gmra.mxu3 %v1606_v63  ;;  %v4486_v6 = vor.u32 %v5033_v61, %v4483_v23  ;;  %v5032_v63 = vld [vmem:[%s7132_s5 + $0x34] sm:$0xf0] }
 0x1f8   :  { %1911 = vmatmul.bf16.vlgmr.msra.gmra.mxu0 %v1802_v60  ;;  %1940 = vmatmul.bf16.vlgmr.msra.gmra.mxu1 %v1802_v60  ;;  %v1357_v53 = vpop.f32.mrf.mxu3  ;;  %v5031_v60 = vld [vmem:[%s7132_s5 + $0x34] sm:$0xf]  ;;  %v4474_v38 = vor.u32 %v5032_v63, %v4473_v21  ;;  %v4571_v21 = vld [vmem:[%s7132_s5 + $0x178] sm:$0xf0]  ;;  %v4561_v63 = vld [vmem:[%s7132_s5 + $0x160] sm:$0xf] }
 0x1f9   :  { %v1358_v27 = vadd.f32 %v1357_v53, %v1328_v26  ;;  %2240 = vmatpush.bf16.msrb.mxu1 %v4486_v6  ;;  %v5091_v53 = vld [vmem:[%s7132_s5 + $0x214] sm:$0xf]  ;;  %v4478_v54 = vor.u32 %v5031_v60, %v4475_v46  ;;  %v5070_v60 = vld [vmem:[%s7132_s5 + $0x164] sm:$0xf0]  ;;  %v5069_v46 = vld [vmem:[%s7132_s5 + $0x164] sm:$0xf] }
 0x1fa   :  { %v1545_v28 = vpop.f32.mrf.mxu1  ;;  %2212 = vmatpush.bf16.msrb.mxu0 %v4474_v38  ;;  %v4562_v10 = vor.u32 %v5070_v60, %v4561_v63 }
 0x1fb   :  { %v1557_v56 = vmax.f32 %v1358_v27, %v1544_v14  ;;  %v1546_v51 = vadd.f32 %v1545_v28, %v1516_v0  ;;  %v4395_v14 = vld [vmem:[%s7132_s5 + $0x218] sm:$0xf0]  ;;  %v4465_v27 = vld [vmem:[%s7132_s5 + $0x20] sm:$0xf]  ;;  %v4467_v28 = vld [vmem:[%s7132_s5 + $0x28] sm:$0xf0]  ;;  %v1521_v35 = vpop.f32.mrf.mxu0 }
 0x1fc   :  { %v1600_v18 = vld [vmem:[#allocation4 + $0x12] sm:$0xff]  ;;  %v4398_v11 = vor.u32 %v5091_v53, %v4395_v14  ;;  %v4466_v49 = vor.u32 %v5030_v15, %v4465_v27  ;;  %v4470_v8 = vor.u32 %v5029_v32, %v4467_v28  ;;  %v5068_v15 = vld [vmem:[%s7132_s5 + $0x154] sm:$0xf0]  ;;  %v4555_v32 = vld [vmem:[%s7132_s5 + $0x158] sm:$0xf0] }
 0x1fd   :  { %1565 = vst [vmem:[#allocation4 + $0x20] sm:$0xff] %v1557_v56  ;;  %v6520_v24 = vpack.c.bf16 %v1557_v56, %v1556_v34  ;;  %v1796_v55 = vld [vmem:[#allocation4 + $0x16] sm:$0xff]  ;;  %2241 = vmatpush.bf16.msrb.mxu1 %v4478_v54  ;;  %v4545_v28 = vld [vmem:[%s7132_s5 + $0x140] sm:$0xf] }
 0x1fe   :  { %v4387_v0 = vld [vmem:[%s7132_s5 + $0x208] sm:$0xf0]  ;;  %2105 = vmatpush.bf16.msrb.mxu3 %v4398_v11  ;;  %2213 = vmatpush.bf16.msrb.mxu0 %v4466_v49  ;;  %v1335_v9 = vpop.f32.mrf.mxu2  ;;  %v4553_v27 = vld [vmem:[%s7132_s5 + $0x150] sm:$0xf]  ;;  %v5067_v11 = vld [vmem:[%s7132_s5 + $0x154] sm:$0xf] }
 0x1ff   :  { %v4390_v45 = vor.u32 %v5089_v16, %v4387_v0  ;;  %v4554_v49 = vor.u32 %v5068_v15, %v4553_v27 }
 0x200   :  { %v1359_v47 = vpop.f32.mrf.mxu3 }
 0x201   :  { %v1360_v4 = vadd.f32 %v1359_v47, %v1330_v5  ;;  %2242 = vmatpush.bf16.msrb.mxu1 %v4470_v8  ;;  %v5065_v8 = vld [vmem:[%s7132_s5 + $0x144] sm:$0xf] }
 0x202   :  { %v1548_v39 = vpop.f32.mrf.mxu1  ;;  %2106 = vmatpush.bf16.msrb.mxu3 %v4390_v45  ;;  %2214 = vmatpush.bf16.msrb.mxu0 %v4458_v43  ;;  %v5064_v45 = vld [vmem:[%s7132_s5 + $0x134] sm:$0xf0]  ;;  %v5061_v43 = vld [vmem:[%s7132_s5 + $0x124] sm:$0xf] }
 0x203   :  { %v1558_v59 = vmax.f32 %v1360_v4, %v1546_v51  ;;  %v1549_v52 = vadd.f32 %v1548_v39, %v1519_v33  ;;  %v4450_v51 = vor.u32 %v5026_v7, %v4449_v58  ;;  %v4454_v4 = vor.u32 %v5025_v57, %v4451_v41  ;;  %v4569_v33 = vld [vmem:[%s7132_s5 + $0x170] sm:$0xf]  ;;  %v5059_v57 = vld [vmem:[%s7132_s5 + $0x114] sm:$0xf] }
 0x204   :  { %v1601_v29 = vld [vmem:[#allocation4 + $0x1a] sm:$0xff]  ;;  %v4534_v7 = vor.u32 %v5061_v43, %v4531_v13 }
 0x205   :  { %v1797_v26 = vld [vmem:[#allocation4 + $0x1e] sm:$0xff]  ;;  %1566 = vst [vmem:[#allocation4 + $0x28] sm:$0xff] %v1558_v59  ;;  %v1607_v34 = vpack.c.bf16 %v1601_v29, %v1600_v18  ;;  %v6537_v48 = vpack.c.bf16 %v1558_v59, %v1557_v56  ;;  %v4386_v56 = vor.u32 %v5090_v44, %v4385_v36  ;;  %2243 = vmatpush.bf16.msrb.mxu1 %v4462_v3  ;;  %v5066_v36 = vld [vmem:[%s7132_s5 + $0x144] sm:$0xf0]  ;;  %v4547_v44 = vld [vmem:[%s7132_s5 + $0x148] sm:$0xf0] }
 0x206   :  { %v1803_v50 = vpack.c.bf16 %v1797_v26, %v1796_v55  ;;  %2215 = vmatpush.bf16.msrb.mxu0 %v4450_v51  ;;  %v4546_v16 = vor.u32 %v5066_v36, %v4545_v28  ;;  %v4550_v0 = vor.u32 %v5065_v8, %v4547_v44  ;;  %v5060_v3 = vld [vmem:[%s7132_s5 + $0x114] sm:$0xf0] }
 0x207   :  { %1720 = vmatmul.bf16.gmra.mxu2 %v1607_v34  ;;  %1749 = vmatmul.bf16.gmra.mxu3 %v1607_v34  ;;  %v5072_v34 = vld [vmem:[%s7132_s5 + $0x174] sm:$0xf0] }
 0x208   :  { %1916 = vmatmul.bf16.gmra.mxu0 %v1803_v50  ;;  %1945 = vmatmul.bf16.gmra.mxu1 %v1803_v50  ;;  %v1362_v22 = vpop.f32.mrf.mxu3  ;;  %v5071_v50 = vld [vmem:[%s7132_s5 + $0x174] sm:$0xf]  ;;  %v5112_v43 = vld [vmem:[#allocation12 + $0x38] sm:$0xff] }
 0x209   :  { %v1363_v20 = vadd.f32 %v1362_v22, %v1333_v12  ;;  %2077 = vmatpush.bf16.msra.mxu2 %v4386_v56  ;;  %2244 = vmatpush.bf16.msrb.mxu1 %v4454_v4  ;;  %v4570_v12 = vor.u32 %v5072_v34, %v4569_v33  ;;  %v4574_v38 = vor.u32 %v5071_v50, %v4571_v21  ;;  %v4563_v22 = vld [vmem:[%s7132_s5 + $0x168] sm:$0xf0]  ;;  %v4537_v56 = vld [vmem:[%s7132_s5 + $0x130] sm:$0xf]  ;;  %v5120_v13 = vld [vmem:[#allocation12 + $0x78] sm:$0xff] }
 0x20a   :  { %v1550_v1 = vpop.f32.mrf.mxu1  ;;  %v4566_v2 = vor.u32 %v5069_v46, %v4563_v22  ;;  %v4538_v31 = vor.u32 %v5064_v45, %v4537_v56  ;;  %v1767_v34 = vld [vmem:[#allocation4 + $0x14] sm:$0xff]  ;;  %2747 = vmatpush.bf16.msra.mxu0 %v5112_v43  ;;  %v5108_v43 = vld [vmem:[#allocation12 + $0x18] sm:$0xff] }
 0x20b   :  { %v1559_v42 = vmax.f32 %v1363_v20, %v1549_v52  ;;  %v1551_v23 = vadd.f32 %v1550_v1, %v1521_v35  ;;  %2375 = vmatpush.bf16.msra.mxu3 %v4574_v38  ;;  %v4521_v35 = vld [vmem:[%s7132_s5 + $0x110] sm:$0xf] }
 0x20c   :  { %v1602_v6 = vld [vmem:[#allocation4 + $0x22] sm:$0xff]  ;;  %v4522_v41 = vor.u32 %v5060_v3, %v4521_v35  ;;  %v5127_v35 = vld [vmem:[#allocation13 + $0x30] sm:$0xff] }
 0x20d   :  { %1567 = vst [vmem:[#allocation4 + $0x30] sm:$0xff] %v1559_v42  ;;  %v6596_v5 = vpack.c.bf16 %v1559_v42, %v1558_v59  ;;  %v1798_v18 = vld [vmem:[#allocation4 + $0x26] sm:$0xff]  ;;  %2346 = vmatpush.bf16.msrb.mxu2 %v4570_v12  ;;  %2776 = vmatpush.bf16.msra.mxu1 %v5120_v13  ;;  %v5135_v3 = vld [vmem:[#allocation13 + $0x70] sm:$0xff] }
 0x20e   :  { %v1769_v38 = vld [vmem:[#allocation4 + $0x24] sm:$0xff] }
 0x20f   :  { %2376 = vmatpush.bf16.msra.mxu3 %v4566_v2  ;;  %v5116_v13 = vld [vmem:[#allocation12 + $0x58] sm:$0xff] }
 0x210   :  { %v1364_v61 = vpop.f32.mrf.mxu3 }
 0x211   :  { %v1365_v47 = vadd.f32 %v1364_v61, %v1335_v9  ;;  %2347 = vmatpush.bf16.msrb.mxu2 %v4562_v10  ;;  %v5058_v9 = vld [vmem:[%s7132_s5 + $0x104] sm:$0xf0] }
 0x213   :  { %v6613_v25 = vmax.f32 %v1365_v47, %v1551_v23  ;;  %v5057_v23 = vld [vmem:[%s7132_s5 + $0x104] sm:$0xf]  ;;  %v4515_v47 = vld [vmem:[%s7132_s5 + $0x108] sm:$0xf0] }
 0x214   :  { %v1603_v59 = vld [vmem:[#allocation4 + $0x2a] sm:$0xff]  ;;  %v4518_v4 = vor.u32 %v5057_v23, %v4515_v47 }
 0x215   :  { %v1799_v39 = vld [vmem:[#allocation4 + $0x2e] sm:$0xff]  ;;  %1568 = vst [vmem:[#allocation4 + $0x38] sm:$0xff] %v6613_v25  ;;  %v1608_v29 = vpack.c.bf16 %v1603_v59, %v1602_v6  ;;  %v6617_v26 = vpack.c.bf16 %v6613_v25, %v1559_v42  ;;  %v4558_v42 = vor.u32 %v5067_v11, %v4555_v32  ;;  %2348 = vmatpush.bf16.msrb.mxu2 %v4554_v49 }
 0x216   :  { %v1804_v55 = vpack.c.bf16 %v1799_v39, %v1798_v18  ;;  %v5208_v6 = vld [vmem:[#allocation2 + $0x40] sm:$0xff] }
 0x217   :  { %1725 = vmatmul.bf16.gmra.mxu2 %v1608_v29  ;;  %1754 = vmatmul.bf16.gmra.mxu3 %v1608_v29  ;;  %v1972_v59 = vpack.c.bf16 %v5208_v6, %v6613_v25  ;;  %v1766_v18 = vld [vmem:[#allocation4 + $0xc] sm:$0xff]  ;;  %v1765_v39 = vld [vmem:[#allocation4 + $0x4] sm:$0xff]  ;;  %v1768_v25 = vld [vmem:[#allocation4 + $0x1c] sm:$0xff] }
 0x218   :  { %1921 = vmatmul.bf16.gmra.mxu0 %v1804_v55  ;;  %1950 = vmatmul.bf16.gmra.mxu1 %v1804_v55  ;;  %v1773_v29 = vpack.c.bf16 %v1766_v18, %v1765_v39  ;;  %v1774_v50 = vpack.c.bf16 %v1768_v25, %v1767_v34  ;;  %v1770_v60 = vld [vmem:[#allocation4 + $0x2c] sm:$0xff] }
 0x219   :  { %2377 = vmatpush.bf16.msra.mxu3 %v4558_v42  ;;  %2349 = vmatpush.bf16.msrb.mxu2 %v4546_v16  ;;  %v1775_v46 = vpack.c.bf16 %v1770_v60, %v1769_v38  ;;  %v5118_v25 = vld [vmem:[#allocation12 + $0x68] sm:$0xff]  ;;  %v5125_v34 = vld [vmem:[#allocation13 + $0x20] sm:$0xff] }
 0x21a   :  { %v5109_v60 = vld [vmem:[#allocation12 + $0x20] sm:$0xff] }
 0x21b   :  { %v5117_v38 = vld [vmem:[#allocation12 + $0x60] sm:$0xff] }
 0x21c   :  { %v1604_v53 = vld [vmem:[#allocation4 + $0x32] sm:$0xff]  ;;  %v1605_v54 = vld [vmem:[#allocation4 + $0x3a] sm:$0xff] }
 0x21d   :  { %v1800_v52 = vld [vmem:[#allocation4 + $0x36] sm:$0xff]  ;;  %v1801_v20 = vld [vmem:[#allocation4 + $0x3e] sm:$0xff]  ;;  %v1609_v19 = vpack.c.bf16 %v1605_v54, %v1604_v53  ;;  %2378 = vmatpush.bf16.msra.mxu3 %v4550_v0  ;;  %2350 = vmatpush.bf16.msrb.mxu2 %v4538_v31 }
 0x21e   :  { %v1805_v14 = vpack.c.bf16 %v1801_v20, %v1800_v52  ;;  %v1771_v20 = vld [vmem:[#allocation4 + $0x34] sm:$0xff] }
 0x227   :  { %1730 = vmatmul.bf16.gmra.mxu2 %v1609_v19  ;;  %1759 = vmatmul.bf16.gmra.mxu3 %v1609_v19  ;;  %v1772_v19 = vld [vmem:[#allocation4 + $0x3c] sm:$0xff] }
 0x228   :  { %1926 = vmatmul.bf16.gmra.mxu0 %v1805_v14  ;;  %1955 = vmatmul.bf16.gmra.mxu1 %v1805_v14  ;;  %v1776_v15 = vpack.c.bf16 %v1772_v19, %v1771_v20 }
 0x237   :  { %2078 = vmatmul.bf16.vlgmr.msra.gmra.mxu2 %v6453_v40  ;;  %2107 = vmatmul.bf16.vlgmr.msrb.gmra.mxu3 %v6453_v40  ;;  %v4539_v40 = vld [vmem:[%s7132_s5 + $0x138] sm:$0xf0] }
 0x238   :  { %2216 = vmatmul.bf16.vlgmr.msrb.gmra.mxu0 %v6433_v17  ;;  %2245 = vmatmul.bf16.vlgmr.msrb.gmra.mxu1 %v6433_v17  ;;  %v4529_v17 = vld [vmem:[%s7132_s5 + $0x120] sm:$0xf]  ;;  %v4542_v1 = vor.u32 %v5063_v62, %v4539_v40  ;;  %v5128_v40 = vld [vmem:[#allocation13 + $0x38] sm:$0xff] }
 0x239   :  { %v4530_v58 = vor.u32 %v5062_v37, %v4529_v17  ;;  %v5136_v17 = vld [vmem:[#allocation13 + $0x78] sm:$0xff] }
 0x23a   :  { %2379 = vmatpush.bf16.msra.mxu3 %v4542_v1 }
 0x23b   :  { %2351 = vmatpush.bf16.msrb.mxu2 %v4530_v58 }
 0x23e   :  { %2380 = vmatpush.bf16.msra.mxu3 %v4534_v7 }
 0x23f   :  { %2352 = vmatpush.bf16.msrb.mxu2 %v4522_v41 }
 0x247   :  { %2083 = vmatmul.bf16.gmra.mxu2 %v6520_v24  ;;  %2112 = vmatmul.bf16.gmra.mxu3 %v6520_v24  ;;  %v4523_v24 = vld [vmem:[%s7132_s5 + $0x118] sm:$0xf0] }
 0x248   :  { %2221 = vmatmul.bf16.gmra.mxu0 %v6461_v30  ;;  %2250 = vmatmul.bf16.gmra.mxu1 %v6461_v30  ;;  %v4513_v30 = vld [vmem:[%s7132_s5 + $0x100] sm:$0xf]  ;;  %v4526_v61 = vor.u32 %v5059_v57, %v4523_v24  ;;  %v5111_v24 = vld [vmem:[#allocation12 + $0x30] sm:$0xff] }
 0x249   :  { %v4514_v51 = vor.u32 %v5058_v9, %v4513_v30  ;;  %v5119_v30 = vld [vmem:[#allocation12 + $0x70] sm:$0xff]  ;;  %v5126_v9 = vld [vmem:[#allocation13 + $0x28] sm:$0xff]  ;;  %2748 = vmatpush.bf16.msra.mxu0 %v5111_v24 }
 0x24a   :  { %2381 = vmatpush.bf16.msra.mxu3 %v4526_v61  ;;  %v5134_v61 = vld [vmem:[#allocation13 + $0x68] sm:$0xff]  ;;  %2777 = vmatpush.bf16.msra.mxu1 %v5119_v30  ;;  %v5107_v24 = vld [vmem:[#allocation12 + $0x10] sm:$0xff] }
 0x24b   :  { %2353 = vmatpush.bf16.msrb.mxu2 %v4514_v51  ;;  %v5115_v30 = vld [vmem:[#allocation12 + $0x50] sm:$0xff] }
 0x24e   :  { %2382 = vmatpush.bf16.msra.mxu3 %v4518_v4  ;;  %2778 = vmatpush.bf16.msra.mxu1 %v5118_v25  ;;  %v5130_v25 = vld [vmem:[#allocation13 + $0x48] sm:$0xff] }
 0x24f   :  { %2933 = vmatpush.bf16.msra.mxu2 %v5128_v40  ;;  %v5124_v40 = vld [vmem:[#allocation13 + $0x18] sm:$0xff] }
 0x252   :  { %2962 = vmatpush.bf16.msrb.mxu3 %v5136_v17  ;;  %2779 = vmatpush.bf16.msra.mxu1 %v5117_v38  ;;  %v5132_v17 = vld [vmem:[#allocation13 + $0x58] sm:$0xff]  ;;  %v5114_v38 = vld [vmem:[#allocation12 + $0x48] sm:$0xff] }
 0x253   :  { %2934 = vmatpush.bf16.msra.mxu2 %v5127_v35  ;;  %v5123_v35 = vld [vmem:[#allocation13 + $0x10] sm:$0xff] }
 0x256   :  { %2963 = vmatpush.bf16.msrb.mxu3 %v5135_v3  ;;  %2780 = vmatpush.bf16.msra.mxu1 %v5116_v13  ;;  %v5131_v3 = vld [vmem:[#allocation13 + $0x50] sm:$0xff]  ;;  %v5113_v13 = vld [vmem:[#allocation12 + $0x40] sm:$0xff] }
 0x257   :  { %2088 = vmatmul.bf16.gmra.mxu2 %v6596_v5  ;;  %2117 = vmatmul.bf16.gmra.mxu3 %v6596_v5 }
 0x258   :  { %2226 = vmatmul.bf16.gmra.mxu0 %v6537_v48  ;;  %2255 = vmatmul.bf16.gmra.mxu1 %v6537_v48 }
 0x259   :  { %2935 = vmatpush.bf16.msra.mxu2 %v5126_v9 }
 0x25a   :  { %2964 = vmatpush.bf16.msrb.mxu3 %v5134_v61  ;;  %2781 = vmatpush.bf16.msra.mxu1 %v5115_v30 }
 0x25d   :  { %2936 = vmatpush.bf16.msra.mxu2 %v5125_v34  ;;  %v5106_v34 = vld [vmem:[#allocation12 + $0x8] sm:$0xff] }
 0x25e   :  { %2782 = vmatpush.bf16.msra.mxu1 %v5114_v38 }
 0x261   :  { %2937 = vmatpush.bf16.msra.mxu2 %v5124_v40  ;;  %v5121_v40 = vld [vmem:[#allocation13] sm:$0xff] }
 0x262   :  { %2783 = vmatpush.bf16.msra.mxu1 %v5113_v13 }
 0x265   :  { %2938 = vmatpush.bf16.msra.mxu2 %v5123_v35  ;;  %v2436_v35 = vld [vmem:[%s7133_s6] sm:$0x3] }
 0x266   :  { %v6834_v38 = vperm.slane %v2436_v35, 0 }
 0x267   :  { %2093 = vmatmul.bf16.gmra.mxu2 %v1972_v59  ;;  %2122 = vmatmul.bf16.gmra.mxu3 %v1972_v59 }
 0x268   :  { %2231 = vmatmul.bf16.gmra.mxu0 %v6617_v26  ;;  %2260 = vmatmul.bf16.gmra.mxu1 %v6617_v26 }
 0x275   :  { %v6750_v2 = vpop.f32.mrf.mxu0  ;;  %v6752_v53 = vpop.f32.mrf.mxu1 }
 0x277   :  { %2354 = vmatmul.bf16.vlgmr.msrb.gmra.mxu2 %v1773_v29  ;;  %2383 = vmatmul.bf16.vlgmr.msra.gmra.mxu3 %v1773_v29  ;;  %v5110_v29 = vld [vmem:[#allocation12 + $0x28] sm:$0xff] }
 0x278   :  { %2749 = vmatpush.bf16.msra.mxu0 %v5110_v29  ;;  %v5122_v29 = vld [vmem:[#allocation13 + $0x8] sm:$0xff] }
 0x279   :  { %2939 = vmatpush.bf16.msra.mxu2 %v5122_v29 }
 0x27a   :  { %v6730_v55 = vpop.f32.mrf.mxu2  ;;  %v6732_v5 = vpop.f32.mrf.mxu3 }
 0x27c   :  { %2750 = vmatpush.bf16.msra.mxu0 %v5109_v60 }
 0x27d   :  { %v6758_v14 = vpop.f32.mrf.mxu0  ;;  %v6760_v27 = vpop.f32.mrf.mxu1  ;;  %2940 = vmatpush.bf16.msra.mxu2 %v5121_v40 }
 0x280   :  { %2751 = vmatpush.bf16.msra.mxu0 %v5108_v43  ;;  %v5105_v43 = vld [vmem:[#allocation12] sm:$0xff] }
 0x282   :  { %v6734_v33 = vpop.f32.mrf.mxu2  ;;  %v6736_v48 = vpop.f32.mrf.mxu3 }
 0x284   :  { %2752 = vmatpush.bf16.msra.mxu0 %v5107_v24 }
 0x285   :  { %v6766_v32 = vpop.f32.mrf.mxu0  ;;  %v6768_v28 = vpop.f32.mrf.mxu1 }
 0x287   :  { %2359 = vmatmul.bf16.gmra.mxu2 %v1774_v50  ;;  %2388 = vmatmul.bf16.gmra.mxu3 %v1774_v50  ;;  %v5133_v50 = vld [vmem:[#allocation13 + $0x60] sm:$0xff] }
 0x288   :  { %2965 = vmatpush.bf16.msrb.mxu3 %v5133_v50  ;;  %2753 = vmatpush.bf16.msra.mxu0 %v5106_v34 }
 0x28a   :  { %v6738_v12 = vpop.f32.mrf.mxu2  ;;  %v6740_v26 = vpop.f32.mrf.mxu3 }
 0x28c   :  { %2966 = vmatpush.bf16.msrb.mxu3 %v5132_v17  ;;  %v5129_v17 = vld [vmem:[#allocation13 + $0x40] sm:$0xff]  ;;  %2754 = vmatpush.bf16.msra.mxu0 %v5105_v43 }
 0x28d   :  { %v6774_v8 = vpop.f32.mrf.mxu0  ;;  %v6776_v44 = vpop.f32.mrf.mxu1 }
 0x290   :  { %2967 = vmatpush.bf16.msrb.mxu3 %v5131_v3 }
 0x292   :  { %v6742_v21 = vpop.f32.mrf.mxu2  ;;  %v6744_v63 = vpop.f32.mrf.mxu3 }
 0x294   :  { %2968 = vmatpush.bf16.msrb.mxu3 %v5130_v25 }
 0x295   :  { %v6786_v62 = vpop.f32.mrf.mxu0  ;;  %v6788_v31 = vpop.f32.mrf.mxu1 }
 0x297   :  { %2364 = vmatmul.bf16.gmra.mxu2 %v1775_v46  ;;  %2393 = vmatmul.bf16.gmra.mxu3 %v1775_v46 }
 0x298   :  { %2969 = vmatpush.bf16.msrb.mxu3 %v5129_v17 }
 0x29a   :  { %v6746_v22 = vpop.f32.mrf.mxu2  ;;  %v6748_v10 = vpop.f32.mrf.mxu3 }
 0x29d   :  { %v6794_v58 = vpop.f32.mrf.mxu0  ;;  %v6796_v7 = vpop.f32.mrf.mxu1 }
 0x2a2   :  { %v6754_v54 = vpop.f32.mrf.mxu2  ;;  %v6756_v52 = vpop.f32.mrf.mxu3 }
 0x2a5   :  { %v6802_v23 = vpop.f32.mrf.mxu0  ;;  %v6804_v47 = vpop.f32.mrf.mxu1 }
 0x2a7   :  { %2369 = vmatmul.bf16.gmra.mxu2 %v1776_v15  ;;  %2398 = vmatmul.bf16.gmra.mxu3 %v1776_v15 }
 0x2aa   :  { %v6762_v11 = vpop.f32.mrf.mxu2  ;;  %v6764_v49 = vpop.f32.mrf.mxu3 }
 0x2ad   :  { %v6810_v6 = vpop.f32.mrf.mxu0  ;;  %v6812_v59 = vpop.f32.mrf.mxu1 }
 0x2b2   :  { %v6770_v36 = vpop.f32.mrf.mxu2  ;;  %v6772_v42 = vpop.f32.mrf.mxu3 }
 0x2b3   :  { %7143 = vst [vmem:[#allocation20_spill] sm:$0xff] %v6770_v36 }
 0x2b4   :  { %7144 = vst [vmem:[#allocation21_spill] sm:$0xff] %v6772_v42  ;;  %v6837_v42 = vperm.slane %v2436_v35, 1 }
 0x2b5   :  { %v2217_v19 = vpop.f32.mrf.mxu0  ;;  %v2246_v15 = vpop.f32.mrf.mxu1 }
 0x2b6   :  { %v2218_v29 = vadd.f32 %v2217_v19, %v6730_v55  ;;  %v2247_v25 = vadd.f32 %v2246_v15, %v6732_v5 }
 0x2ba   :  { %v6778_v16 = vpop.f32.mrf.mxu2  ;;  %v6780_v0 = vpop.f32.mrf.mxu3 }
 0x2bd   :  { %v2219_v50 = vpop.f32.mrf.mxu0  ;;  %v2248_v60 = vpop.f32.mrf.mxu1 }
 0x2be   :  { %v2220_v43 = vadd.f32 %v2219_v50, %v6734_v33  ;;  %v2249_v13 = vadd.f32 %v2248_v60, %v6736_v48 }
 0x2c2   :  { %v6782_v56 = vpop.f32.mrf.mxu2  ;;  %v6784_v45 = vpop.f32.mrf.mxu3 }
 0x2c5   :  { %v2222_v40 = vpop.f32.mrf.mxu0  ;;  %v2251_v17 = vpop.f32.mrf.mxu1 }
 0x2ca   :  { %v6790_v37 = vpop.f32.mrf.mxu2  ;;  %v6792_v1 = vpop.f32.mrf.mxu3 }
 0x2d2   :  { %v6798_v57 = vpop.f32.mrf.mxu2  ;;  %v6800_v41 = vpop.f32.mrf.mxu3 }
 0x2da   :  { %v6806_v51 = vpop.f32.mrf.mxu2  ;;  %v6808_v4 = vpop.f32.mrf.mxu3 }
 0x2e2   :  { %v6814_v18 = vpop.f32.mrf.mxu2  ;;  %v6816_v39 = vpop.f32.mrf.mxu3 }
 0x2ea   :  { %v6818_v46 = vpop.f32.mrf.mxu2  ;;  %v6820_v20 = vpop.f32.mrf.mxu3 }
 0x2f2   :  { %v6822_v9 = vpop.f32.mrf.mxu2  ;;  %v6824_v61 = vpop.f32.mrf.mxu3 }
 0x2f3   :  { %7145 = vst [vmem:[#allocation22_spill] sm:$0xff] %v6822_v9 }
 0x2f4   :  { %7146 = vst [vmem:[#allocation23_spill] sm:$0xff] %v6824_v61 }
 0x2fa   :  { %v2355_v9 = vpop.f32.mrf.mxu2  ;;  %v2384_v3 = vpop.f32.mrf.mxu3 }
 0x2fb   :  { %v2356_v24 = vadd.f32 %v2355_v9, %v6750_v2  ;;  %v2385_v30 = vadd.f32 %v2384_v3, %v6752_v53 }
 0x2fd   :  { %v2404_v34 = vadd.f32 %v2356_v24, %v6778_v16  ;;  %v2405_v61 = vadd.f32 %v2385_v30, %v6780_v0  ;;  %v2224_v24 = vpop.f32.mrf.mxu0  ;;  %v2253_v30 = vpop.f32.mrf.mxu1 }
 0x2ff   :  { %v2420_v36 = vadd.f32 %v2404_v34, %v2218_v29  ;;  %v2421_v2 = vadd.f32 %v2405_v61, %v2247_v25 }
 0x301   :  { %v2442_v53 = vadd.f32 %v6834_v38, %v2420_v36  ;;  %v6841_v9 = vadd.f32 %v6837_v42, %v2421_v2 }
 0x302   :  { %v2357_v55 = vpop.f32.mrf.mxu2  ;;  %v2386_v19 = vpop.f32.mrf.mxu3 }
 0x303   :  { %v2458_v5 = vmax.f32 %v2442_v53, 0.0  ;;  %v2459_v16 = vmax.f32 %v6841_v9, 0.0  ;;  %v2358_v15 = vadd.f32 %v2357_v55, %v6758_v14  ;;  %v2387_v0 = vadd.f32 %v2386_v19, %v6760_v27 }
 0x305   :  { %2474 = vst [vmem:[#allocation5 + $0x88] sm:$0xff] %v2458_v5  ;;  %v2406_v61 = vadd.f32 %v2358_v15, %v6782_v56  ;;  %v2407_v36 = vadd.f32 %v2387_v0, %v6784_v45  ;;  %v2223_v56 = vadd.f32 %v2222_v40, %v6738_v12  ;;  %v2252_v45 = vadd.f32 %v2251_v17, %v6740_v26  ;;  %v2256_v40 = vpop.f32.mrf.mxu1 }
 0x306   :  { %2475 = vst [vmem:[#allocation5 + $0x48] sm:$0xff] %v2459_v16 }
 0x307   :  { %v2422_v35 = vadd.f32 %v2406_v61, %v2220_v43  ;;  %v2423_v3 = vadd.f32 %v2407_v36, %v2249_v13 }
 0x309   :  { %v2444_v29 = vadd.f32 %v6834_v38, %v2422_v35  ;;  %v2445_v14 = vadd.f32 %v6837_v42, %v2423_v3  ;;  %v2225_v35 = vadd.f32 %v2224_v24, %v6742_v21  ;;  %v2254_v3 = vadd.f32 %v2253_v30, %v6744_v63 }
 0x30a   :  { %v2360_v25 = vpop.f32.mrf.mxu2  ;;  %v2389_v27 = vpop.f32.mrf.mxu3 }
 0x30b   :  { %v2460_v34 = vmax.f32 %v2444_v29, 0.0  ;;  %v2461_v33 = vmax.f32 %v2445_v14, 0.0  ;;  %v2361_v48 = vadd.f32 %v2360_v25, %v6766_v32  ;;  %v2390_v50 = vadd.f32 %v2389_v27, %v6768_v28 }
 0x30c   :  { %v2508_v53 = vld [vmem:[#allocation5 + $0x88] sm:$0xfc] }
 0x30d   :  { %v2408_v60 = vadd.f32 %v2361_v48, %v6790_v37  ;;  %v2409_v2 = vadd.f32 %v2390_v50, %v6792_v1  ;;  %v2509_v9 = vld [vmem:[#allocation5 + $0x48] sm:$0xfc]  ;;  %v2545_v15 = vrot.slane %v2508_v53, 2  ;;  %v2546_v0 = vrot.slane %v2460_v34, 2  ;;  %v2227_v37 = vpop.f32.mrf.mxu0 }
 0x30e   :  { %v2548_v43 = vrot.slane %v2509_v9, 2  ;;  %v2549_v13 = vrot.slane %v2461_v33, 2 }
 0x30f   :  { %v2424_v55 = vadd.f32 %v2408_v60, %v2223_v56  ;;  %v2425_v19 = vadd.f32 %v2409_v2, %v2252_v45  ;;  %v2547_v29 = vsel %vm2544_vm1, %v2545_v15, %v2546_v0 }
 0x310   :  { %v2550_v14 = vsel %vm2544_vm1, %v2548_v43, %v2549_v13  ;;  %v2595_v24 = vmax.f32 %v2458_v5, %v2547_v29  ;;  %v2228_v43 = vadd.f32 %v2227_v37, %v6746_v22  ;;  %v2257_v5 = vadd.f32 %v2256_v40, %v6748_v10 }
 0x311   :  { %v6859_v32 = vadd.f32 %v6834_v38, %v2424_v55  ;;  %v6862_v28 = vadd.f32 %v6837_v42, %v2425_v19  ;;  %v2596_v56 = vmax.f32 %v2459_v16, %v2550_v14 }
 0x312   :  { %v2362_v12 = vpop.f32.mrf.mxu2  ;;  %v2391_v26 = vpop.f32.mrf.mxu3 }
 0x313   :  { %v2462_v1 = vmax.f32 %v6859_v32, 0.0  ;;  %v2463_v17 = vmax.f32 %v6862_v28, 0.0  ;;  %v2363_v61 = vadd.f32 %v2362_v12, %v6774_v8  ;;  %v2392_v36 = vadd.f32 %v2391_v26, %v6776_v44 }
 0x315   :  { %v2410_v25 = vadd.f32 %v2363_v61, %v6798_v57  ;;  %v2411_v27 = vadd.f32 %v2392_v36, %v6800_v41  ;;  %v2551_v48 = vrot.slane %v2462_v1, 2  ;;  %v2553_v8 = vrot.slane %v2463_v17, 2  ;;  %v2229_v16 = vpop.f32.mrf.mxu0 }
 0x317   :  { %v2426_v50 = vadd.f32 %v2410_v25, %v2225_v35  ;;  %v2427_v44 = vadd.f32 %v2411_v27, %v2254_v3  ;;  %v2552_v21 = vsel %vm2544_vm1, %v2546_v0, %v2551_v48  ;;  %v2554_v63 = vsel %vm2544_vm1, %v2549_v13, %v2553_v8 }
 0x318   :  { %v2597_v30 = vmax.f32 %v2460_v34, %v2552_v21  ;;  %v2598_v45 = vmax.f32 %v2461_v33, %v2554_v63  ;;  %v2258_v34 = vpop.f32.mrf.mxu1  ;;  %v2230_v35 = vadd.f32 %v2229_v16, %v6754_v54 }
 0x319   :  { %v2448_v57 = vadd.f32 %v6834_v38, %v2426_v50  ;;  %v2449_v41 = vadd.f32 %v6837_v42, %v2427_v44  ;;  %v2259_v3 = vadd.f32 %v2258_v34, %v6756_v52 }
 0x31a   :  { %v2365_v60 = vpop.f32.mrf.mxu2  ;;  %v2394_v2 = vpop.f32.mrf.mxu3  ;;  %v2611_v53 = vpack.c.bf16 %v2597_v30, %v2595_v24  ;;  %v2612_v9 = vpack.c.bf16 %v2598_v45, %v2596_v56 }
 0x31b   :  { %v2464_v55 = vmax.f32 %v2448_v57, 0.0  ;;  %v2465_v19 = vmax.f32 %v2449_v41, 0.0  ;;  %v2366_v15 = vadd.f32 %v2365_v60, %v6786_v62  ;;  %v2395_v0 = vadd.f32 %v2394_v2, %v6788_v31 }
 0x31c   :  { %2755 = vmatmul.bf16.vlgmr.msra.gmra.mxu0 %v2611_v53  ;;  %2784 = vmatmul.bf16.vlgmr.msra.gmra.mxu1 %v2612_v9 }
 0x31d   :  { %v2412_v33 = vadd.f32 %v2366_v15, %v6806_v51  ;;  %v2413_v13 = vadd.f32 %v2395_v0, %v6808_v4  ;;  %2941 = vmatmul.bf16.vlgmr.msra.gmra.mxu2 %v2611_v53  ;;  %2970 = vmatmul.bf16.vlgmr.msrb.gmra.mxu3 %v2612_v9  ;;  %v2555_v61 = vrot.slane %v2464_v55, 2  ;;  %v2557_v62 = vrot.slane %v2465_v19, 2  ;;  %v2232_v44 = vpop.f32.mrf.mxu0 }
 0x31f   :  { %v2428_v12 = vadd.f32 %v2412_v33, %v2228_v43  ;;  %v2429_v26 = vadd.f32 %v2413_v13, %v2257_v5  ;;  %v2556_v29 = vsel %vm2544_vm1, %v2551_v48, %v2555_v61  ;;  %v2558_v14 = vsel %vm2544_vm1, %v2553_v8, %v2557_v62 }
 0x320   :  { %v2599_v8 = vmax.f32 %v2462_v1, %v2556_v29  ;;  %v2233_v1 = vadd.f32 %v2232_v44, %v6762_v11  ;;  %v5143_v11 = vld [vmem:[%s7136_s9 + $0x30] sm:$0xff] }
 0x321   :  { %v6889_v31 = vadd.f32 %v6834_v38, %v2428_v12  ;;  %v6892_v22 = vadd.f32 %v6837_v42, %v2429_v26  ;;  %v5142_v12 = vld [vmem:[%s7136_s9 + $0x28] sm:$0xff] }
 0x322   :  { %v2367_v37 = vpop.f32.mrf.mxu2  ;;  %v2396_v10 = vpop.f32.mrf.mxu3  ;;  %v7147_v26 = vld [vmem:[#allocation20_spill] sm:$0xff] }
 0x323   :  { %v2466_v40 = vmax.f32 %v6889_v31, 0.0  ;;  %v2467_v51 = vmax.f32 %v6892_v22, 0.0  ;;  %v2368_v4 = vadd.f32 %v2367_v37, %v6794_v58  ;;  %v2397_v36 = vadd.f32 %v2396_v10, %v6796_v7  ;;  %v2261_v7 = vpop.f32.mrf.mxu1  ;;  %v2524_v31 = vld [vmem:[#allocation5 + $0x80] sm:$0x3] }
 0x324   :  { %v2262_v28 = vadd.f32 %v2261_v7, %v6764_v49  ;;  %v5141_v7 = vld [vmem:[%s7136_s9 + $0x20] sm:$0xff] }
 0x325   :  { %v2414_v25 = vadd.f32 %v2368_v4, %v6814_v18  ;;  %v2415_v27 = vadd.f32 %v2397_v36, %v6816_v39  ;;  %v2559_v50 = vrot.slane %v2466_v40, 2  ;;  %v2561_v58 = vrot.slane %v2467_v51, 2  ;;  %v2234_v49 = vpop.f32.mrf.mxu0  ;;  %v7149_v36 = vld [vmem:[#allocation22_spill] sm:$0xff] }
 0x326   :  { %v2600_v39 = vmax.f32 %v2463_v17, %v2558_v14 }
 0x327   :  { %v2430_v21 = vadd.f32 %v2414_v25, %v2230_v35  ;;  %v2431_v54 = vadd.f32 %v2415_v27, %v2259_v3  ;;  %v2560_v52 = vsel %vm2544_vm1, %v2555_v61, %v2559_v50  ;;  %v2562_v48 = vsel %vm2544_vm1, %v2557_v62, %v2561_v58  ;;  %v7148_v62 = vld [vmem:[#allocation21_spill] sm:$0xff]  ;;  %v7150_v3 = vld [vmem:[#allocation23_spill] sm:$0xff] }
 0x328   :  { %v2601_v18 = vmax.f32 %v2464_v55, %v2560_v52  ;;  %v2602_v63 = vmax.f32 %v2465_v19, %v2562_v48  ;;  %v5144_v55 = vld [vmem:[%s7136_s9 + $0x38] sm:$0xff]  ;;  %v2235_v61 = vadd.f32 %v2234_v49, %v7147_v26  ;;  %v5153_v26 = vld [vmem:[%s7136_s9 + $0x80] sm:$0xff] }
 0x329   :  { %v2452_v24 = vadd.f32 %v6834_v38, %v2430_v21  ;;  %v2453_v30 = vadd.f32 %v6837_v42, %v2431_v54  ;;  %3375 = vmatpush.bf16.msrb.mxu0 %v5144_v55  ;;  %v5152_v55 = vld [vmem:[%s7136_s9 + $0x78] sm:$0xff] }
 0x32a   :  { %v2370_v56 = vpop.f32.mrf.mxu2  ;;  %v2399_v45 = vpop.f32.mrf.mxu3  ;;  %v2613_v57 = vpack.c.bf16 %v2601_v18, %v2599_v8  ;;  %v2614_v41 = vpack.c.bf16 %v2602_v63, %v2600_v39  ;;  %3398 = vmatpush.bf16.msrb.mxu1 %v5152_v55  ;;  %v5168_v49 = vld [vmem:[%s7136_s9 + $0xf8] sm:$0xff] }
 0x32b   :  { %v2468_v60 = vmax.f32 %v2452_v24, 0.0  ;;  %v2469_v2 = vmax.f32 %v2453_v30, 0.0  ;;  %v2371_v53 = vadd.f32 %v2370_v56, %v6802_v23  ;;  %v2400_v32 = vadd.f32 %v2399_v45, %v6804_v47  ;;  %v2263_v0 = vpop.f32.mrf.mxu1  ;;  %v5140_v24 = vld [vmem:[%s7136_s9 + $0x18] sm:$0xff]  ;;  %3444 = vmatpush.bf16.msra.mxu3 %v5168_v49 }
 0x32c   :  { %2760 = vmatmul.bf16.gmra.mxu0 %v2613_v57  ;;  %2789 = vmatmul.bf16.gmra.mxu1 %v2614_v41  ;;  %v2264_v37 = vadd.f32 %v2263_v0, %v7148_v62  ;;  %v5156_v0 = vld [vmem:[%s7136_s9 + $0x98] sm:$0xff]  ;;  %v5146_v62 = vld [vmem:[%s7136_s9 + $0x48] sm:$0xff] }
 0x32d   :  { %v2416_v17 = vadd.f32 %v2371_v53, %v6818_v46  ;;  %v2417_v9 = vadd.f32 %v2400_v32, %v6820_v20  ;;  %2946 = vmatmul.bf16.gmra.mxu2 %v2613_v57  ;;  %2975 = vmatmul.bf16.gmra.mxu3 %v2614_v41  ;;  %v2563_v47 = vrot.slane %v2468_v60, 2  ;;  %v2565_v15 = vrot.slane %v2469_v2, 2 }
 0x32e   :  { %3376 = vmatpush.bf16.msrb.mxu0 %v5143_v11  ;;  %v5157_v11 = vld [vmem:[%s7136_s9 + $0xa0] sm:$0xff] }
 0x32f   :  { %v2432_v19 = vadd.f32 %v2416_v17, %v2233_v1  ;;  %v2433_v23 = vadd.f32 %v2417_v9, %v2262_v28  ;;  %v2564_v10 = vsel %vm2544_vm1, %v2559_v50, %v2563_v47  ;;  %v2566_v4 = vsel %vm2544_vm1, %v2561_v58, %v2565_v15  ;;  %v5160_v28 = vld [vmem:[%s7136_s9 + $0xb8] sm:$0xff]  ;;  %v5139_v17 = vld [vmem:[%s7136_s9 + $0x10] sm:$0xff] }
 0x330   :  { %v2603_v50 = vmax.f32 %v2466_v40, %v2564_v10  ;;  %v2604_v21 = vmax.f32 %v2467_v51, %v2566_v4  ;;  %v2525_v40 = vld [vmem:[#allocation5] sm:$0x3]  ;;  %v2575_v51 = vrot.slane %v2524_v31, 2  ;;  %3421 = vmatpush.bf16.msrb.mxu2 %v5160_v28  ;;  %v5159_v9 = vld [vmem:[%s7136_s9 + $0xb0] sm:$0xff] }
 0x331   :  { %v2454_v46 = vadd.f32 %v6834_v38, %v2432_v19  ;;  %v2455_v20 = vadd.f32 %v6837_v42, %v2433_v23  ;;  %v2577_v30 = vrot.slane %v2525_v40, 2  ;;  %v5158_v19 = vld [vmem:[%s7136_s9 + $0xa8] sm:$0xff]  ;;  %v5151_v23 = vld [vmem:[%s7136_s9 + $0x70] sm:$0xff] }
 0x332   :  { %v2372_v43 = vpop.f32.mrf.mxu2  ;;  %v2401_v5 = vpop.f32.mrf.mxu3  ;;  %3377 = vmatpush.bf16.msrb.mxu0 %v5142_v12  ;;  %3399 = vmatpush.bf16.msrb.mxu1 %v5151_v23  ;;  %v5165_v12 = vld [vmem:[%s7136_s9 + $0xe0] sm:$0xff] }
 0x333   :  { %v2470_v16 = vmax.f32 %v2454_v46, 0.0  ;;  %v2471_v34 = vmax.f32 %v2455_v20, 0.0  ;;  %v2373_v33 = vadd.f32 %v2372_v43, %v6810_v6  ;;  %v2402_v13 = vadd.f32 %v2401_v5, %v6812_v59  ;;  %v5149_v46 = vld [vmem:[%s7136_s9 + $0x60] sm:$0xff]  ;;  %v5167_v20 = vld [vmem:[%s7136_s9 + $0xf0] sm:$0xff] }
 0x334   :  { %3422 = vmatpush.bf16.msrb.mxu2 %v5159_v9  ;;  %v5137_v43 = vld [vmem:[%s7136_s9] sm:$0xff]  ;;  %v5155_v5 = vld [vmem:[%s7136_s9 + $0x90] sm:$0xff]  ;;  %3445 = vmatpush.bf16.msra.mxu3 %v5167_v20 }
 0x335   :  { %v2418_v35 = vadd.f32 %v2373_v33, %v7149_v36  ;;  %v2419_v29 = vadd.f32 %v2402_v13, %v7150_v3  ;;  %v2567_v6 = vrot.slane %v2470_v16, 2  ;;  %v2569_v14 = vrot.slane %v2471_v34, 2  ;;  %v5154_v33 = vld [vmem:[%s7136_s9 + $0x88] sm:$0xff]  ;;  %v5147_v13 = vld [vmem:[%s7136_s9 + $0x50] sm:$0xff]  ;;  %v5145_v36 = vld [vmem:[%s7136_s9 + $0x40] sm:$0xff] }
 0x336   :  { %3378 = vmatpush.bf16.msrb.mxu0 %v5141_v7  ;;  %v5162_v3 = vld [vmem:[%s7136_s9 + $0xc8] sm:$0xff]  ;;  %v5161_v7 = vld [vmem:[%s7136_s9 + $0xc0] sm:$0xff] }
 0x337   :  { %v2434_v59 = vadd.f32 %v2418_v35, %v2235_v61  ;;  %v2435_v25 = vadd.f32 %v2419_v29, %v2264_v37  ;;  %v2568_v27 = vsel %vm2544_vm1, %v2563_v47, %v2567_v6  ;;  %v2570_v44 = vsel %vm2544_vm1, %v2565_v15, %v2569_v14  ;;  %v5138_v47 = vld [vmem:[%s7136_s9 + $0x8] sm:$0xff]  ;;  %v5176_v61 = vld [vmem:[%s7136_s9 + $0x138] sm:$0xff]  ;;  %v5163_v35 = vld [vmem:[%s7136_s9 + $0xd0] sm:$0xff] }
 0x338   :  { %v2605_v58 = vmax.f32 %v2468_v60, %v2568_v27  ;;  %v2606_v54 = vmax.f32 %v2469_v2, %v2570_v44  ;;  %3423 = vmatpush.bf16.msrb.mxu2 %v5158_v19  ;;  %v5150_v15 = vld [vmem:[%s7136_s9 + $0x68] sm:$0xff]  ;;  %v5164_v37 = vld [vmem:[%s7136_s9 + $0xd8] sm:$0xff]  ;;  %v5175_v29 = vld [vmem:[%s7136_s9 + $0x130] sm:$0xff] }
 0x339   :  { %v2456_v52 = vadd.f32 %v6834_v38, %v2434_v59  ;;  %v2457_v48 = vadd.f32 %v6837_v42, %v2435_v25  ;;  %3400 = vmatpush.bf16.msrb.mxu1 %v5150_v15  ;;  %v5171_v19 = vld [vmem:[%s7136_s9 + $0x110] sm:$0xff] }
 0x33a   :  { %v2615_v8 = vpack.c.bf16 %v2605_v58, %v2603_v50  ;;  %v2616_v18 = vpack.c.bf16 %v2606_v54, %v2604_v21  ;;  %3379 = vmatpush.bf16.msrb.mxu0 %v5140_v24  ;;  %v5174_v58 = vld [vmem:[%s7136_s9 + $0x128] sm:$0xff]  ;;  %v5173_v24 = vld [vmem:[%s7136_s9 + $0x120] sm:$0xff] }
 0x33b   :  { %v2472_v39 = vmax.f32 %v2456_v52, 0.0  ;;  %v2473_v63 = vmax.f32 %v2457_v48, 0.0 }
 0x33c   :  { %2765 = vmatmul.bf16.gmra.mxu0 %v2615_v8  ;;  %2794 = vmatmul.bf16.gmra.mxu1 %v2616_v18 }
 0x33d   :  { %2951 = vmatmul.bf16.gmra.mxu2 %v2615_v8  ;;  %2980 = vmatmul.bf16.gmra.mxu3 %v2616_v18  ;;  %v2571_v22 = vrot.slane %v2472_v39, 2  ;;  %v2573_v38 = vrot.slane %v2473_v63, 2 }
 0x33e   :  { %3380 = vmatpush.bf16.msrb.mxu0 %v5139_v17  ;;  %3424 = vmatpush.bf16.msrb.mxu2 %v5157_v11 }
 0x33f   :  { %v2572_v42 = vsel %vm2544_vm1, %v2567_v6, %v2571_v22  ;;  %v2576_v56 = vsel %vm2544_vm1, %v2571_v22, %v2575_v51  ;;  %v2574_v45 = vsel %vm2544_vm1, %v2569_v14, %v2573_v38  ;;  %v2578_v57 = vsel %vm2544_vm1, %v2573_v38, %v2577_v30  ;;  %3401 = vmatpush.bf16.msrb.mxu1 %v5149_v46 }
 0x340   :  { %v2607_v41 = vmax.f32 %v2470_v16, %v2572_v42  ;;  %v2609_v60 = vmax.f32 %v2472_v39, %v2576_v56  ;;  %v2608_v2 = vmax.f32 %v2471_v34, %v2574_v45  ;;  %v2610_v53 = vmax.f32 %v2473_v63, %v2578_v57  ;;  %v5148_v16 = vld [vmem:[%s7136_s9 + $0x58] sm:$0xff]  ;;  %v5166_v34 = vld [vmem:[%s7136_s9 + $0xe8] sm:$0xff] }
 0x341   :  { %3446 = vmatpush.bf16.msra.mxu3 %v5166_v34  ;;  %v5172_v45 = vld [vmem:[%s7136_s9 + $0x118] sm:$0xff] }
 0x342   :  { %v2617_v32 = vpack.c.bf16 %v2609_v60, %v2607_v41  ;;  %v2618_v1 = vpack.c.bf16 %v2610_v53, %v2608_v2  ;;  %3381 = vmatpush.bf16.msrb.mxu0 %v5138_v47  ;;  %3425 = vmatpush.bf16.msrb.mxu2 %v5156_v0 }
 0x343   :  { %3402 = vmatpush.bf16.msrb.mxu1 %v5148_v16  ;;  %v5170_v16 = vld [vmem:[%s7136_s9 + $0x108] sm:$0xff] }
 0x345   :  { %3447 = vmatpush.bf16.msra.mxu3 %v5165_v12 }
 0x346   :  { %3382 = vmatpush.bf16.msrb.mxu0 %v5137_v43  ;;  %3426 = vmatpush.bf16.msrb.mxu2 %v5155_v5 }
 0x347   :  { %3403 = vmatpush.bf16.msrb.mxu1 %v5147_v13 }
 0x349   :  { %3448 = vmatpush.bf16.msra.mxu3 %v5164_v37 }
 0x34a   :  { %3427 = vmatpush.bf16.msrb.mxu2 %v5154_v33  ;;  %3467 = vmatpush.bf16.msra.mxu0 %v5176_v61 }
 0x34b   :  { %3404 = vmatpush.bf16.msrb.mxu1 %v5146_v62 }
 0x34c   :  { %2770 = vmatmul.bf16.gmra.mxu0 %v2617_v32  ;;  %2799 = vmatmul.bf16.gmra.mxu1 %v2618_v1 }
 0x34d   :  { %2956 = vmatmul.bf16.gmra.mxu2 %v2617_v32  ;;  %2985 = vmatmul.bf16.gmra.mxu3 %v2618_v1 }
 0x34e   :  { %3428 = vmatpush.bf16.msrb.mxu2 %v5153_v26  ;;  %3449 = vmatpush.bf16.msra.mxu3 %v5163_v35  ;;  %v5169_v26 = vld [vmem:[%s7136_s9 + $0x100] sm:$0xff] }
 0x34f   :  { %3405 = vmatpush.bf16.msrb.mxu1 %v5145_v36  ;;  %3468 = vmatpush.bf16.msra.mxu0 %v5175_v29 }
 0x352   :  { %3450 = vmatpush.bf16.msra.mxu3 %v5162_v3 }
 0x353   :  { %3469 = vmatpush.bf16.msra.mxu0 %v5174_v58 }
 0x356   :  { %3451 = vmatpush.bf16.msra.mxu3 %v5161_v7 }
 0x357   :  { %3470 = vmatpush.bf16.msra.mxu0 %v5173_v24  ;;  %v7067_v24 = vld [vmem:[#allocation2 + $0x40] sm:$0xff] }
 0x35b   :  { %3471 = vmatpush.bf16.msra.mxu0 %v5172_v45 }
 0x35f   :  { %3472 = vmatpush.bf16.msra.mxu0 %v5171_v19 }
 0x363   :  { %3473 = vmatpush.bf16.msra.mxu0 %v5170_v16 }
 0x367   :  { %3474 = vmatpush.bf16.msra.mxu0 %v5169_v26 }
 0x399   :  { %v2756_v10 = vpop.f32.mrf.mxu0  ;;  %v2785_v4 = vpop.f32.mrf.mxu1 }
 0x39a   :  { %v2786_v59 = vadd.f32 %v2785_v4, %v2756_v10 }
 0x3a0   :  { %v2942_v6 = vpop.f32.mrf.mxu2  ;;  %v2971_v14 = vpop.f32.mrf.mxu3 }
 0x3a1   :  { %v2972_v25 = vadd.f32 %v2971_v14, %v2942_v6  ;;  %v2758_v27 = vpop.f32.mrf.mxu0  ;;  %v2787_v44 = vpop.f32.mrf.mxu1 }
 0x3a2   :  { %v2788_v52 = vadd.f32 %v2787_v44, %v2758_v27 }
 0x3a3   :  { %v2991_v50 = vmax.f32 %v2786_v59, %v2972_v25 }
 0x3a5   :  { %2999 = vst [vmem:[#allocation6] sm:$0xff] %v2991_v50 }
 0x3a8   :  { %v2944_v21 = vpop.f32.mrf.mxu2  ;;  %v2973_v54 = vpop.f32.mrf.mxu3 }
 0x3a9   :  { %v2974_v48 = vadd.f32 %v2973_v54, %v2944_v21  ;;  %v2761_v8 = vpop.f32.mrf.mxu0  ;;  %v2790_v18 = vpop.f32.mrf.mxu1 }
 0x3aa   :  { %v2791_v22 = vadd.f32 %v2790_v18, %v2761_v8 }
 0x3ab   :  { %v2992_v39 = vmax.f32 %v2788_v52, %v2974_v48 }
 0x3ad   :  { %3000 = vst [vmem:[#allocation6 + $0x8] sm:$0xff] %v2992_v39  ;;  %v3035_v63 = vpack.c.bf16 %v2992_v39, %v2991_v50 }
 0x3af   :  { %3383 = vmatmul.bf16.vlgmr.msrb.gmra.mxu0 %v3035_v63 }
 0x3b0   :  { %v2947_v31 = vpop.f32.mrf.mxu2  ;;  %v2976_v40 = vpop.f32.mrf.mxu3 }
 0x3b1   :  { %v2977_v51 = vadd.f32 %v2976_v40, %v2947_v31  ;;  %v2763_v38 = vpop.f32.mrf.mxu0  ;;  %v2792_v30 = vpop.f32.mrf.mxu1 }
 0x3b2   :  { %v2793_v60 = vadd.f32 %v2792_v30, %v2763_v38 }
 0x3b3   :  { %v2993_v42 = vmax.f32 %v2791_v22, %v2977_v51  ;;  %v3026_v51 = vld [vmem:[#allocation6 + $0x44] sm:$0xff] }
 0x3b4   :  { %v3017_v28 = vld [vmem:[#allocation6 + $0x4] sm:$0xff] }
 0x3b5   :  { %3001 = vst [vmem:[#allocation6 + $0x10] sm:$0xff] %v2993_v42  ;;  %v3037_v56 = vpack.c.bf16 %v2993_v42, %v2992_v39 }
 0x3b7   :  { %3429 = vmatmul.bf16.vlgmr.msrb.gmra.mxu2 %v3037_v56 }
 0x3b8   :  { %v2949_v57 = vpop.f32.mrf.mxu2  ;;  %v2978_v41 = vpop.f32.mrf.mxu3 }
 0x3b9   :  { %v2979_v2 = vadd.f32 %v2978_v41, %v2949_v57  ;;  %v2766_v53 = vpop.f32.mrf.mxu0  ;;  %v2795_v32 = vpop.f32.mrf.mxu1 }
 0x3ba   :  { %v2796_v47 = vadd.f32 %v2795_v32, %v2766_v53 }
 0x3bb   :  { %v2994_v1 = vmax.f32 %v2793_v60, %v2979_v2  ;;  %v3516_v60 = vld [vmem:[%s7138_s11 + $0x38] sm:$0xf] }
 0x3bc   :  { %v3018_v17 = vld [vmem:[#allocation6 + $0xc] sm:$0xff]  ;;  %v3550_v2 = vunpack.c.l.b16 %v3516_v60 }
 0x3bd   :  { %3002 = vst [vmem:[#allocation6 + $0x18] sm:$0xff] %v2994_v1  ;;  %v3036_v9 = vpack.c.bf16 %v3018_v17, %v3017_v28  ;;  %v7055_v55 = vpack.c.bf16 %v2994_v1, %v2993_v42 }
 0x3be   :  { %v3558_v32 = vpack.c.b16 %v3550_v2, %v3550_v2 }
 0x3bf   :  { %3406 = vmatmul.bf16.vlgmr.msrb.gmra.mxu1 %v3036_v9  ;;  %3387 = vmatmul.bf16.gmra.mxu0 %v7055_v55 }
 0x3c0   :  { %v2952_v23 = vpop.f32.mrf.mxu2  ;;  %v2981_v11 = vpop.f32.mrf.mxu3  ;;  %v3572_v28 = vsel %vm3570_vm2, %v3558_v32, 0  ;;  %v3054_v32 = vpack.c.bf16 %v7067_v24, %v7067_v24 }
 0x3c1   :  { %v2982_v15 = vadd.f32 %v2981_v11, %v2952_v23  ;;  %v2768_v49 = vpop.f32.mrf.mxu0  ;;  %v2797_v0 = vpop.f32.mrf.mxu1  ;;  %3574 = vmatpush.bf16.msra.mxu1 %v3572_v28 }
 0x3c2   :  { %v2798_v13 = vadd.f32 %v2797_v0, %v2768_v49  ;;  %v5182_v49 = vld [vmem:[%s7138_s11 + $0x28] sm:$0xff] }
 0x3c3   :  { %v2995_v46 = vmax.f32 %v2796_v47, %v2982_v15 }
 0x3c4   :  { %v3019_v20 = vld [vmem:[#allocation6 + $0x14] sm:$0xff] }
 0x3c5   :  { %3003 = vst [vmem:[#allocation6 + $0x20] sm:$0xff] %v2995_v46  ;;  %v3038_v43 = vpack.c.bf16 %v3019_v20, %v3018_v17  ;;  %v3042_v5 = vpack.c.bf16 %v2995_v46, %v2994_v1 }
 0x3c7   :  { %3452 = vmatmul.bf16.vlgmr.msra.gmra.mxu3 %v3038_v43  ;;  %3433 = vmatmul.bf16.gmra.mxu2 %v3042_v5  ;;  %v5181_v5 = vld [vmem:[%s7138_s11 + $0x20] sm:$0xff] }
 0x3c8   :  { %v2954_v34 = vpop.f32.mrf.mxu2  ;;  %v2983_v33 = vpop.f32.mrf.mxu3 }
 0x3c9   :  { %v2984_v12 = vadd.f32 %v2983_v33, %v2954_v34  ;;  %v2771_v62 = vpop.f32.mrf.mxu0  ;;  %v2800_v37 = vpop.f32.mrf.mxu1  ;;  %v5180_v33 = vld [vmem:[%s7138_s11 + $0x18] sm:$0xff] }
 0x3ca   :  { %v2801_v29 = vadd.f32 %v2800_v37, %v2771_v62  ;;  %v5179_v62 = vld [vmem:[%s7138_s11 + $0x10] sm:$0xff] }
 0x3cb   :  { %v2996_v61 = vmax.f32 %v2798_v13, %v2984_v12 }
 0x3cc   :  { %v3020_v10 = vld [vmem:[#allocation6 + $0x1c] sm:$0xff] }
 0x3cd   :  { %3004 = vst [vmem:[#allocation6 + $0x28] sm:$0xff] %v2996_v61  ;;  %v3041_v4 = vpack.c.bf16 %v3020_v10, %v3019_v20  ;;  %v3045_v36 = vpack.c.bf16 %v2996_v61, %v2995_v46 }
 0x3cf   :  { %3410 = vmatmul.bf16.gmra.mxu1 %v3041_v4  ;;  %3390 = vmatmul.bf16.gmra.mxu0 %v3045_v36  ;;  %v5178_v4 = vld [vmem:[%s7138_s11 + $0x8] sm:$0xff] }
 0x3d0   :  { %v2957_v35 = vpop.f32.mrf.mxu2  ;;  %v2986_v3 = vpop.f32.mrf.mxu3 }
 0x3d1   :  { %v2987_v6 = vadd.f32 %v2986_v3, %v2957_v35  ;;  %v2773_v44 = vpop.f32.mrf.mxu0  ;;  %v2802_v7 = vpop.f32.mrf.mxu1 }
 0x3d2   :  { %v2803_v21 = vadd.f32 %v2802_v7, %v2773_v44  ;;  %v3599_v44 = vld [vmem:[%s7140_s13 + $0x28] sm:$0x3] }
 0x3d3   :  { %v2997_v14 = vmax.f32 %v2801_v29, %v2987_v6  ;;  %v3625_v7 = vunpack.c.l.b16 %v3599_v44 }
 0x3d4   :  { %v3021_v59 = vld [vmem:[#allocation6 + $0x24] sm:$0xff] }
 0x3d5   :  { %3005 = vst [vmem:[#allocation6 + $0x30] sm:$0xff] %v2997_v14  ;;  %v3043_v25 = vpack.c.bf16 %v3021_v59, %v3020_v10  ;;  %v3047_v27 = vpack.c.bf16 %v2997_v14, %v2996_v61 }
 0x3d7   :  { %3456 = vmatmul.bf16.gmra.mxu3 %v3043_v25  ;;  %3436 = vmatmul.bf16.gmra.mxu2 %v3047_v27 }
 0x3d8   :  { %v2959_v50 = vpop.f32.mrf.mxu2  ;;  %v2988_v58 = vpop.f32.mrf.mxu3 }
 0x3d9   :  { %v2989_v54 = vadd.f32 %v2988_v58, %v2959_v50  ;;  %v3631_v58 = vpack.c.b16 %v3625_v7, %v3625_v7 }
 0x3db   :  { %v2998_v52 = vmax.f32 %v2803_v21, %v2989_v54  ;;  %v3643_v54 = vsel %vm3641_vm3, %v3631_v58, 0 }
 0x3dc   :  { %v3022_v48 = vld [vmem:[#allocation6 + $0x2c] sm:$0xff]  ;;  %3647 = vmatpush.bf16.msra.mxu2 %v3643_v54 }
 0x3dd   :  { %3006 = vst [vmem:[#allocation6 + $0x38] sm:$0xff] %v2998_v52  ;;  %v3046_v8 = vpack.c.bf16 %v3022_v48, %v3021_v59  ;;  %v3050_v18 = vpack.c.bf16 %v2998_v52, %v2997_v14  ;;  %v3052_v31 = vpack.c.bf16 %v7067_v24, %v2998_v52  ;;  %v5177_v59 = vld [vmem:[%s7138_s11] sm:$0xff] }
 0x3de   :  { %v5188_v52 = vld [vmem:[%s7140_s13 + $0x20] sm:$0xff] }
 0x3df   :  { %3413 = vmatmul.bf16.gmra.mxu1 %v3046_v8  ;;  %3394 = vmatmul.bf16.gmra.mxu0 %v3050_v18  ;;  %v5187_v8 = vld [vmem:[%s7140_s13 + $0x18] sm:$0xff] }
 0x3e0   :  { %3648 = vmatpush.bf16.msra.mxu2 %v5188_v52 }
 0x3e4   :  { %v3023_v39 = vld [vmem:[#allocation6 + $0x34] sm:$0xff]  ;;  %v3024_v40 = vld [vmem:[#allocation6 + $0x3c] sm:$0xff]  ;;  %3649 = vmatpush.bf16.msra.mxu2 %v5187_v8 }
 0x3e5   :  { %v3048_v63 = vpack.c.bf16 %v3023_v39, %v3022_v48  ;;  %v3051_v22 = vpack.c.bf16 %v3024_v40, %v3023_v39  ;;  %v3053_v38 = vpack.c.bf16 %v3026_v51, %v3024_v40  ;;  %v5185_v40 = vld [vmem:[%s7140_s13 + $0x8] sm:$0xff] }
 0x3e7   :  { %3459 = vmatmul.bf16.gmra.mxu3 %v3048_v63  ;;  %3440 = vmatmul.bf16.gmra.mxu2 %v3052_v31  ;;  %v5186_v63 = vld [vmem:[%s7140_s13 + $0x10] sm:$0xff] }
 0x3e8   :  { %3650 = vmatpush.bf16.msra.mxu2 %v5186_v63 }
 0x3ec   :  { %3651 = vmatpush.bf16.msra.mxu2 %v5185_v40 }
 0x3ef   :  { %3417 = vmatmul.bf16.gmra.mxu1 %v3051_v22  ;;  %3475 = vmatmul.bf16.vlgmr.msra.gmra.mxu0 %v7055_v55  ;;  %v5183_v55 = vld [vmem:[%s7138_s11 + $0x30] sm:$0xff] }
 0x3f0   :  { %3575 = vmatpush.bf16.msra.mxu1 %v5183_v55 }
 0x3f4   :  { %3576 = vmatpush.bf16.msra.mxu1 %v5182_v49 }
 0x3f7   :  { %3463 = vmatmul.bf16.gmra.mxu3 %v3053_v38 }
 0x3f8   :  { %3577 = vmatpush.bf16.msra.mxu1 %v5181_v5 }
 0x3fc   :  { %3578 = vmatpush.bf16.msra.mxu1 %v5180_v33 }
 0x3ff   :  { %3479 = vmatmul.bf16.gmra.mxu0 %v3045_v36 }
 0x400   :  { %3579 = vmatpush.bf16.msra.mxu1 %v5179_v62 }
 0x404   :  { %3580 = vmatpush.bf16.msra.mxu1 %v5178_v4 }
 0x408   :  { %3581 = vmatpush.bf16.msra.mxu1 %v5177_v59 }
 0x40f   :  { %3482 = vmatmul.bf16.gmra.mxu0 %v3050_v18 }
 0x41f   :  { %3486 = vmatmul.bf16.gmra.mxu0 %v3054_v32 }
 0x42c   :  { %v3384_v30 = vpop.f32.mrf.mxu0 }
 0x434   :  { %v3386_v42 = vpop.f32.mrf.mxu0 }
 0x435   :  { %v5184_v42 = vld [vmem:[%s7140_s13] sm:$0xff] }
 0x436   :  { %3652 = vmatpush.bf16.msra.mxu2 %v5184_v42 }
 0x43a   :  { %v3430_v56 = vpop.f32.mrf.mxu2 }
 0x43c   :  { %v3407_v45 = vpop.f32.mrf.mxu1  ;;  %v3388_v57 = vpop.f32.mrf.mxu0 }
 0x43d   :  { %v3408_v41 = vadd.f32 %v3407_v45, %v3384_v30  ;;  %v5205_v30 = vld [vmem:[%s7137_s10] ss:$0 sm:$0xff] }
 0x43f   :  { %v3431_v53 = vadd.f32 %v3430_v56, %v3408_v41 }
 0x442   :  { %v3432_v1 = vpop.f32.mrf.mxu2 }
 0x443   :  { %v5206_v1 = vld [vmem:[%s7139_s12] ss:$0 sm:$0xff] }
 0x444   :  { %v3409_v17 = vpop.f32.mrf.mxu1  ;;  %v3389_v9 = vpop.f32.mrf.mxu0 }
 0x44a   :  { %v3453_v19 = vpop.f32.mrf.mxu3  ;;  %v3434_v23 = vpop.f32.mrf.mxu2 }
 0x44b   :  { %v3454_v11 = vadd.f32 %v3453_v19, %v3431_v53 }
 0x44c   :  { %v3411_v47 = vpop.f32.mrf.mxu1  ;;  %v3391_v15 = vpop.f32.mrf.mxu0 }
 0x44d   :  { %v5207_v47 = vld [vmem:[%s7141_s14] ss:$0 sm:$0xff] }
 0x452   :  { %v3455_v0 = vpop.f32.mrf.mxu3  ;;  %v3435_v46 = vpop.f32.mrf.mxu2 }
 0x454   :  { %v3412_v20 = vpop.f32.mrf.mxu1  ;;  %v3393_v43 = vpop.f32.mrf.mxu0 }
 0x45a   :  { %v3457_v16 = vpop.f32.mrf.mxu3  ;;  %v3437_v34 = vpop.f32.mrf.mxu2 }
 0x45c   :  { %v3414_v13 = vpop.f32.mrf.mxu1  ;;  %v3395_v12 = vpop.f32.mrf.mxu0 }
 0x45d   :  { %v3415_v39 = vadd.f32 %v3414_v13, %v3391_v15 }
 0x45f   :  { %v3438_v31 = vadd.f32 %v3437_v34, %v3415_v39 }
 0x462   :  { %v3458_v26 = vpop.f32.mrf.mxu3  ;;  %v3439_v61 = vpop.f32.mrf.mxu2 }
 0x464   :  { %v3416_v37 = vpop.f32.mrf.mxu1  ;;  %v3396_v10 = vpop.f32.mrf.mxu0 }
 0x46a   :  { %v3460_v36 = vpop.f32.mrf.mxu3  ;;  %v3441_v35 = vpop.f32.mrf.mxu2 }
 0x46b   :  { %v3461_v22 = vadd.f32 %v3460_v36, %v3438_v31 }
 0x46c   :  { %v3418_v3 = vpop.f32.mrf.mxu1  ;;  %v3476_v29 = vpop.f32.mrf.mxu0 }
 0x46d   :  { %v3477_v56 = vadd.f32 %v3476_v29, %v3454_v11 }
 0x472   :  { %v3462_v6 = vpop.f32.mrf.mxu3  ;;  %v3442_v14 = vpop.f32.mrf.mxu2 }
 0x474   :  { %v3419_v25 = vpop.f32.mrf.mxu1  ;;  %v3478_v27 = vpop.f32.mrf.mxu0 }
 0x47a   :  { %v3464_v50 = vpop.f32.mrf.mxu3 }
 0x47c   :  { %v3480_v21 = vpop.f32.mrf.mxu0 }
 0x482   :  { %v3465_v48 = vpop.f32.mrf.mxu3 }
 0x484   :  { %v3481_v18 = vpop.f32.mrf.mxu0 }
 0x48c   :  { %v3483_v51 = vpop.f32.mrf.mxu0 }
 0x48d   :  { %v3484_v38 = vadd.f32 %v3483_v51, %v3461_v22 }
 0x48f   :  { %v3491_v45 = vrot.slane %v3484_v38, 7 }
 0x491   :  { %v3494_v57 = vsel %vm3493_vm4, %v3477_v56, %v3491_v45 }
 0x492   :  { %v3499_v41 = vadd.f32 %v5205_v30, %v3494_v57 }
 0x494   :  { %v3500_v60 = vmax.f32 %v3499_v41, 0.0  ;;  %v3485_v2 = vpop.f32.mrf.mxu0 }
 0x496   :  { %v3501_v53 = vpack.c.bf16 %v3500_v60, %v3500_v60 }
 0x498   :  { %4891 = vmatmul.msk.bf16.vlgmr.msra.gmra.mxu1 %vm3566_vm5, %v3501_v53 }
 0x49c   :  { %v3487_v23 = vpop.f32.mrf.mxu0 }
 0x4a4   :  { %v3488_v11 = vpop.f32.mrf.mxu0 }
 0x515   :  { %v3583_v28 = vpop.f32.mrf.mxu1 }
 0x516   :  { %v3584_v17 = vadd.f32 %v5206_v1, %v3583_v28 }
 0x518   :  { %v3587_v9 = vmax.f32 %v3584_v17, 0.0 }
 0x51a   :  { %v3588_v55 = vpack.c.bf16 %v3587_v9, %v3587_v9 }
 0x51c   :  { %4912 = vmatmul.msk.bf16.vlgmr.msra.gmra.mxu2 %vm3637_vm6, %v3588_v55 }
 0x51d   :  { %v3585_v19 = vpop.f32.mrf.mxu1 }
 0x59f   :  { %v3654_v24 = vpop.f32.mrf.mxu2 }
 0x5a0   :  { %v3655_v15 = vadd.f32 %v5207_v47, %v3654_v24 }
 0x5a2   :  { %3659 = vst.msk [vmem:[#allocation15] sm:$0x3] %vm3658_vm7, %v3655_v15 }
 0x5a3   :  { %3670 = dma.vmem_to_hbm [thread:$0]  %s3666_s28, 32, %s3668_s29, [#allocation9]  }
 0x5a7   :  { %v3656_v49 = vpop.f32.mrf.mxu2 }
 0x5a8   :  { %5336 = dma.done.wait [#allocation9], 32  }
 0x5a9   :  { %5337 = vsyncadd [#allocation9], 4294967264 }
 0x5aa   :  { %3675 = vsyncpa [#allocation8], 1 }
 0x5ab   :  { %3676 = vsyncpa [#allocation11], 1 }
 0x5ac   :  { %3677 = vsyncpa [#allocation14], 1 }
 0x5ad   :  { %3678 = vsyncpa [#allocation9], 1 }

</bundles_post_ra>
